<compile_context>
chip_gen: v7x
topology: tpu7x:2x2x1
jax: 0.10.0
libtpu: 0.0.40
codegen_flags: <defaults>
</compile_context>

<pallas_src>
import math

import jax
import jax.numpy as jnp
from jax.experimental import pallas as pl
from jax.experimental.pallas import tpu as pltpu


def _cdiv(a: int, b: int) -> int:
    return -(-a // b)


def _make_rbf_kernel(inv_denom: float):
    def kernel(x_ref, e_ref, g_ref, o_ref):
        # x_ref: (tr, W)  raw x values (W x-elements per output row)
        # e_ref: (W, C)   0/1 lane-expansion matrix, E[j, j*G+g] = 1
        # g_ref: (1, C)   grid tiled across lanes: g_ref[0, j*G+g] = grid[g]
        # o_ref: (tr, C)  lane-dense output block, unmasked full-width stores
        xe = jnp.dot(
            x_ref[...], e_ref[...],
            preferred_element_type=jnp.float32,
            precision=jax.lax.Precision.HIGHEST,   # exact f32 pass-through of x
        )                                           # xe[r, j*G+g] = x[r, j]
        d = (xe - g_ref[...]) * inv_denom           # matches (x - g) / denom
        o_ref[...] = jnp.exp(-(d * d))

    return kernel


def radial_basis_function(x, grid, denominator, *, tile_rows: int = 1024):
    """exp(-((x[..., None] - grid) / denominator) ** 2) via a Pallas TPU kernel.

    x: float array of any shape; grid: (G,) float; denominator: Python float
    (as stored by the PyTorch module). Returns x.shape + (G,), float32.
    """
    orig_shape = x.shape
    G = int(grid.shape[0])
    inv_denom = 1.0 / float(denominator)

    # Output row width C: multiple of 128 (dense lanes / unmasked vst) and of G
    # (each row holds whole per-x grid groups, so the final reshape is a view).
    base = (G * 128) // math.gcd(G, 128)           # lcm(G, 128)
    C = base * max(1, 1024 // base)                # target ~1024 lanes
    W = C // G                                     # x elements per output row

    N = int(x.size)
    M = N * G
    rows = max(1, _cdiv(N, W))                     # exact number of output rows

    # Row tile: keep the output block <= ~4 MiB so double-buffered in+out fits
    # even the smallest default scoped-VMEM budget (v5e: 16 MiB).
    budget_rows = max(8, ((4 << 20) // (C * 4) // 8) * 8)
    tr = min(tile_rows, budget_rows, rows)
    if tr < rows:
        tr = max(8, (tr // 8) * 8)
    num_steps = _cdiv(rows, tr)                    # last block may be partial;
                                                   # Pallas clips its writeback.

    # ---- Host-side prep: O(N) worst case, never output-sized. ----
    x_flat = x.reshape(-1)
    if x_flat.dtype != jnp.float32:
        x_flat = x_flat.astype(jnp.float32)
    n_pad = rows * W
    if n_pad != N:                                 # only when N % W != 0
        x_flat = jnp.pad(x_flat, (0, n_pad - N))
    x2d = x_flat.reshape(rows, W)

    grid_f32 = grid.astype(jnp.float32)
    g_row = jnp.tile(grid_f32, W).reshape(1, C)    # g_row[0, j*G+g] = grid[g]
    # One-hot expansion matrix: E[j, c] = 1 iff c // G == j, so (x @ E) repeats
    # every x element G times along the lane axis in grid-minor order.
    E = (jnp.arange(C, dtype=jnp.int32)[None, :] // G
         == jnp.arange(W, dtype=jnp.int32)[:, None]).astype(jnp.float32)

    cost = pl.CostEstimate(
        flops=2 * rows * W * C + 4 * rows * C,
        transcendentals=rows * C,
        bytes_accessed=4 * (rows * W + rows * C + W * C + C),
    )

    out2d = pl.pallas_call(
        _make_rbf_kernel(inv_denom),
        out_shape=jax.ShapeDtypeStruct((rows, C), jnp.float32),
        grid=(num_steps,),
        in_specs=[
            pl.BlockSpec((tr, W), lambda i: (i, 0)),
            pl.BlockSpec((W, C), lambda i: (0, 0)),   # resident across steps
            pl.BlockSpec((1, C), lambda i: (0, 0)),   # resident across steps
        ],
        out_specs=pl.BlockSpec((tr, C), lambda i: (i, 0)),
        compiler_params=pltpu.CompilerParams(
            dimension_semantics=("parallel",),        # v7x: shard rows over TCs
        ),
        cost_estimate=cost,
    )(x2d, E, g_row)

    out_flat = out2d.reshape(-1)                      # free: identical byte order
    if n_pad != N:
        out_flat = out_flat[:M]                       # only for N % W != 0
    return out_flat.reshape(*orig_shape, G)


if __name__ == "__main__":
    # Module parameters (deterministic, matching __init__ defaults)
    grid_min, grid_max, num_grids = -2.0, 2.0, 8
    grid = jnp.linspace(grid_min, grid_max, num_grids, dtype=jnp.float32)
    denominator = (grid_max - grid_min) / (num_grids - 1)

    # Small deterministic input (NCHW-like)
    key = jax.random.PRNGKey(0)
    x = jax.random.normal(key, (2, 4, 16, 16), dtype=jnp.float32)

    out = radial_basis_function(x, grid, denominator)
    out = jax.block_until_ready(out)

    # Reference check in plain JAX (PyTorch formula).  Tolerance leaves headroom
    # for the MXU split-precision pass-through and the (x-g)*inv_denom vs
    # (x-g)/denom rounding difference.
    ref = jnp.exp(-(((x[..., None] - grid) / denominator) ** 2))
    assert out.shape == (2, 4, 16, 16, 8), out.shape
    max_err = float(jnp.max(jnp.abs(out - ref)))
    assert jnp.allclose(out, ref, rtol=1e-4, atol=1e-5), max_err

    print("KERNEL_OK")
</pallas_src>

<mosaic_0001>
module attributes {stable_mosaic.version = 11 : i64} {
  func.func @kernel(%arg0: i32, %arg1: memref<16x128xf32, #tpu.memory_space<vmem>>, %arg2: memref<128x1024xf32, #tpu.memory_space<vmem>>, %arg3: memref<1x1024xf32, #tpu.memory_space<vmem>>, %arg4: memref<16x1024xf32, #tpu.memory_space<vmem>>) attributes {dimension_semantics = [#tpu.dimension_semantics<parallel>], iteration_bounds = array<i64: 1>, scalar_prefetch = 0 : i64, scratch_operands = 0 : i64, tpu.core_type = #tpu.core_type<tc>, window_params = [{transform_indices = @transform_0, window_bounds = array<i64: 16, 128>}, {pipeline_mode = #tpu.pipeline_mode<synchronous>, transform_indices = @transform_1, window_bounds = array<i64: 128, 1024>}, {pipeline_mode = #tpu.pipeline_mode<synchronous>, transform_indices = @transform_2, window_bounds = array<i64: 1, 1024>}, {transform_indices = @transform_3, window_bounds = array<i64: 16, 1024>}]} {
    %c0 = arith.constant 0 : index
    %c0_0 = arith.constant 0 : index
    %0 = vector.load %arg1[%c0, %c0_0] : memref<16x128xf32, #tpu.memory_space<vmem>>, vector<16x128xf32>
    %c0_1 = arith.constant 0 : index
    %c0_2 = arith.constant 0 : index
    %1 = vector.load %arg2[%c0_1, %c0_2] : memref<128x1024xf32, #tpu.memory_space<vmem>>, vector<128x1024xf32>
    %cst = arith.constant dense<0.000000e+00> : vector<16x1024xf32>
    %2 = tpu.matmul %0, %1, %cst {dimension_numbers = #tpu.dot_dimension_numbers<[1], [0], [0], [1], [0, 0, 1, 1], [], []>, precision = #tpu.contract_precision<fp32>} : vector<16x128xf32>, vector<128x1024xf32>, vector<16x1024xf32> -> vector<16x1024xf32>
    %c0_3 = arith.constant 0 : index
    %c0_4 = arith.constant 0 : index
    %3 = vector.load %arg3[%c0_3, %c0_4] : memref<1x1024xf32, #tpu.memory_space<vmem>>, vector<1x1024xf32>
    %4 = vector.broadcast %3 : vector<1x1024xf32> to vector<16x1024xf32>
    %5 = arith.subf %2, %4 : vector<16x1024xf32>
    %cst_5 = arith.constant 1.750000e+00 : f32
    %6 = vector.broadcast %cst_5 : f32 to vector<16x1024xf32>
    %7 = arith.mulf %5, %6 : vector<16x1024xf32>
    %8 = arith.mulf %7, %7 : vector<16x1024xf32>
    %cst_6 = arith.constant 0.000000e+00 : f32
    %9 = vector.broadcast %cst_6 : f32 to vector<16x1024xf32>
    %10 = arith.subf %9, %8 : vector<16x1024xf32>
    %11 = math.exp %10 : vector<16x1024xf32>
    %c0_7 = arith.constant 0 : index
    %c0_8 = arith.constant 0 : index
    %12 = vector.load %arg4[%c0_7, %c0_8] : memref<16x1024xf32, #tpu.memory_space<vmem>>, vector<16x1024xf32>
    tpu.vector_store %arg4[%c0_7, %c0_8], %11 {strides = array<i32>} : memref<16x1024xf32, #tpu.memory_space<vmem>>, vector<16x1024xf32>,
    return
  }
  func.func @transform_0(%arg0: i32) -> (i32, i32) {
    %c0_i32 = arith.constant 0 : i32
    %c0_i32_0 = arith.constant 0 : i32
    return %arg0, %c0_i32 : i32, i32
  }
  func.func @transform_1(%arg0: i32) -> (i32, i32) {
    %c0_i32 = arith.constant 0 : i32
    %c0_i32_0 = arith.constant 0 : i32
    %c0_i32_1 = arith.constant 0 : i32
    return %c0_i32, %c0_i32_0 : i32, i32
  }
  func.func @transform_2(%arg0: i32) -> (i32, i32) {
    %c0_i32 = arith.constant 0 : i32
    %c0_i32_0 = arith.constant 0 : i32
    %c0_i32_1 = arith.constant 0 : i32
    return %c0_i32, %c0_i32_0 : i32, i32
  }
  func.func @transform_3(%arg0: i32) -> (i32, i32) {
    %c0_i32 = arith.constant 0 : i32
    %c0_i32_0 = arith.constant 0 : i32
    return %arg0, %c0_i32 : i32, i32
  }
}

</mosaic_0001>

<bundles_post_ra>
// kernel: tpu_custom_call.1
= control target key start
LH: loop header
LB: loop body
LE: loop exit
PB: predicated region body
PF: predicated region fallthrough
CT: control target
= control target key end

     0   :  { %8 = vsyncpa [#allocation3], 0  ;;  %s6849_s0 = inlined_call_operand.hbm [shape: f32[16,128], index: 0, kind: input, shape index: {}]   ;;  %s6850_s1 = inlined_call_operand.hbm [shape: f32[128,1024], index: 1, kind: input, shape index: {}]   ;;  %s6851_s2 = inlined_call_operand.hbm [shape: f32[1,1024], index: 2, kind: input, shape index: {}]   ;;  %s6852_s3 = inlined_call_operand.hbm [shape: f32[16,1024], index: 3, kind: output, shape index: {}]  }
   0x1   :  { %9 = vsyncpa [#allocation6], 0 }
   0x2   :  { %10 = vsyncpa [#allocation4], 0  ;;  %s4955_s12 = smov [#allocation5]   ;;  %s4861_s16 = scalar_lea.hbm %s6850_s1, 16384 }
   0x3   :  { %s28_s13 = sshll.u32 %s4955_s12, 4  ;;  %p4862_p0 = scmp.ne.s32.totalorder %s6850_s1, %s4861_s16  ;;  %s29_s13 = int_to_ptr.vmem [resolvable:$true] %s28_s13 }
   0x4   :  { %p4865_p1 = scmp.lt.u32.totalorder %s4861_s16, %s6850_s1 }
   0x6   :  { %p4867_p2 = pnand %p4865_p1, %p4862_p0 }
   0x8   :  { %4870 = shalt.err (!%p4867_p2)
}
   0x9   :  { %s4871_s21 = scalar_lea.vmem %s29_s13, 16384  ;;  %p4876_p4 = scmp.lt.s32.totalorder %s29_s13, %s29_s13 }
   0xa   :  { %p4872_p3 = scmp.ne.s32.totalorder %s29_s13, %s4871_s21  ;;  %p4877_p5 = scmp.lt.s32.totalorder %s4871_s21, %s4871_s21 }
   0xc   :  { %p4878_p6 = por %p4877_p5, %p4876_p4 }
   0xe   :  { %p4879_p7 = pnand %p4878_p6, %p4872_p3 }
  0x10   :  { %4882 = shalt.err (!%p4879_p7)
}
  0x11   :  { %s4956_s22 = smov 1024   ;;  %s4957_s23 = smov 64  }
  0x12   :  { %34 = dma.hbm_to_vmem [thread:$0]  %s6850_s1, 16384, %s29_s13, [#allocation6], %s4956_s22, %s4956_s22, %s4957_s23  }
  0x13   :  { %s4958_s26 = smov [#allocation2]   ;;  %s4883_s30 = scalar_lea.hbm %s6849_s0, 256 }
  0x14   :  { %s16_s27 = sshll.u32 %s4958_s26, 4  ;;  %p4884_p8 = scmp.ne.s32.totalorder %s6849_s0, %s4883_s30  ;;  %s17_s27 = int_to_ptr.vmem [resolvable:$true] %s16_s27 }
  0x15   :  { %p4887_p9 = scmp.lt.u32.totalorder %s4883_s30, %s6849_s0 }
  0x17   :  { %p4889_p10 = pnand %p4887_p9, %p4884_p8 }
  0x19   :  { %4892 = shalt.err (!%p4889_p10)
}
  0x1a   :  { %s4893_s8 = scalar_lea.vmem %s17_s27, 256  ;;  %p4898_p12 = scmp.lt.s32.totalorder %s17_s27, %s17_s27 }
  0x1b   :  { %p4894_p11 = scmp.ne.s32.totalorder %s17_s27, %s4893_s8  ;;  %p4899_p13 = scmp.lt.s32.totalorder %s4893_s8, %s4893_s8 }
  0x1d   :  { %p4900_p0 = por %p4899_p13, %p4898_p12 }
  0x1f   :  { %p4901_p1 = pnand %p4900_p0, %p4894_p11 }
  0x21   :  { %4904 = shalt.err (!%p4901_p1)
}
  0x22   :  { %s4959_s1 = smov 128   ;;  %s4960_s9 = smov 8  }
  0x23   :  { %22 = dma.hbm_to_vmem [thread:$0]  %s6849_s0, 256, %s17_s27, [#allocation3], %s4959_s1, %s4959_s1, %s4960_s9  }
  0x24   :  { %s4961_s12 = smov [#allocation7]   ;;  %s4905_s16 = scalar_lea.hbm %s6851_s2, 128 }
  0x25   :  { %s41_s13 = sshll.u32 %s4961_s12, 4  ;;  %p4906_p2 = scmp.ne.s32.totalorder %s6851_s2, %s4905_s16  ;;  %s42_s13 = int_to_ptr.vmem [resolvable:$true] %s41_s13 }
  0x26   :  { %p4909_p3 = scmp.lt.u32.totalorder %s4905_s16, %s6851_s2 }
  0x28   :  { %p4911_p4 = pnand %p4909_p3, %p4906_p2 }
  0x2a   :  { %4914 = shalt.err (!%p4911_p4)
}
  0x2b   :  { %s4915_s21 = scalar_lea.vmem %s42_s13, 128  ;;  %p4920_p6 = scmp.lt.s32.totalorder %s42_s13, %s42_s13 }
  0x2c   :  { %p4916_p5 = scmp.ne.s32.totalorder %s42_s13, %s4915_s21  ;;  %p4921_p7 = scmp.lt.s32.totalorder %s4915_s21, %s4915_s21 }
  0x2e   :  { %p4922_p8 = por %p4921_p7, %p4920_p6 }
  0x30   :  { %p4923_p9 = pnand %p4922_p8, %p4916_p5 }
  0x32   :  { %4926 = shalt.err (!%p4923_p9)
}
  0x33   :  { %44 = dma.hbm_to_vmem [thread:$0]  %s6851_s2, 128, %s42_s13, [#allocation6]  }
  0x34   :  { %4949 = dma.done.wait [#allocation3], 256  }
  0x35   :  { %4950 = vsyncadd [#allocation3], 4294967040 }
  0x36   :  { %4951 = dma.done.wait [#allocation6], 16512  }
  0x37   :  { %4952 = vsyncadd [#allocation6], 4294950784  ;;  %v6853_v0 = vmov 0.0   ;;  %v57_v1 = vld [vmem:[#allocation5 + $0x8] sm:$0xff]  ;;  %v59_v3 = vld [vmem:[#allocation5 + $0x18] sm:$0xff]  ;;  %s4963_s2 = smov [#allocation8]  }
  0x38   :  { %280 = vmatprep.mubr.f32.mxu0 %v6853_v0  ;;  %1184 = vmatprep.mubr.f32.mxu1 %v6853_v0  ;;  %v65_v2 = vld [vmem:[#allocation5 + $0x48] sm:$0xff]  ;;  %v184_v4 = vand.u32 4294901760, %v57_v1  ;;  %v67_v6 = vld [vmem:[#allocation5 + $0x58] sm:$0xff]  ;;  %v1088_v7 = vand.u32 4294901760, %v59_v3  ;;  %v56_v8 = vld [vmem:[#allocation5] sm:$0xff]  ;;  %s3959_s25 = sshll.u32 %s4963_s2, 4  ;;  %s3960_s25 = int_to_ptr.vmem [resolvable:$true] %s3959_s25 }
  0x39   :  { %v188_v5 = vand.u32 4294901760, %v65_v2  ;;  %v64_v9 = vld [vmem:[#allocation5 + $0x40] sm:$0xff]  ;;  %v1092_v10 = vand.u32 4294901760, %v67_v6  ;;  %v186_v11 = vand.u32 4294901760, %v56_v8  ;;  %v58_v13 = vld [vmem:[#allocation5 + $0x10] sm:$0xff]  ;;  %v73_v15 = vld [vmem:[#allocation5 + $0x88] sm:$0xff]  ;;  %p4932_p11 = scmp.lt.s32.totalorder %s3960_s25, %s3960_s25 }
  0x3a   :  { %v190_v12 = vand.u32 4294901760, %v64_v9  ;;  %v66_v14 = vld [vmem:[#allocation5 + $0x50] sm:$0xff]  ;;  %v5027_v17 = vsub.f32 %v57_v1, %v184_v4  ;;  %v5031_v19 = vsub.f32 %v59_v3, %v1088_v7  ;;  %v81_v20 = vld [vmem:[#allocation5 + $0xc8] sm:$0xff]  ;;  %v75_v21 = vld [vmem:[#allocation5 + $0x98] sm:$0xff]  ;;  %v1090_v29 = vand.u32 4294901760, %v58_v13  ;;  %s4927_s26 = scalar_lea.vmem %s3960_s25, 2048 }
  0x3b   :  { %v5025_v16 = vpack.c.bf16 %v188_v5, %v184_v4  ;;  %v5029_v18 = vsub.f32 %v65_v2, %v188_v5  ;;  %v83_v22 = vld [vmem:[#allocation5 + $0xd8] sm:$0xff]  ;;  %v5033_v23 = vpack.c.bf16 %v1092_v10, %v1088_v7  ;;  %v5035_v24 = vsub.f32 %v67_v6, %v1092_v10  ;;  %v72_v27 = vld [vmem:[#allocation5 + $0x80] sm:$0xff]  ;;  %v74_v37 = vld [vmem:[#allocation5 + $0x90] sm:$0xff]  ;;  %p4928_p10 = scmp.ne.s32.totalorder %s3960_s25, %s4927_s26  ;;  %p4933_p12 = scmp.lt.s32.totalorder %s4927_s26, %s4927_s26 }
  0x3c   :  { %7185 = vst [vmem:[#allocation13_spill] sm:$0xff] %v5027_v17  ;;  %7187 = vst [vmem:[#allocation15_spill] sm:$0xff] %v5031_v19  ;;  %v5037_v25 = vpack.c.bf16 %v190_v12, %v186_v11  ;;  %v5039_v26 = vsub.f32 %v56_v8, %v186_v11  ;;  %v5042_v28 = vsub.f32 %v64_v9, %v190_v12  ;;  %v1094_v30 = vand.u32 4294901760, %v66_v14  ;;  %v80_v32 = vld [vmem:[#allocation5 + $0xc0] sm:$0xff]  ;;  %v82_v38 = vld [vmem:[#allocation5 + $0xd0] sm:$0xff] }
  0x3d   :  { %7184 = vst [vmem:[#allocation12_spill] sm:$0xff] %v5025_v16  ;;  %7186 = vst [vmem:[#allocation14_spill] sm:$0xff] %v5029_v18  ;;  %3973 = vmatprep.subr.bf16.mxu0 %v5025_v16  ;;  %v192_v31 = vand.u32 4294901760, %v73_v15  ;;  %4165 = vmatprep.subr.bf16.mxu1 %v5033_v23  ;;  %v196_v33 = vand.u32 4294901760, %v81_v20  ;;  %v1096_v34 = vand.u32 4294901760, %v75_v21  ;;  %v1100_v35 = vand.u32 4294901760, %v83_v22  ;;  %p4934_p13 = por %p4933_p12, %p4932_p11 }
  0x3e   :  { %7188 = vst [vmem:[#allocation16_spill] sm:$0xff] %v5033_v23  ;;  %7189 = vst [vmem:[#allocation17_spill] sm:$0xff] %v5035_v24  ;;  %3975 = vmatpush1.bf16.msra.mxu0 %v5037_v25  ;;  %v194_v36 = vand.u32 4294901760, %v72_v27  ;;  %v5046_v39 = vpack.c.bf16 %v1094_v30, %v1090_v29  ;;  %v5048_v40 = vsub.f32 %v58_v13, %v1090_v29  ;;  %v89_v43 = vld [vmem:[#allocation5 + $0x108] sm:$0xff]  ;;  %v91_v45 = vld [vmem:[#allocation5 + $0x118] sm:$0xff]  ;;  %v198_v52 = vand.u32 4294901760, %v80_v32 }
  0x3f   :  { %7190 = vst [vmem:[#allocation18_spill] sm:$0xff] %v5037_v25  ;;  %7191 = vst [vmem:[#allocation19_spill] sm:$0xff] %v5039_v26  ;;  %v5050_v41 = vsub.f32 %v66_v14, %v1094_v30  ;;  %v5052_v42 = vsub.f32 %v73_v15, %v192_v31  ;;  %v97_v44 = vld [vmem:[#allocation5 + $0x148] sm:$0xff]  ;;  %v5054_v46 = vpack.c.bf16 %v196_v33, %v192_v31  ;;  %v99_v50 = vld [vmem:[#allocation5 + $0x158] sm:$0xff]  ;;  %v1098_v54 = vand.u32 4294901760, %v74_v37  ;;  %p4935_p0 = pnand %p4934_p13, %p4928_p10 }
  0x40   :  { %7192 = vst [vmem:[#allocation20_spill] sm:$0xff] %v5042_v28  ;;  %7193 = vst [vmem:[#allocation21_spill] sm:$0xff] %v5046_v39  ;;  %v5056_v47 = vsub.f32 %v81_v20, %v196_v33  ;;  %v5058_v48 = vpack.c.bf16 %v1100_v35, %v1096_v34  ;;  %v5060_v49 = vsub.f32 %v75_v21, %v1096_v34  ;;  %4167 = vmatpush1.bf16.msra.mxu1 %v5046_v39  ;;  %v88_v59 = vld [vmem:[#allocation5 + $0x100] sm:$0xff]  ;;  %v90_v2 = vld [vmem:[#allocation5 + $0x110] sm:$0xff] }
  0x41   :  { %7194 = vst [vmem:[#allocation22_spill] sm:$0xff] %v5048_v40  ;;  %7195 = vst [vmem:[#allocation23_spill] sm:$0xff] %v5050_v41  ;;  %v5063_v51 = vsub.f32 %v83_v22, %v1100_v35  ;;  %v5065_v53 = vsub.f32 %v72_v27, %v194_v36  ;;  %3977 = vmatprep.subr.bf16.mxu0 %v5054_v46  ;;  %v1102_v55 = vand.u32 4294901760, %v82_v38  ;;  %v200_v56 = vand.u32 4294901760, %v89_v43  ;;  %v96_v60 = vld [vmem:[#allocation5 + $0x140] sm:$0xff]  ;;  %v98_v3 = vld [vmem:[#allocation5 + $0x150] sm:$0xff] }
  0x42   :  { %7196 = vst [vmem:[#allocation24_spill] sm:$0xff] %v5054_v46  ;;  %7197 = vst [vmem:[#allocation25_spill] sm:$0xff] %v5058_v48  ;;  %4169 = vmatprep.subr.bf16.mxu1 %v5058_v48  ;;  %v204_v57 = vand.u32 4294901760, %v97_v44  ;;  %v1104_v58 = vand.u32 4294901760, %v91_v45  ;;  %v5069_v61 = vpack.c.bf16 %v198_v52, %v194_v36  ;;  %v5071_v62 = vsub.f32 %v80_v32, %v198_v52  ;;  %v105_v4 = vld [vmem:[#allocation5 + $0x188] sm:$0xff]  ;;  %v107_v10 = vld [vmem:[#allocation5 + $0x198] sm:$0xff] }
  0x43   :  { %v5073_v63 = vsub.f32 %v74_v37, %v1098_v54  ;;  %v1108_v1 = vand.u32 4294901760, %v99_v50  ;;  %v5075_v5 = vpack.c.bf16 %v1102_v55, %v1098_v54  ;;  %v5077_v6 = vsub.f32 %v82_v38, %v1102_v55  ;;  %v113_v9 = vld [vmem:[#allocation5 + $0x1c8] sm:$0xff]  ;;  %v115_v11 = vld [vmem:[#allocation5 + $0x1d8] sm:$0xff]  ;;  %v104_v33 = vld [vmem:[#allocation5 + $0x180] sm:$0xff] }
  0x44   :  { %7198 = vst [vmem:[#allocation26_spill] sm:$0xff] %v5069_v61  ;;  %v5079_v7 = vpack.c.bf16 %v204_v57, %v200_v56  ;;  %v5081_v8 = vsub.f32 %v89_v43, %v200_v56  ;;  %3979 = vmatpush1.bf16.msra.mxu0 %v5069_v61  ;;  %v5084_v12 = vsub.f32 %v97_v44, %v204_v57  ;;  %v202_v20 = vand.u32 4294901760, %v88_v59  ;;  %v112_v38 = vld [vmem:[#allocation5 + $0x1c0] sm:$0xff]  ;;  %v106_v43 = vld [vmem:[#allocation5 + $0x190] sm:$0xff]  ;;  %v121_v55 = vld [vmem:[#allocation5 + $0x208] sm:$0xff] }
  0x45   :  { %7199 = vst [vmem:[#allocation27_spill] sm:$0xff] %v5075_v5  ;;  %v5086_v13 = vpack.c.bf16 %v1108_v1, %v1104_v58  ;;  %v5088_v14 = vsub.f32 %v91_v45, %v1104_v58  ;;  %v5090_v15 = vsub.f32 %v99_v50, %v1108_v1  ;;  %4171 = vmatpush1.bf16.msra.mxu1 %v5075_v5  ;;  %v206_v21 = vand.u32 4294901760, %v96_v60  ;;  %v114_v44 = vld [vmem:[#allocation5 + $0x1d0] sm:$0xff]  ;;  %v129_v56 = vld [vmem:[#allocation5 + $0x248] sm:$0xff]  ;;  %v123_v57 = vld [vmem:[#allocation5 + $0x218] sm:$0xff] }
  0x46   :  { %7200 = vst [vmem:[#allocation28_spill] sm:$0xff] %v5079_v7  ;;  %3981 = vmatprep.subr.bf16.mxu0 %v5079_v7  ;;  %v1106_v22 = vand.u32 4294901760, %v90_v2  ;;  %v1110_v27 = vand.u32 4294901760, %v98_v3  ;;  %v208_v29 = vand.u32 4294901760, %v105_v4  ;;  %v212_v30 = vand.u32 4294901760, %v113_v9  ;;  %v128_v0 = vld [vmem:[#allocation5 + $0x240] sm:$0xff] }
  0x47   :  { %7201 = vst [vmem:[#allocation29_spill] sm:$0xff] %v5086_v13  ;;  %4173 = vmatprep.subr.bf16.mxu1 %v5086_v13  ;;  %v1112_v31 = vand.u32 4294901760, %v107_v10  ;;  %v1116_v32 = vand.u32 4294901760, %v115_v11  ;;  %v5095_v34 = vpack.c.bf16 %v206_v21, %v202_v20  ;;  %v5097_v35 = vsub.f32 %v88_v59, %v202_v20  ;;  %v145_v13 = vld [vmem:[#allocation5 + $0x2c8] sm:$0xff]  ;;  %v139_v48 = vld [vmem:[#allocation5 + $0x298] sm:$0xff]  ;;  %v138_v46 = vld [vmem:[#allocation5 + $0x290] sm:$0xff] }
  0x48   :  { %v5099_v36 = vsub.f32 %v96_v60, %v206_v21  ;;  %v5101_v37 = vpack.c.bf16 %v1110_v27, %v1106_v22  ;;  %v5103_v45 = vsub.f32 %v90_v2, %v1106_v22  ;;  %v5105_v50 = vsub.f32 %v98_v3, %v1110_v27  ;;  %v131_v21 = vld [vmem:[#allocation5 + $0x258] sm:$0xff]  ;;  %v146_v16 = vld [vmem:[#allocation5 + $0x2d0] sm:$0xff] }
  0x49   :  { %7202 = vst [vmem:[#allocation30_spill] sm:$0xff] %v5095_v34  ;;  %v5107_v52 = vpack.c.bf16 %v212_v30, %v208_v29  ;;  %v5109_v54 = vsub.f32 %v105_v4, %v208_v29  ;;  %3983 = vmatpush1.bf16.msra.mxu0 %v5095_v34  ;;  %v5113_v58 = vsub.f32 %v113_v9, %v212_v30  ;;  %v210_v1 = vand.u32 4294901760, %v104_v33  ;;  %v120_v30 = vld [vmem:[#allocation5 + $0x200] sm:$0xff]  ;;  %v137_v34 = vld [vmem:[#allocation5 + $0x288] sm:$0xff] }
  0x4a   :  { %7203 = vst [vmem:[#allocation31_spill] sm:$0xff] %v5101_v37  ;;  %4175 = vmatpush1.bf16.msra.mxu1 %v5101_v37  ;;  %v5115_v59 = vpack.c.bf16 %v1116_v32, %v1112_v31  ;;  %v5117_v60 = vsub.f32 %v107_v10, %v1112_v31  ;;  %v5120_v2 = vsub.f32 %v115_v11, %v1116_v32  ;;  %v214_v3 = vand.u32 4294901760, %v112_v38  ;;  %v122_v10 = vld [vmem:[#allocation5 + $0x210] sm:$0xff] }
  0x4b   :  { %7204 = vst [vmem:[#allocation32_spill] sm:$0xff] %v5107_v52  ;;  %3985 = vmatprep.subr.bf16.mxu0 %v5107_v52  ;;  %v1114_v4 = vand.u32 4294901760, %v106_v43  ;;  %v1118_v20 = vand.u32 4294901760, %v114_v44  ;;  %v5123_v22 = vsub.f32 %v104_v33, %v210_v1  ;;  %v216_v27 = vand.u32 4294901760, %v121_v55  ;;  %v130_v52 = vld [vmem:[#allocation5 + $0x250] sm:$0xff] }
  0x4c   :  { %7205 = vst [vmem:[#allocation33_spill] sm:$0xff] %v5115_v59  ;;  %4177 = vmatprep.subr.bf16.mxu1 %v5115_v59  ;;  %v220_v9 = vand.u32 4294901760, %v129_v56  ;;  %v1120_v29 = vand.u32 4294901760, %v123_v57  ;;  %v5125_v31 = vpack.c.bf16 %v214_v3, %v210_v1  ;;  %v5127_v37 = vsub.f32 %v112_v38, %v214_v3 }
  0x4d   :  { %v5129_v11 = vpack.c.bf16 %v1118_v20, %v1114_v4  ;;  %v5131_v32 = vsub.f32 %v106_v43, %v1114_v4  ;;  %v5133_v59 = vsub.f32 %v114_v44, %v1118_v20  ;;  %v5137_v7 = vsub.f32 %v121_v55, %v216_v27  ;;  %v147_v55 = vld [vmem:[#allocation5 + $0x2d8] sm:$0xff] }
  0x4e   :  { %7206 = vst [vmem:[#allocation34_spill] sm:$0xff] %v5125_v31  ;;  %7207 = vst [vmem:[#allocation35_spill] sm:$0xff] %v5127_v37  ;;  %v5135_v33 = vpack.c.bf16 %v220_v9, %v216_v27  ;;  %v5139_v5 = vsub.f32 %v129_v56, %v220_v9  ;;  %3987 = vmatpush1.bf16.msra.mxu0 %v5125_v31  ;;  %v1124_v38 = vand.u32 4294901760, %v131_v21  ;;  %v218_v43 = vand.u32 4294901760, %v120_v30  ;;  %v144_v31 = vld [vmem:[#allocation5 + $0x2c0] sm:$0xff] }
  0x4f   :  { %7208 = vst [vmem:[#allocation36_spill] sm:$0xff] %v5129_v11  ;;  %7209 = vst [vmem:[#allocation37_spill] sm:$0xff] %v5131_v32  ;;  %4179 = vmatpush1.bf16.msra.mxu1 %v5129_v11  ;;  %v5143_v1 = vsub.f32 %v123_v57, %v1120_v29  ;;  %v222_v3 = vand.u32 4294901760, %v128_v0  ;;  %v1122_v4 = vand.u32 4294901760, %v122_v10  ;;  %v1126_v44 = vand.u32 4294901760, %v130_v52  ;;  %v136_v57 = vld [vmem:[#allocation5 + $0x280] sm:$0xff] }
  0x50   :  { %7210 = vst [vmem:[#allocation38_spill] sm:$0xff] %v5133_v59  ;;  %7211 = vst [vmem:[#allocation39_spill] sm:$0xff] %v5135_v33  ;;  %3989 = vmatprep.subr.bf16.mxu0 %v5135_v33  ;;  %v224_v20 = vand.u32 4294901760, %v137_v34  ;;  %v228_v61 = vand.u32 4294901760, %v145_v13  ;;  %v5146_v27 = vpack.c.bf16 %v1124_v38, %v1120_v29  ;;  %v5148_v56 = vsub.f32 %v131_v21, %v1124_v38  ;;  %v153_v29 = vld [vmem:[#allocation5 + $0x308] sm:$0xff] }
  0x51   :  { %7212 = vst [vmem:[#allocation40_spill] sm:$0xff] %v5137_v7  ;;  %7213 = vst [vmem:[#allocation41_spill] sm:$0xff] %v5139_v5  ;;  %v5150_v9 = vpack.c.bf16 %v222_v3, %v218_v43  ;;  %v5152_v11 = vsub.f32 %v120_v30, %v218_v43  ;;  %v5154_v39 = vsub.f32 %v128_v0, %v222_v3  ;;  %v1128_v0 = vand.u32 4294901760, %v139_v48 }
  0x52   :  { %7214 = vst [vmem:[#allocation42_spill] sm:$0xff] %v5143_v1  ;;  %7215 = vst [vmem:[#allocation43_spill] sm:$0xff] %v5146_v27  ;;  %v5156_v33 = vpack.c.bf16 %v1126_v44, %v1122_v4  ;;  %v5158_v25 = vsub.f32 %v122_v10, %v1122_v4  ;;  %v5160_v23 = vsub.f32 %v130_v52, %v1126_v44  ;;  %v161_v1 = vld [vmem:[#allocation5 + $0x348] sm:$0xff]  ;;  %4181 = vmatprep.subr.bf16.mxu1 %v5146_v27 }
  0x53   :  { %7216 = vst [vmem:[#allocation44_spill] sm:$0xff] %v5148_v56  ;;  %7217 = vst [vmem:[#allocation45_spill] sm:$0xff] %v5150_v9  ;;  %3991 = vmatpush1.bf16.msra.mxu0 %v5150_v9  ;;  %v5164_v21 = vpack.c.bf16 %v228_v61, %v224_v20  ;;  %v5166_v30 = vsub.f32 %v137_v34, %v224_v20  ;;  %v5168_v38 = vsub.f32 %v145_v13, %v228_v61  ;;  %v177_v56 = vld [vmem:[#allocation5 + $0x3c8] sm:$0xff] }
  0x54   :  { %7218 = vst [vmem:[#allocation46_spill] sm:$0xff] %v5152_v11  ;;  %7219 = vst [vmem:[#allocation47_spill] sm:$0xff] %v5154_v39  ;;  %4183 = vmatpush1.bf16.msra.mxu1 %v5156_v33  ;;  %v1132_v10 = vand.u32 4294901760, %v147_v55  ;;  %v226_v43 = vand.u32 4294901760, %v136_v57  ;;  %v230_v52 = vand.u32 4294901760, %v144_v31  ;;  %v1130_v3 = vand.u32 4294901760, %v138_v46 }
  0x55   :  { %7220 = vst [vmem:[#allocation48_spill] sm:$0xff] %v5156_v33  ;;  %7221 = vst [vmem:[#allocation49_spill] sm:$0xff] %v5158_v25  ;;  %3993 = vmatprep.subr.bf16.mxu0 %v5164_v21  ;;  %v5172_v4 = vsub.f32 %v139_v48, %v1128_v0  ;;  %v1134_v44 = vand.u32 4294901760, %v146_v16  ;;  %v232_v27 = vand.u32 4294901760, %v153_v29  ;;  %v236_v9 = vand.u32 4294901760, %v161_v1  ;;  %v163_v25 = vld [vmem:[#allocation5 + $0x358] sm:$0xff] }
  0x56   :  { %7222 = vst [vmem:[#allocation50_spill] sm:$0xff] %v5160_v23  ;;  %7223 = vst [vmem:[#allocation51_spill] sm:$0xff] %v5164_v21  ;;  %v155_v23 = vld [vmem:[#allocation5 + $0x318] sm:$0xff]  ;;  %v5174_v34 = vpack.c.bf16 %v1132_v10, %v1128_v0  ;;  %v5176_v61 = vsub.f32 %v147_v55, %v1132_v10  ;;  %v5178_v13 = vpack.c.bf16 %v230_v52, %v226_v43  ;;  %v152_v33 = vld [vmem:[#allocation5 + $0x300] sm:$0xff] }
  0x57   :  { %7224 = vst [vmem:[#allocation52_spill] sm:$0xff] %v5166_v30  ;;  %7225 = vst [vmem:[#allocation53_spill] sm:$0xff] %v5168_v38  ;;  %v5180_v20 = vsub.f32 %v136_v57, %v226_v43  ;;  %v160_v38 = vld [vmem:[#allocation5 + $0x340] sm:$0xff]  ;;  %v154_v30 = vld [vmem:[#allocation5 + $0x310] sm:$0xff]  ;;  %v5182_v39 = vsub.f32 %v144_v31, %v230_v52  ;;  %v5184_v48 = vpack.c.bf16 %v1134_v44, %v1130_v3  ;;  %v1136_v31 = vand.u32 4294901760, %v155_v23 }
  0x58   :  { %7226 = vst [vmem:[#allocation54_spill] sm:$0xff] %v5172_v4  ;;  %7227 = vst [vmem:[#allocation55_spill] sm:$0xff] %v5174_v34  ;;  %v5186_v21 = vsub.f32 %v138_v46, %v1130_v3  ;;  %v5188_v4 = vsub.f32 %v146_v16, %v1134_v44  ;;  %v162_v11 = vld [vmem:[#allocation5 + $0x350] sm:$0xff]  ;;  %v169_v0 = vld [vmem:[#allocation5 + $0x388] sm:$0xff]  ;;  %4185 = vmatprep.subr.bf16.mxu1 %v5174_v34  ;;  %3995 = vmatpush1.bf16.msra.mxu0 %v5178_v13  ;;  %v1140_v46 = vand.u32 4294901760, %v163_v25 }
  0x59   :  { %7228 = vst [vmem:[#allocation56_spill] sm:$0xff] %v5176_v61  ;;  %7229 = vst [vmem:[#allocation57_spill] sm:$0xff] %v5178_v13  ;;  %v5192_v55 = vpack.c.bf16 %v236_v9, %v232_v27  ;;  %v5194_v57 = vsub.f32 %v153_v29, %v232_v27  ;;  %v5196_v10 = vsub.f32 %v161_v1, %v236_v9  ;;  %4187 = vmatpush1.bf16.msra.mxu1 %v5184_v48 }
  0x5a   :  { %7230 = vst [vmem:[#allocation58_spill] sm:$0xff] %v5180_v20  ;;  %7231 = vst [vmem:[#allocation59_spill] sm:$0xff] %v5182_v39  ;;  %v234_v43 = vand.u32 4294901760, %v152_v33  ;;  %v238_v16 = vand.u32 4294901760, %v160_v38  ;;  %v1138_v52 = vand.u32 4294901760, %v154_v30  ;;  %v5200_v3 = vsub.f32 %v155_v23, %v1136_v31  ;;  %v178_v20 = vld [vmem:[#allocation5 + $0x3d0] sm:$0xff] }
  0x5b   :  { %7232 = vst [vmem:[#allocation60_spill] sm:$0xff] %v5184_v48  ;;  %7233 = vst [vmem:[#allocation61_spill] sm:$0xff] %v5186_v21  ;;  %3997 = vmatprep.subr.bf16.mxu0 %v5192_v55  ;;  %v1142_v44 = vand.u32 4294901760, %v162_v11  ;;  %v240_v34 = vand.u32 4294901760, %v169_v0  ;;  %v244_v13 = vand.u32 4294901760, %v177_v56  ;;  %v179_v21 = vld [vmem:[#allocation5 + $0x3d8] sm:$0xff]  ;;  %v5202_v27 = vpack.c.bf16 %v1140_v46, %v1136_v31 }
  0x5c   :  { %7234 = vst [vmem:[#allocation62_spill] sm:$0xff] %v5188_v4  ;;  %7235 = vst [vmem:[#allocation63_spill] sm:$0xff] %v5192_v55  ;;  %v171_v4 = vld [vmem:[#allocation5 + $0x398] sm:$0xff]  ;;  %v5204_v1 = vsub.f32 %v163_v25, %v1140_v46  ;;  %v5206_v9 = vpack.c.bf16 %v238_v16, %v234_v43  ;;  %v5208_v29 = vsub.f32 %v152_v33, %v234_v43  ;;  %v168_v48 = vld [vmem:[#allocation5 + $0x380] sm:$0xff] }
  0x5d   :  { %7236 = vst [vmem:[#allocation64_spill] sm:$0xff] %v5194_v57  ;;  %7237 = vst [vmem:[#allocation65_spill] sm:$0xff] %v5196_v10  ;;  %v176_v10 = vld [vmem:[#allocation5 + $0x3c0] sm:$0xff]  ;;  %v170_v57 = vld [vmem:[#allocation5 + $0x390] sm:$0xff]  ;;  %v5210_v39 = vsub.f32 %v160_v38, %v238_v16  ;;  %v5212_v23 = vpack.c.bf16 %v1142_v44, %v1138_v52  ;;  %v5214_v55 = vsub.f32 %v154_v30, %v1138_v52  ;;  %4189 = vmatprep.subr.bf16.mxu1 %v5202_v27 }
  0x5e   :  { %7238 = vst [vmem:[#allocation66_spill] sm:$0xff] %v5200_v3  ;;  %7239 = vst [vmem:[#allocation67_spill] sm:$0xff] %v5202_v27  ;;  %v5216_v3 = vsub.f32 %v162_v11, %v1142_v44  ;;  %3999 = vmatpush1.bf16.msra.mxu0 %v5206_v9  ;;  %v5220_v25 = vpack.c.bf16 %v244_v13, %v240_v34  ;;  %v5222_v33 = vsub.f32 %v169_v0, %v240_v34 }
  0x5f   :  { %7240 = vst [vmem:[#allocation68_spill] sm:$0xff] %v5206_v9  ;;  %7241 = vst [vmem:[#allocation69_spill] sm:$0xff] %v5212_v23  ;;  %v5224_v31 = vsub.f32 %v177_v56, %v244_v13  ;;  %v1144_v46 = vand.u32 4294901760, %v171_v4  ;;  %4191 = vmatpush1.bf16.msra.mxu1 %v5212_v23  ;;  %v1148_v38 = vand.u32 4294901760, %v179_v21  ;;  %v242_v43 = vand.u32 4294901760, %v168_v48  ;;  %v54_v23 = vld [vmem:[#allocation2] sm:$0xff] }
  0x60   :  { %7242 = vst [vmem:[#allocation70_spill] sm:$0xff] %v5220_v25  ;;  %7243 = vst [vmem:[#allocation71_spill] sm:$0xff] %v5222_v33  ;;  %v246_v30 = vand.u32 4294901760, %v176_v10  ;;  %v1146_v16 = vand.u32 4294901760, %v170_v57  ;;  %4001 = vmatprep.subr.bf16.mxu0 %v5220_v25  ;;  %v1150_v52 = vand.u32 4294901760, %v178_v20  ;;  %v6931_v44 = vand.u32 4294901760, %v5027_v17 }
  0x61   :  { %7244 = vst [vmem:[#allocation72_spill] sm:$0xff] %v5224_v31  ;;  %v5228_v11 = vsub.f32 %v171_v4, %v1144_v46  ;;  %v6930_v9 = vand.u32 4294901760, %v5029_v18  ;;  %v5232_v34 = vpack.c.bf16 %v1148_v38, %v1144_v46  ;;  %v5234_v56 = vsub.f32 %v179_v21, %v1148_v38 }
  0x62   :  { %v5236_v13 = vpack.c.bf16 %v246_v30, %v242_v43  ;;  %v5238_v0 = vsub.f32 %v168_v48, %v242_v43  ;;  %v5240_v27 = vsub.f32 %v176_v10, %v246_v30  ;;  %v5242_v31 = vpack.c.bf16 %v1150_v52, %v1146_v16 }
  0x63   :  { %7245 = vst [vmem:[#allocation73_spill] sm:$0xff] %v5232_v34  ;;  %v5244_v4 = vsub.f32 %v170_v57, %v1146_v16  ;;  %v5246_v25 = vsub.f32 %v178_v20, %v1150_v52  ;;  %4193 = vmatprep.subr.bf16.mxu1 %v5232_v34  ;;  %v306_v21 = vsub.f32 %v5027_v17, %v6931_v44  ;;  %v6934_v10 = vand.u32 4294901760, %v5031_v19 }
  0x64   :  { %7246 = vst [vmem:[#allocation74_spill] sm:$0xff] %v5236_v13  ;;  %7247 = vst [vmem:[#allocation75_spill] sm:$0xff] %v5240_v27  ;;  %4003 = vmatpush1.bf16.msra.mxu0 %v5236_v13  ;;  %v318_v48 = vsub.f32 %v5029_v18, %v6930_v9  ;;  %v6939_v46 = vand.u32 4294901760, %v5035_v24  ;;  %4195 = vmatpush1.bf16.msra.mxu1 %v5242_v31  ;;  %v5259_v20 = vand.u32 4294901760, %v54_v23  ;;  %v6946_v57 = vand.u32 4294901760, %v5039_v26 }
  0x65   :  { %7248 = vst [vmem:[#allocation76_spill] sm:$0xff] %v5242_v31  ;;  %7249 = vst [vmem:[#allocation77_spill] sm:$0xff] %v5244_v4  ;;  %v6947_v38 = vand.u32 4294901760, %v5042_v28  ;;  %v6951_v43 = vand.u32 4294901760, %v5048_v40  ;;  %v307_v30 = vand.u32 4294901760, %v306_v21  ;;  %v1210_v52 = vsub.f32 %v5031_v19, %v6934_v10 }
  0x66   :  { %7250 = vst [vmem:[#allocation78_spill] sm:$0xff] %v5246_v25  ;;  %7251 = vst [vmem:[#allocation79_spill] sm:$0xff] %v5259_v20  ;;  %v319_v16 = vand.u32 4294901760, %v318_v48  ;;  %v1222_v9 = vsub.f32 %v5035_v24, %v6939_v46  ;;  %v5271_v44 = vsub.f32 %v54_v23, %v5259_v20  ;;  %v312_v31 = vsub.f32 %v5039_v26, %v6946_v57 }
  0x67   :  { %v324_v21 = vsub.f32 %v5042_v28, %v6947_v38  ;;  %v1216_v48 = vsub.f32 %v5048_v40, %v6951_v43  ;;  %v1211_v13 = vand.u32 4294901760, %v1210_v52  ;;  %v6950_v46 = vand.u32 4294901760, %v5050_v41 }
  0x68   :  { %7252 = vst [vmem:[#allocation80_spill] sm:$0xff] %v5271_v44  ;;  %v4004_v10 = vpack.c.bf16 %v319_v16, %v307_v30  ;;  %v1223_v34 = vand.u32 4294901760, %v1222_v9  ;;  %v5284_v23 = vand.u32 4294901760, %v5271_v44  ;;  %v313_v20 = vand.u32 4294901760, %v312_v31 }
  0x69   :  { %v325_v24 = vand.u32 4294901760, %v324_v21  ;;  %v1217_v19 = vand.u32 4294901760, %v1216_v48  ;;  %v1228_v38 = vsub.f32 %v5050_v41, %v6950_v46  ;;  %v6953_v28 = vand.u32 4294901760, %v5052_v42 }
  0x6a   :  { %7253 = vst [vmem:[#allocation81_spill] sm:$0xff] %v5284_v23  ;;  %4005 = vmatprep.subr.bf16.mxu0 %v4004_v10  ;;  %v4196_v57 = vpack.c.bf16 %v1223_v34, %v1211_v13  ;;  %v6952_v30 = vand.u32 4294901760, %v5056_v47  ;;  %v284_v9 = vsub.f32 %v5271_v44, %v5284_v23  ;;  %v6954_v52 = vand.u32 4294901760, %v5060_v49 }
  0x6b   :  { %v4006_v16 = vpack.c.bf16 %v325_v24, %v313_v20  ;;  %v6955_v31 = vand.u32 4294901760, %v5063_v51  ;;  %v1229_v21 = vand.u32 4294901760, %v1228_v38  ;;  %v330_v34 = vsub.f32 %v5052_v42, %v6953_v28 }
  0x6c   :  { %4197 = vmatprep.subr.bf16.mxu1 %v4196_v57  ;;  %v342_v13 = vsub.f32 %v5056_v47, %v6952_v30  ;;  %v6956_v10 = vand.u32 4294901760, %v5065_v53  ;;  %v5302_v48 = vand.u32 4294901760, %v284_v9  ;;  %v1234_v24 = vsub.f32 %v5060_v49, %v6954_v52 }
  0x6d   :  { %v1246_v20 = vsub.f32 %v5063_v51, %v6955_v31  ;;  %v6965_v57 = vand.u32 4294901760, %v5071_v62  ;;  %v4198_v38 = vpack.c.bf16 %v1229_v21, %v1217_v19  ;;  %v331_v46 = vand.u32 4294901760, %v330_v34 }
  0x6e   :  { %7254 = vst [vmem:[#allocation82_spill] sm:$0xff] %v5302_v48  ;;  %v343_v43 = vand.u32 4294901760, %v342_v13  ;;  %v336_v30 = vsub.f32 %v5065_v53, %v6956_v10  ;;  %286 = vmatmul.mubr.f32.vlgmr.msra.gmra.mrb[0].mxu0 %v5302_v48  ;;  %1190 = vmatmul.mubr.f32.vlgmr.msra.gmra.mrb[0].mxu1 %v5302_v48  ;;  %v1235_v9 = vand.u32 4294901760, %v1234_v24  ;;  %v6961_v31 = vand.u32 4294901760, %v5073_v63 }
  0x6f   :  { %v1247_v28 = vand.u32 4294901760, %v1246_v20  ;;  %v348_v52 = vsub.f32 %v5071_v62, %v6965_v57  ;;  %4007 = vmatpush1.bf16.msra.mxu0 %v4006_v16  ;;  %4199 = vmatpush1.bf16.msra.mxu1 %v4198_v38  ;;  %v6962_v34 = vand.u32 4294901760, %v5077_v6  ;;  %v6963_v13 = vand.u32 4294901760, %v5081_v8 }
  0x70   :  { %v4008_v19 = vpack.c.bf16 %v343_v43, %v331_v46  ;;  %v337_v21 = vand.u32 4294901760, %v336_v30  ;;  %v1240_v24 = vsub.f32 %v5073_v63, %v6961_v31  ;;  %v6964_v20 = vand.u32 4294901760, %v5084_v12 }
  0x71   :  { %v4200_v10 = vpack.c.bf16 %v1247_v28, %v1235_v9  ;;  %v349_v23 = vand.u32 4294901760, %v348_v52  ;;  %v7255_v48 = vmov 0.0   ;;  %v1252_v46 = vsub.f32 %v5077_v6, %v6962_v34 }
  0x72   :  { %291 = vmatprep.mubr.f32.mxu0 %v7255_v48  ;;  %1195 = vmatprep.mubr.f32.mxu1 %v7255_v48  ;;  %v354_v28 = vsub.f32 %v5081_v8, %v6963_v13  ;;  %v6966_v43 = vand.u32 4294901760, %v5088_v14  ;;  %v6977_v30 = vand.u32 4294901760, %v5090_v15  ;;  %v1241_v52 = vand.u32 4294901760, %v1240_v24 }
  0x73   :  { %4009 = vmatprep.subr.bf16.mxu0 %v4008_v19  ;;  %4201 = vmatprep.subr.bf16.mxu1 %v4200_v10  ;;  %v4010_v16 = vpack.c.bf16 %v349_v23, %v337_v21  ;;  %v366_v38 = vsub.f32 %v5084_v12, %v6964_v20  ;;  %v6969_v9 = vand.u32 4294901760, %v5097_v35  ;;  %v1253_v19 = vand.u32 4294901760, %v1252_v46 }
  0x74   :  { %v355_v31 = vand.u32 4294901760, %v354_v28  ;;  %v1258_v34 = vsub.f32 %v5088_v14, %v6966_v43  ;;  %v1270_v13 = vsub.f32 %v5090_v15, %v6977_v30  ;;  %v6970_v21 = vand.u32 4294901760, %v5099_v36 }
  0x75   :  { %4011 = vmatpush1.bf16.msra.mxu0 %v4010_v16  ;;  %v367_v10 = vand.u32 4294901760, %v366_v38  ;;  %v360_v23 = vsub.f32 %v5097_v35, %v6969_v9  ;;  %v6974_v24 = vand.u32 4294901760, %v5103_v45  ;;  %v4202_v46 = vpack.c.bf16 %v1253_v19, %v1241_v52 }
  0x76   :  { %v1259_v28 = vand.u32 4294901760, %v1258_v34  ;;  %v1271_v20 = vand.u32 4294901760, %v1270_v13  ;;  %v6971_v57 = vand.u32 4294901760, %v5105_v50  ;;  %v372_v16 = vsub.f32 %v5099_v36, %v6970_v21 }
  0x77   :  { %v4012_v43 = vpack.c.bf16 %v367_v10, %v355_v31  ;;  %v361_v44 = vand.u32 4294901760, %v360_v23  ;;  %v1264_v38 = vsub.f32 %v5103_v45, %v6974_v24  ;;  %4203 = vmatpush1.bf16.msra.mxu1 %v4202_v46  ;;  %v6972_v34 = vand.u32 4294901760, %v5109_v54 }
  0x78   :  { %v4204_v9 = vpack.c.bf16 %v1271_v20, %v1259_v28  ;;  %v1276_v52 = vsub.f32 %v5105_v50, %v6971_v57  ;;  %v6973_v13 = vand.u32 4294901760, %v5113_v58  ;;  %v373_v31 = vand.u32 4294901760, %v372_v16 }
  0x79   :  { %4013 = vmatprep.subr.bf16.mxu0 %v4012_v43  ;;  %v1265_v19 = vand.u32 4294901760, %v1264_v38  ;;  %v6975_v10 = vand.u32 4294901760, %v5117_v60  ;;  %v6976_v23 = vand.u32 4294901760, %v5120_v2  ;;  %v378_v20 = vsub.f32 %v5109_v54, %v6972_v34 }
  0x7a   :  { %4205 = vmatprep.subr.bf16.mxu1 %v4204_v9  ;;  %v1277_v21 = vand.u32 4294901760, %v1276_v52  ;;  %v390_v46 = vsub.f32 %v5113_v58, %v6973_v13  ;;  %v6980_v28 = vand.u32 4294901760, %v5123_v22  ;;  %v4014_v57 = vpack.c.bf16 %v373_v31, %v361_v44 }
  0x7b   :  { %v1282_v43 = vsub.f32 %v5117_v60, %v6975_v10  ;;  %v1294_v9 = vsub.f32 %v5120_v2, %v6976_v23  ;;  %v6979_v16 = vand.u32 4294901760, %v5127_v37  ;;  %v379_v52 = vand.u32 4294901760, %v378_v20 }
  0x7c   :  { %v4206_v38 = vpack.c.bf16 %v1277_v21, %v1265_v19  ;;  %v391_v34 = vand.u32 4294901760, %v390_v46  ;;  %v384_v13 = vsub.f32 %v5123_v22, %v6980_v28  ;;  %4015 = vmatpush1.bf16.msra.mxu0 %v4014_v57  ;;  %v6978_v10 = vand.u32 4294901760, %v5131_v32 }
  0x7d   :  { %v1283_v24 = vand.u32 4294901760, %v1282_v43  ;;  %v1295_v44 = vand.u32 4294901760, %v1294_v9  ;;  %v396_v31 = vsub.f32 %v5127_v37, %v6979_v16  ;;  %v6983_v21 = vand.u32 4294901760, %v5133_v59 }
  0x7e   :  { %4207 = vmatpush1.bf16.msra.mxu1 %v4206_v38  ;;  %v4016_v23 = vpack.c.bf16 %v391_v34, %v379_v52  ;;  %v385_v30 = vand.u32 4294901760, %v384_v13  ;;  %v6984_v19 = vand.u32 4294901760, %v5137_v7  ;;  %v1288_v57 = vsub.f32 %v5131_v32, %v6978_v10  ;;  %v7256_v13 = vld [vmem:[#allocation42_spill] sm:$0xff]  ;;  %v7257_v52 = vld [vmem:[#allocation44_spill] sm:$0xff] }
  0x7f   :  { %v4208_v20 = vpack.c.bf16 %v1295_v44, %v1283_v24  ;;  %v397_v46 = vand.u32 4294901760, %v396_v31  ;;  %v6985_v43 = vand.u32 4294901760, %v5139_v5  ;;  %v1300_v9 = vsub.f32 %v5133_v59, %v6983_v21  ;;  %v7261_v59 = vld [vmem:[#allocation50_spill] sm:$0xff] }
  0x80   :  { %4017 = vmatprep.subr.bf16.mxu0 %v4016_v23  ;;  %v402_v34 = vsub.f32 %v5137_v7, %v6984_v19  ;;  %v6994_v38 = vand.u32 4294901760, %v7256_v13  ;;  %v6997_v24 = vand.u32 4294901760, %v7257_v52  ;;  %v1289_v31 = vand.u32 4294901760, %v1288_v57  ;;  %v7258_v23 = vld [vmem:[#allocation46_spill] sm:$0xff] }
  0x81   :  { %4209 = vmatprep.subr.bf16.mxu1 %v4208_v20  ;;  %v4018_v44 = vpack.c.bf16 %v397_v46, %v385_v30  ;;  %v414_v10 = vsub.f32 %v5139_v5, %v6985_v43  ;;  %v6996_v16 = vand.u32 4294901760, %v7258_v23  ;;  %v1301_v28 = vand.u32 4294901760, %v1300_v9  ;;  %v7259_v46 = vld [vmem:[#allocation47_spill] sm:$0xff]  ;;  %v7260_v43 = vld [vmem:[#allocation49_spill] sm:$0xff] }
  0x82   :  { %v403_v32 = vand.u32 4294901760, %v402_v34  ;;  %v1306_v21 = vsub.f32 %v7256_v13, %v6994_v38  ;;  %v1318_v19 = vsub.f32 %v7257_v52, %v6997_v24  ;;  %v6999_v57 = vand.u32 4294901760, %v7259_v46 }
  0x83   :  { %4019 = vmatpush1.bf16.msra.mxu0 %v4018_v44  ;;  %v415_v20 = vand.u32 4294901760, %v414_v10  ;;  %v408_v30 = vsub.f32 %v7258_v23, %v6996_v16  ;;  %v7002_v5 = vand.u32 4294901760, %v7260_v43  ;;  %v4210_v9 = vpack.c.bf16 %v1301_v28, %v1289_v31  ;;  %v7263_v31 = vld [vmem:[#allocation53_spill] sm:$0xff] }
  0x84   :  { %v1307_v34 = vand.u32 4294901760, %v1306_v21  ;;  %v1319_v7 = vand.u32 4294901760, %v1318_v19  ;;  %v7001_v37 = vand.u32 4294901760, %v7261_v59  ;;  %v420_v44 = vsub.f32 %v7259_v46, %v6999_v57  ;;  %v7262_v21 = vld [vmem:[#allocation52_spill] sm:$0xff] }
  0x85   :  { %v4020_v38 = vpack.c.bf16 %v415_v20, %v403_v32  ;;  %v409_v13 = vand.u32 4294901760, %v408_v30  ;;  %v1312_v10 = vsub.f32 %v7260_v43, %v7002_v5  ;;  %4211 = vmatpush1.bf16.msra.mxu1 %v4210_v9  ;;  %v7004_v19 = vand.u32 4294901760, %v7262_v21  ;;  %v7264_v30 = vld [vmem:[#allocation54_spill] sm:$0xff] }
  0x86   :  { %v4212_v16 = vpack.c.bf16 %v1319_v7, %v1307_v34  ;;  %v1324_v28 = vsub.f32 %v7261_v59, %v7001_v37  ;;  %v7005_v24 = vand.u32 4294901760, %v7263_v31  ;;  %v421_v32 = vand.u32 4294901760, %v420_v44  ;;  %v7265_v34 = vld [vmem:[#allocation58_spill] sm:$0xff]  ;;  %v7266_v44 = vld [vmem:[#allocation59_spill] sm:$0xff] }
  0x87   :  { %4021 = vmatprep.subr.bf16.mxu0 %v4020_v38  ;;  %v1313_v20 = vand.u32 4294901760, %v1312_v10  ;;  %v7007_v23 = vand.u32 4294901760, %v7264_v30  ;;  %v7009_v57 = vand.u32 4294901760, %v5176_v61  ;;  %v426_v7 = vsub.f32 %v7262_v21, %v7004_v19  ;;  %v7268_v21 = vld [vmem:[#allocation62_spill] sm:$0xff] }
  0x88   :  { %4213 = vmatprep.subr.bf16.mxu1 %v4212_v16  ;;  %v1325_v46 = vand.u32 4294901760, %v1324_v28  ;;  %v438_v9 = vsub.f32 %v7263_v31, %v7005_v24  ;;  %v7016_v37 = vand.u32 4294901760, %v7265_v34  ;;  %v4022_v5 = vpack.c.bf16 %v421_v32, %v409_v13 }
  0x89   :  { %v1330_v38 = vsub.f32 %v7264_v30, %v7007_v23  ;;  %v1342_v16 = vsub.f32 %v5176_v61, %v7009_v57  ;;  %v7014_v10 = vand.u32 4294901760, %v7266_v44  ;;  %v427_v59 = vand.u32 4294901760, %v426_v7  ;;  %v7267_v23 = vld [vmem:[#allocation61_spill] sm:$0xff] }
  0x8a   :  { %v4214_v28 = vpack.c.bf16 %v1325_v46, %v1313_v20  ;;  %v439_v19 = vand.u32 4294901760, %v438_v9  ;;  %v432_v24 = vsub.f32 %v7265_v34, %v7016_v37  ;;  %4023 = vmatpush1.bf16.msra.mxu0 %v4022_v5  ;;  %v7015_v30 = vand.u32 4294901760, %v7267_v23  ;;  %v7269_v20 = vld [vmem:[#allocation64_spill] sm:$0xff] }
  0x8b   :  { %v1331_v31 = vand.u32 4294901760, %v1330_v38  ;;  %v1343_v13 = vand.u32 4294901760, %v1342_v16  ;;  %v444_v32 = vsub.f32 %v7266_v44, %v7014_v10  ;;  %v7017_v46 = vand.u32 4294901760, %v7268_v21  ;;  %v7270_v38 = vld [vmem:[#allocation65_spill] sm:$0xff] }
  0x8c   :  { %4215 = vmatpush1.bf16.msra.mxu1 %v4214_v28  ;;  %v4024_v57 = vpack.c.bf16 %v439_v19, %v427_v59  ;;  %v433_v61 = vand.u32 4294901760, %v432_v24  ;;  %v7018_v7 = vand.u32 4294901760, %v7269_v20  ;;  %v1336_v5 = vsub.f32 %v7267_v23, %v7015_v30  ;;  %v7271_v24 = vld [vmem:[#allocation66_spill] sm:$0xff] }
  0x8d   :  { %v4216_v9 = vpack.c.bf16 %v1343_v13, %v1331_v31  ;;  %v445_v43 = vand.u32 4294901760, %v444_v32  ;;  %v7019_v16 = vand.u32 4294901760, %v7270_v38  ;;  %v1348_v10 = vsub.f32 %v7268_v21, %v7017_v46 }
  0x8e   :  { %4025 = vmatprep.subr.bf16.mxu0 %v4024_v57  ;;  %v450_v59 = vsub.f32 %v7269_v20, %v7018_v7  ;;  %v7021_v19 = vand.u32 4294901760, %v7271_v24  ;;  %v7024_v31 = vand.u32 4294901760, %v5204_v1  ;;  %v1337_v13 = vand.u32 4294901760, %v1336_v5 }
  0x8f   :  { %4217 = vmatprep.subr.bf16.mxu1 %v4216_v9  ;;  %v4026_v28 = vpack.c.bf16 %v445_v43, %v433_v61  ;;  %v462_v32 = vsub.f32 %v7270_v38, %v7019_v16  ;;  %v7023_v57 = vand.u32 4294901760, %v5208_v29  ;;  %v1349_v30 = vand.u32 4294901760, %v1348_v10 }
  0x90   :  { %v451_v37 = vand.u32 4294901760, %v450_v59  ;;  %v1354_v46 = vsub.f32 %v7271_v24, %v7021_v19  ;;  %v1366_v7 = vsub.f32 %v5204_v1, %v7024_v31  ;;  %v7025_v43 = vand.u32 4294901760, %v5210_v39 }
  0x91   :  { %4027 = vmatpush1.bf16.msra.mxu0 %v4026_v28  ;;  %v463_v9 = vand.u32 4294901760, %v462_v32  ;;  %v456_v61 = vsub.f32 %v5208_v29, %v7023_v57  ;;  %v7026_v5 = vand.u32 4294901760, %v5214_v55  ;;  %v4218_v10 = vpack.c.bf16 %v1349_v30, %v1337_v13  ;;  %v55_v57 = vld [vmem:[#allocation2 + $0x8] sm:$0xff] }
  0x92   :  { %v1355_v59 = vand.u32 4294901760, %v1354_v46  ;;  %v1367_v16 = vand.u32 4294901760, %v1366_v7  ;;  %v7027_v38 = vand.u32 4294901760, %v5216_v3  ;;  %v468_v28 = vsub.f32 %v5210_v39, %v7025_v43  ;;  %v7272_v7 = vld [vmem:[#allocation72_spill] sm:$0xff] }
  0x93   :  { %v4028_v19 = vpack.c.bf16 %v463_v9, %v451_v37  ;;  %v457_v24 = vand.u32 4294901760, %v456_v61  ;;  %v1360_v32 = vsub.f32 %v5214_v55, %v7026_v5  ;;  %4219 = vmatpush1.bf16.msra.mxu1 %v4218_v10  ;;  %v7028_v46 = vand.u32 4294901760, %v5222_v33 }
  0x94   :  { %v4220_v31 = vpack.c.bf16 %v1367_v16, %v1355_v59  ;;  %v1372_v30 = vsub.f32 %v5216_v3, %v7027_v38  ;;  %v7031_v37 = vand.u32 4294901760, %v7272_v7  ;;  %v469_v13 = vand.u32 4294901760, %v468_v28 }
  0x95   :  { %4029 = vmatprep.subr.bf16.mxu0 %v4028_v19  ;;  %v1361_v9 = vand.u32 4294901760, %v1360_v32  ;;  %v7033_v61 = vand.u32 4294901760, %v5228_v11  ;;  %v7034_v43 = vand.u32 4294901760, %v5234_v56  ;;  %v474_v16 = vsub.f32 %v5222_v33, %v7028_v46 }
  0x96   :  { %4221 = vmatprep.subr.bf16.mxu1 %v4220_v31  ;;  %v1373_v5 = vand.u32 4294901760, %v1372_v30  ;;  %v486_v10 = vsub.f32 %v7272_v7, %v7031_v37  ;;  %v5499_v59 = vand.u32 4294901760, %v55_v57  ;;  %v4030_v38 = vpack.c.bf16 %v469_v13, %v457_v24 }
  0x97   :  { %v1378_v19 = vsub.f32 %v5228_v11, %v7033_v61  ;;  %v1390_v31 = vsub.f32 %v5234_v56, %v7034_v43  ;;  %v7036_v28 = vand.u32 4294901760, %v5238_v0  ;;  %v475_v30 = vand.u32 4294901760, %v474_v16 }
  0x98   :  { %7273 = vst [vmem:[#allocation44_spill] sm:$0xff] %v5499_v59  ;;  %v4222_v32 = vpack.c.bf16 %v1373_v5, %v1361_v9  ;;  %v487_v46 = vand.u32 4294901760, %v486_v10  ;;  %v5509_v33 = vsub.f32 %v55_v57, %v5499_v59  ;;  %4031 = vmatpush1.bf16.msra.mxu0 %v4030_v38  ;;  %v7035_v13 = vand.u32 4294901760, %v5240_v27 }
  0x99   :  { %v1379_v37 = vand.u32 4294901760, %v1378_v19  ;;  %v1391_v7 = vand.u32 4294901760, %v1390_v31  ;;  %v480_v24 = vsub.f32 %v5238_v0, %v7036_v28  ;;  %v7037_v5 = vand.u32 4294901760, %v5244_v4 }
  0x9a   :  { %7274 = vst [vmem:[#allocation58_spill] sm:$0xff] %v5509_v33  ;;  %4223 = vmatpush1.bf16.msra.mxu1 %v4222_v32  ;;  %v4032_v61 = vpack.c.bf16 %v487_v46, %v475_v30  ;;  %v5516_v43 = vand.u32 4294901760, %v5509_v33  ;;  %v7038_v9 = vand.u32 4294901760, %v5246_v25  ;;  %v492_v38 = vsub.f32 %v5240_v27, %v7035_v13  ;;  %v7278_v13 = vld [vmem:[#allocation17_spill] sm:$0xff] }
  0x9b   :  { %v4224_v57 = vpack.c.bf16 %v1391_v7, %v1379_v37  ;;  %v481_v16 = vand.u32 4294901760, %v480_v24  ;;  %v1384_v46 = vsub.f32 %v5244_v4, %v7037_v5  ;;  %v7277_v24 = vld [vmem:[#allocation15_spill] sm:$0xff]  ;;  %v7292_v4 = vand.u32 4294901760, %v5071_v62 }
  0x9c   :  { %7275 = vst [vmem:[#allocation59_spill] sm:$0xff] %v5516_v43  ;;  %4033 = vmatprep.subr.bf16.mxu0 %v4032_v61  ;;  %v295_v10 = vsub.f32 %v5509_v33, %v5516_v43  ;;  %v1396_v19 = vsub.f32 %v5246_v25, %v7038_v9  ;;  %v493_v31 = vand.u32 4294901760, %v492_v38  ;;  %v4036_v61 = vpack.c.bf16 %v5029_v18, %v5027_v17  ;;  %v7281_v9 = vld [vmem:[#allocation35_spill] sm:$0xff]  ;;  %v7284_v43 = vld [vmem:[#allocation40_spill] sm:$0xff] }
  0x9d   :  { %4225 = vmatprep.subr.bf16.mxu1 %v4224_v57  ;;  %v1385_v37 = vand.u32 4294901760, %v1384_v46  ;;  %v4228_v28 = vpack.c.bf16 %v7278_v13, %v7277_v24  ;;  %v7279_v57 = vld [vmem:[#allocation20_spill] sm:$0xff]  ;;  %v4232_v46 = vpack.c.bf16 %v5063_v51, %v5060_v49  ;;  %v7288_v13 = vand.u32 4294901760, %v5056_v47 }
  0x9e   :  { %v5531_v7 = vand.u32 4294901760, %v295_v10  ;;  %v1397_v32 = vand.u32 4294901760, %v1396_v19  ;;  %v4034_v30 = vpack.c.bf16 %v493_v31, %v481_v16  ;;  %v4038_v38 = vpack.c.bf16 %v7279_v57, %v5039_v26  ;;  %v7280_v19 = vld [vmem:[#allocation79_spill] sm:$0xff]  ;;  %v7286_v57 = vld [vmem:[#allocation42_spill] sm:$0xff] }
  0x9f   :  { %v4230_v10 = vpack.c.bf16 %v5050_v41, %v5048_v40  ;;  %v4040_v16 = vpack.c.bf16 %v5056_v47, %v5052_v42  ;;  %v4234_v31 = vpack.c.bf16 %v5077_v6, %v5073_v63  ;;  %v7285_v41 = vld [vmem:[#allocation41_spill] sm:$0xff]  ;;  %v7287_v26 = vand.u32 4294901760, %v5052_v42 }
  0xa0   :  { %7276 = vst [vmem:[#allocation61_spill] sm:$0xff] %v5531_v7  ;;  %297 = vmatmul.mubr.f32.gmra.mrb[2].mxu0 %v5531_v7  ;;  %1201 = vmatmul.mubr.f32.gmra.mrb[2].mxu1 %v5531_v7  ;;  %v4226_v5 = vpack.c.bf16 %v1397_v32, %v1385_v37  ;;  %v4044_v37 = vpack.c.bf16 %v5084_v12, %v5081_v8  ;;  %v7283_v7 = vld [vmem:[#allocation38_spill] sm:$0xff]  ;;  %v7289_v18 = vand.u32 4294901760, %v5060_v49  ;;  %v7290_v17 = vand.u32 4294901760, %v5063_v51 }
  0xa1   :  { %4035 = vmatpush1.bf16.msra.mxu0 %v4034_v30  ;;  %527 = vmatprep.mubr.f32.mxu0 %v7255_v48  ;;  %v4046_v32 = vpack.c.bf16 %v5099_v36, %v5097_v35  ;;  %v4048_v30 = vpack.c.bf16 %v5113_v58, %v5109_v54  ;;  %v4052_v40 = vpack.c.bf16 %v7285_v41, %v7284_v43  ;;  %v7291_v25 = vand.u32 4294901760, %v5065_v53 }
  0xa2   :  { %4227 = vmatpush1.bf16.msra.mxu1 %v4226_v5  ;;  %4037 = vmatprep.subr.bf16.mxu0 %v4036_v61  ;;  %v4042_v5 = vpack.c.bf16 %v5071_v62, %v5065_v53  ;;  %v4238_v61 = vpack.c.bf16 %v5105_v50, %v5103_v45  ;;  %v5583_v24 = vpack.c.bf16 %v7288_v13, %v7287_v26  ;;  %v7293_v42 = vand.u32 4294901760, %v5073_v63 }
  0xa3   :  { %1431 = vmatprep.mubr.f32.mxu1 %v7255_v48  ;;  %4229 = vmatprep.subr.bf16.mxu1 %v4228_v28  ;;  %v4236_v28 = vpack.c.bf16 %v5090_v15, %v5088_v14  ;;  %v5589_v33 = vpack.c.bf16 %v7290_v17, %v7289_v18  ;;  %v5595_v27 = vpack.c.bf16 %v7292_v4, %v7291_v25  ;;  %v7294_v47 = vand.u32 4294901760, %v5077_v6 }
  0xa4   :  { %529 = vmatmul.mubr.f32.vlgmr.msra.gmra.mrb[0].mxu0 %v7280_v19  ;;  %v7295_v49 = vand.u32 4294901760, %v5081_v8  ;;  %v7296_v51 = vand.u32 4294901760, %v5084_v12  ;;  %v7297_v18 = vand.u32 4294901760, %v5088_v14  ;;  %v7298_v53 = vand.u32 4294901760, %v5090_v15 }
  0xa5   :  { %4039 = vmatpush1.bf16.msra.mxu0 %v4038_v38  ;;  %1433 = vmatmul.mubr.f32.vlgmr.msra.gmra.mrb[0].mxu1 %v7280_v19  ;;  %v4240_v38 = vpack.c.bf16 %v5120_v2, %v5117_v60  ;;  %v5601_v26 = vpack.c.bf16 %v7294_v47, %v7293_v42  ;;  %v7299_v63 = vand.u32 4294901760, %v5097_v35  ;;  %v7300_v6 = vand.u32 4294901760, %v5099_v36  ;;  %v7315_v47 = vld [vmem:[#allocation46_spill] sm:$0xff] }
  0xa6   :  { %4231 = vmatpush1.bf16.msra.mxu1 %v4230_v10  ;;  %4041 = vmatprep.subr.bf16.mxu0 %v4040_v16  ;;  %v4050_v10 = vpack.c.bf16 %v7281_v9, %v5123_v22  ;;  %v7282_v16 = vld [vmem:[#allocation37_spill] sm:$0xff]  ;;  %v5607_v17 = vpack.c.bf16 %v7296_v51, %v7295_v49  ;;  %v5613_v62 = vpack.c.bf16 %v7298_v53, %v7297_v18  ;;  %v7301_v8 = vand.u32 4294901760, %v5103_v45 }
  0xa7   :  { %4233 = vmatprep.subr.bf16.mxu1 %v4232_v46  ;;  %534 = vmatprep.mubr.f32.mxu0 %v7255_v48  ;;  %v4242_v19 = vpack.c.bf16 %v7283_v7, %v7282_v16  ;;  %v4244_v46 = vpack.c.bf16 %v7257_v52, %v7286_v57  ;;  %v5620_v25 = vpack.c.bf16 %v7300_v6, %v7299_v63  ;;  %v7302_v12 = vand.u32 4294901760, %v5105_v50  ;;  %v7319_v18 = vld [vmem:[#allocation49_spill] sm:$0xff]  ;;  %v7323_v6 = vld [vmem:[#allocation52_spill] sm:$0xff] }
  0xa8   :  { %1438 = vmatprep.mubr.f32.mxu1 %v7255_v48  ;;  %536 = vmatmul.mubr.f32.gmra.mrb[2].mxu0 %v5499_v59  ;;  %v7303_v14 = vand.u32 4294901760, %v5109_v54  ;;  %v7304_v15 = vand.u32 4294901760, %v5113_v58  ;;  %v7305_v35 = vand.u32 4294901760, %v5117_v60  ;;  %v7306_v36 = vand.u32 4294901760, %v5120_v2 }
  0xa9   :  { %4043 = vmatpush1.bf16.msra.mxu0 %v4042_v5  ;;  %1440 = vmatmul.mubr.f32.gmra.mrb[2].mxu1 %v5499_v59  ;;  %v5626_v4 = vpack.c.bf16 %v7302_v12, %v7301_v8  ;;  %v7307_v45 = vand.u32 4294901760, %v5123_v22  ;;  %v7308_v50 = vand.u32 4294901760, %v7281_v9  ;;  %v7309_v54 = vand.u32 4294901760, %v7282_v16  ;;  %v7317_v16 = vld [vmem:[#allocation47_spill] sm:$0xff]  ;;  %v7325_v8 = vld [vmem:[#allocation53_spill] sm:$0xff] }
  0xaa   :  { %4235 = vmatpush1.bf16.msra.mxu1 %v4234_v31  ;;  %4045 = vmatprep.subr.bf16.mxu0 %v4044_v37  ;;  %v5632_v13 = vpack.c.bf16 %v7304_v15, %v7303_v14  ;;  %v5639_v5 = vpack.c.bf16 %v7306_v36, %v7305_v35  ;;  %v7310_v58 = vand.u32 4294901760, %v7283_v7  ;;  %v7312_v60 = vand.u32 4294901760, %v7285_v41  ;;  %v7329_v15 = vld [vmem:[#allocation56_spill] sm:$0xff] }
  0xab   :  { %4237 = vmatprep.subr.bf16.mxu1 %v4236_v28  ;;  %670 = vmatprep.mubr.f32.mxu0 %v7255_v48  ;;  %v5645_v31 = vpack.c.bf16 %v7308_v50, %v7307_v45  ;;  %v7311_v28 = vand.u32 4294901760, %v7284_v43  ;;  %v7313_v2 = vand.u32 4294901760, %v7286_v57  ;;  %v7314_v22 = vand.u32 4294901760, %v7257_v52  ;;  %v7321_v43 = vld [vmem:[#allocation50_spill] sm:$0xff] }
  0xac   :  { %1574 = vmatprep.mubr.f32.mxu1 %v7255_v48  ;;  %v5651_v37 = vpack.c.bf16 %v7310_v58, %v7309_v54  ;;  %v7316_v49 = vand.u32 4294901760, %v7315_v47  ;;  %v7318_v51 = vand.u32 4294901760, %v7317_v16  ;;  %v7320_v53 = vand.u32 4294901760, %v7319_v18  ;;  %v7327_v52 = vld [vmem:[#allocation54_spill] sm:$0xff] }
  0xad   :  { %v5657_v42 = vpack.c.bf16 %v7312_v60, %v7311_v28  ;;  %4047 = vmatpush1.bf16.msra.mxu0 %v4046_v32  ;;  %v5663_v9 = vpack.c.bf16 %v7314_v22, %v7313_v2  ;;  %v7322_v63 = vand.u32 4294901760, %v7321_v43  ;;  %v7324_v32 = vand.u32 4294901760, %v7323_v6 }
  0xae   :  { %v5669_v7 = vpack.c.bf16 %v7318_v51, %v7316_v49  ;;  %v7326_v57 = vand.u32 4294901760, %v7325_v8  ;;  %4239 = vmatpush1.bf16.msra.mxu1 %v4238_v61  ;;  %4049 = vmatprep.subr.bf16.mxu0 %v4048_v30  ;;  %v7328_v14 = vand.u32 4294901760, %v7327_v52  ;;  %v7330_v35 = vand.u32 4294901760, %v7329_v15  ;;  %v7337_v30 = vld [vmem:[#allocation65_spill] sm:$0xff]  ;;  %v7340_v49 = vld [vmem:[#allocation66_spill] sm:$0xff] }
  0xaf   :  { %v5675_v41 = vpack.c.bf16 %v7322_v63, %v7320_v53  ;;  %v7331_v45 = vand.u32 4294901760, %v7265_v34  ;;  %v7332_v50 = vand.u32 4294901760, %v7266_v44  ;;  %v7333_v58 = vand.u32 4294901760, %v7267_v23  ;;  %4241 = vmatprep.subr.bf16.mxu1 %v4240_v38 }
  0xb0   :  { %v5681_v12 = vpack.c.bf16 %v7326_v57, %v7324_v32  ;;  %v5687_v36 = vpack.c.bf16 %v7330_v35, %v7328_v14  ;;  %v7334_v28 = vand.u32 4294901760, %v7268_v21  ;;  %v7336_v61 = vand.u32 4294901760, %v7269_v20 }
  0xb1   :  { %v5693_v54 = vpack.c.bf16 %v7332_v50, %v7331_v45  ;;  %v7338_v2 = vand.u32 4294901760, %v7337_v30  ;;  %v7341_v51 = vand.u32 4294901760, %v7340_v49  ;;  %v7342_v53 = vand.u32 4294901760, %v5204_v1  ;;  %v7350_v50 = vld [vmem:[#allocation71_spill] sm:$0xff]  ;;  %4051 = vmatpush1.bf16.msra.mxu0 %v4050_v10 }
  0xb2   :  { %v5699_v60 = vpack.c.bf16 %v7334_v28, %v7333_v58  ;;  %v7344_v32 = vand.u32 4294901760, %v5208_v29  ;;  %v7345_v57 = vand.u32 4294901760, %v5210_v39  ;;  %v7347_v38 = vand.u32 4294901760, %v5214_v55  ;;  %v7352_v28 = vld [vmem:[#allocation72_spill] sm:$0xff]  ;;  %4243 = vmatpush1.bf16.msra.mxu1 %v4242_v19  ;;  %4053 = vmatprep.subr.bf16.mxu0 %v4052_v40 }
  0xb3   :  { %v5705_v22 = vpack.c.bf16 %v7338_v2, %v7336_v61  ;;  %v5711_v63 = vpack.c.bf16 %v7342_v53, %v7341_v51  ;;  %v7348_v35 = vand.u32 4294901760, %v5216_v3  ;;  %v7351_v58 = vand.u32 4294901760, %v7350_v50  ;;  %4245 = vmatprep.subr.bf16.mxu1 %v4244_v46 }
  0xb4   :  { %7335 = vst [vmem:[#allocation62_spill] sm:$0xff] %v5699_v60  ;;  %v5717_v14 = vpack.c.bf16 %v7345_v57, %v7344_v32  ;;  %v7353_v61 = vand.u32 4294901760, %v7352_v28  ;;  %v7354_v51 = vand.u32 4294901760, %v5228_v11  ;;  %v7355_v53 = vand.u32 4294901760, %v5234_v56  ;;  %v7357_v57 = vld [vmem:[#allocation75_spill] sm:$0xff] }
  0xb5   :  { %7339 = vst [vmem:[#allocation64_spill] sm:$0xff] %v5705_v22  ;;  %7343 = vst [vmem:[#allocation35_spill] sm:$0xff] %v5711_v63  ;;  %v5723_v45 = vpack.c.bf16 %v7348_v35, %v7347_v38  ;;  %v7356_v32 = vand.u32 4294901760, %v5238_v0  ;;  %v7359_v38 = vld [vmem:[#allocation77_spill] sm:$0xff]  ;;  %v4250_v19 = vpack.c.bf16 %v7268_v21, %v7267_v23  ;;  %v4060_v40 = vpack.c.bf16 %v7337_v30, %v7269_v20  ;;  %v7366_v21 = vld [vmem:[#allocation18_spill] sm:$0xff] }
  0xb6   :  { %7346 = vst [vmem:[#allocation37_spill] sm:$0xff] %v5717_v14  ;;  %v5729_v2 = vpack.c.bf16 %v7353_v61, %v7351_v58  ;;  %v5735_v59 = vpack.c.bf16 %v7355_v53, %v7354_v51  ;;  %v7358_v14 = vand.u32 4294901760, %v7357_v57  ;;  %v7360_v35 = vand.u32 4294901760, %v7359_v38  ;;  %v7370_v20 = vld [vmem:[#allocation58_spill] sm:$0xff]  ;;  %v7384_v53 = vld [vmem:[#allocation48_spill] sm:$0xff] }
  0xb7   :  { %7349 = vst [vmem:[#allocation38_spill] sm:$0xff] %v5723_v45  ;;  %v7361_v45 = vld [vmem:[#allocation78_spill] sm:$0xff]  ;;  %v4054_v58 = vpack.c.bf16 %v7317_v16, %v7315_v47  ;;  %v4246_v61 = vpack.c.bf16 %v7321_v43, %v7319_v18  ;;  %v4056_v51 = vpack.c.bf16 %v7325_v8, %v7323_v6  ;;  %v4252_v10 = vpack.c.bf16 %v5204_v1, %v7340_v49  ;;  %v7372_v16 = vld [vmem:[#allocation27_spill] sm:$0xff]  ;;  %v7373_v18 = vld [vmem:[#allocation28_spill] sm:$0xff] }
  0xb8   :  { %v5741_v63 = vpack.c.bf16 %v7358_v14, %v7356_v32  ;;  %v7362_v22 = vand.u32 4294901760, %v7361_v45  ;;  %v4248_v14 = vpack.c.bf16 %v7329_v15, %v7327_v52  ;;  %v4062_v46 = vpack.c.bf16 %v5210_v39, %v5208_v29  ;;  %v7365_v29 = vld [vmem:[#allocation80_spill] sm:$0xff]  ;;  %v7371_v47 = vld [vmem:[#allocation26_spill] sm:$0xff]  ;;  %v7374_v43 = vld [vmem:[#allocation29_spill] sm:$0xff] }
  0xb9   :  { %4055 = vmatpush1.bf16.msra.mxu0 %v4054_v58  ;;  %4247 = vmatpush1.bf16.msra.mxu1 %v4246_v61  ;;  %v4256_v23 = vpack.c.bf16 %v5234_v56, %v5228_v11  ;;  %v4066_v1 = vpack.c.bf16 %v7357_v57, %v5238_v0  ;;  %v4258_v39 = vpack.c.bf16 %v7361_v45, %v7359_v38  ;;  %v7367_v11 = vld [vmem:[#allocation21_spill] sm:$0xff]  ;;  %v7368_v56 = vld [vmem:[#allocation24_spill] sm:$0xff]  ;;  %v7375_v6 = vld [vmem:[#allocation30_spill] sm:$0xff] }
  0xba   :  { %v5747_v60 = vpack.c.bf16 %v7362_v22, %v7360_v35  ;;  %v4058_v22 = vpack.c.bf16 %v7266_v44, %v7265_v34  ;;  %4057 = vmatprep.subr.bf16.mxu0 %v4056_v51  ;;  %4249 = vmatprep.subr.bf16.mxu1 %v4248_v14  ;;  %v4254_v34 = vpack.c.bf16 %v5216_v3, %v5214_v55  ;;  %v7363_v55 = vld [vmem:[#allocation12_spill] sm:$0xff]  ;;  %v7369_v0 = vld [vmem:[#allocation25_spill] sm:$0xff]  ;;  %v7376_v8 = vld [vmem:[#allocation31_spill] sm:$0xff] }
  0xbb   :  { %v4064_v44 = vpack.c.bf16 %v7352_v28, %v7350_v50  ;;  %v7364_v3 = vld [vmem:[#allocation16_spill] sm:$0xff]  ;;  %v7378_v15 = vld [vmem:[#allocation33_spill] sm:$0xff]  ;;  %v7379_v30 = vld [vmem:[#allocation34_spill] sm:$0xff] }
  0xbc   :  { %v7377_v52 = vld [vmem:[#allocation32_spill] sm:$0xff]  ;;  %v7381_v45 = vld [vmem:[#allocation39_spill] sm:$0xff]  ;;  %v7383_v28 = vld [vmem:[#allocation45_spill] sm:$0xff] }
  0xbd   :  { %4059 = vmatpush1.bf16.msra.mxu0 %v4058_v22  ;;  %4251 = vmatpush1.bf16.msra.mxu1 %v4250_v19  ;;  %v7380_v49 = vld [vmem:[#allocation36_spill] sm:$0xff]  ;;  %v7382_v50 = vld [vmem:[#allocation43_spill] sm:$0xff]  ;;  %v7387_v38 = vld [vmem:[#allocation57_spill] sm:$0xff] }
  0xbe   :  { %4061 = vmatprep.subr.bf16.mxu0 %v4060_v40  ;;  %4253 = vmatprep.subr.bf16.mxu1 %v4252_v10  ;;  %v7385_v32 = vld [vmem:[#allocation51_spill] sm:$0xff]  ;;  %v7388_v35 = vld [vmem:[#allocation60_spill] sm:$0xff]  ;;  %v7392_v14 = vld [vmem:[#allocation69_spill] sm:$0xff] }
  0xbf   :  { %v7386_v57 = vld [vmem:[#allocation55_spill] sm:$0xff]  ;;  %v7391_v51 = vld [vmem:[#allocation68_spill] sm:$0xff]  ;;  %v7393_v22 = vld [vmem:[#allocation70_spill] sm:$0xff] }
  0xc0   :  { %v7389_v58 = vld [vmem:[#allocation63_spill] sm:$0xff]  ;;  %v7394_v19 = vld [vmem:[#allocation13_spill] sm:$0xff]  ;;  %v7396_v10 = vld [vmem:[#allocation14_spill] sm:$0xff] }
  0xc1   :  { %4063 = vmatpush1.bf16.msra.mxu0 %v4062_v46  ;;  %4255 = vmatpush1.bf16.msra.mxu1 %v4254_v34  ;;  %v7390_v61 = vld [vmem:[#allocation67_spill] sm:$0xff]  ;;  %v7395_v40 = vand.u32 4294901760, %v7394_v19  ;;  %v7397_v46 = vand.u32 4294901760, %v7396_v10  ;;  %v7409_v19 = vld [vmem:[#allocation22_spill] sm:$0xff] }
  0xc2   :  { %4065 = vmatprep.subr.bf16.mxu0 %v4064_v44  ;;  %4257 = vmatprep.subr.bf16.mxu1 %v4256_v23  ;;  %v7398_v44 = vld [vmem:[#allocation73_spill] sm:$0xff]  ;;  %v7399_v23 = vld [vmem:[#allocation15_spill] sm:$0xff]  ;;  %v7410_v10 = vand.u32 4294901760, %v7409_v19 }
  0xc3   :  { %v4100_v34 = vpack.c.bf16 %v7397_v46, %v7395_v40  ;;  %v7411_v40 = vld [vmem:[#allocation23_spill] sm:$0xff] }
  0xc4   :  { %v7412_v46 = vand.u32 4294901760, %v7411_v40 }
  0xc5   :  { %4067 = vmatpush1.bf16.msra.mxu0 %v4066_v1  ;;  %4259 = vmatpush1.bf16.msra.mxu1 %v4258_v39  ;;  %v7400_v1 = vand.u32 4294901760, %v7399_v23  ;;  %v7401_v39 = vld [vmem:[#allocation17_spill] sm:$0xff] }
  0xc6   :  { %4069 = vmatprep.subr.bf16.mxu0 %v7363_v55  ;;  %4261 = vmatprep.subr.bf16.mxu1 %v7364_v3  ;;  %v7413_v23 = vld [vmem:[#allocation81_spill] sm:$0xff] }
  0xc8   :  { %673 = vmatmul.mubr.f32.vlgmr.msra.gmra.mrb[0].mxu0 %v7365_v29  ;;  %1577 = vmatmul.mubr.f32.vlgmr.msra.gmra.mrb[0].mxu1 %v7365_v29 }
  0xc9   :  { %4071 = vmatpush1.bf16.msra.mxu0 %v7366_v21  ;;  %4263 = vmatpush1.bf16.msra.mxu1 %v7367_v11 }
  0xca   :  { %4073 = vmatprep.subr.bf16.mxu0 %v7368_v56  ;;  %4265 = vmatprep.subr.bf16.mxu1 %v7369_v0 }
  0xcb   :  { %678 = vmatprep.mubr.f32.mxu0 %v7255_v48  ;;  %1582 = vmatprep.mubr.f32.mxu1 %v7255_v48 }
  0xcc   :  { %681 = vmatmul.mubr.f32.gmra.mrb[2].mxu0 %v7370_v20  ;;  %1585 = vmatmul.mubr.f32.gmra.mrb[2].mxu1 %v7370_v20  ;;  %v7402_v20 = vand.u32 4294901760, %v7401_v39 }
  0xcd   :  { %4075 = vmatpush1.bf16.msra.mxu0 %v7371_v47  ;;  %4267 = vmatpush1.bf16.msra.mxu1 %v7372_v16 }
  0xce   :  { %4077 = vmatprep.subr.bf16.mxu0 %v7373_v18  ;;  %4269 = vmatprep.subr.bf16.mxu1 %v7374_v43  ;;  %v4292_v29 = vpack.c.bf16 %v7402_v20, %v7400_v1  ;;  %v7414_v20 = vld [vmem:[#allocation59_spill] sm:$0xff] }
  0xcf   :  { %783 = vmatprep.mubr.f32.mxu0 %v7255_v48  ;;  %1687 = vmatprep.mubr.f32.mxu1 %v7255_v48 }
  0xd1   :  { %4079 = vmatpush1.bf16.msra.mxu0 %v7375_v6  ;;  %4271 = vmatpush1.bf16.msra.mxu1 %v7376_v8 }
  0xd2   :  { %4081 = vmatprep.subr.bf16.mxu0 %v7377_v52  ;;  %4273 = vmatprep.subr.bf16.mxu1 %v7378_v15 }
  0xd5   :  { %4083 = vmatpush1.bf16.msra.mxu0 %v7379_v30  ;;  %4275 = vmatpush1.bf16.msra.mxu1 %v7380_v49 }
  0xd6   :  { %4085 = vmatprep.subr.bf16.mxu0 %v7381_v45  ;;  %4277 = vmatprep.subr.bf16.mxu1 %v7382_v50 }
  0xd9   :  { %4087 = vmatpush1.bf16.msra.mxu0 %v7383_v28  ;;  %4279 = vmatpush1.bf16.msra.mxu1 %v7384_v53 }
  0xda   :  { %4089 = vmatprep.subr.bf16.mxu0 %v7385_v32  ;;  %4281 = vmatprep.subr.bf16.mxu1 %v7386_v57 }
  0xdd   :  { %4091 = vmatpush1.bf16.msra.mxu0 %v7387_v38  ;;  %4283 = vmatpush1.bf16.msra.mxu1 %v7388_v35  ;;  %v7406_v35 = vld [vmem:[#allocation20_spill] sm:$0xff] }
  0xde   :  { %4093 = vmatprep.subr.bf16.mxu0 %v7389_v58  ;;  %4285 = vmatprep.subr.bf16.mxu1 %v7390_v61  ;;  %v7403_v58 = vld [vmem:[#allocation74_spill] sm:$0xff]  ;;  %v7404_v61 = vld [vmem:[#allocation19_spill] sm:$0xff] }
  0xe1   :  { %4095 = vmatpush1.bf16.msra.mxu0 %v7391_v51  ;;  %4287 = vmatpush1.bf16.msra.mxu1 %v7392_v14  ;;  %v7405_v51 = vand.u32 4294901760, %v7404_v61  ;;  %v7407_v14 = vand.u32 4294901760, %v7406_v35  ;;  %v85_v61 = vld [vmem:[#allocation5 + $0xe8] sm:$0xff] }
  0xe2   :  { %4097 = vmatprep.subr.bf16.mxu0 %v7393_v22  ;;  %4289 = vmatprep.subr.bf16.mxu1 %v7398_v44  ;;  %v7408_v22 = vld [vmem:[#allocation76_spill] sm:$0xff]  ;;  %v4294_v44 = vpack.c.bf16 %v7412_v46, %v7410_v10  ;;  %v2004_v39 = vand.u32 4294901760, %v85_v61  ;;  %v76_v10 = vld [vmem:[#allocation5 + $0xa0] sm:$0xff] }
  0xe3   :  { %v4102_v38 = vpack.c.bf16 %v7407_v14, %v7405_v51  ;;  %v79_v51 = vld [vmem:[#allocation5 + $0xb8] sm:$0xff] }
  0xe4   :  { %v2904_v19 = vand.u32 4294901760, %v79_v51 }
  0xe5   :  { %4099 = vmatpush1.bf16.msra.mxu0 %v7403_v58  ;;  %4291 = vmatpush1.bf16.msra.mxu1 %v7408_v22  ;;  %v93_v22 = vld [vmem:[#allocation5 + $0x128] sm:$0xff] }
  0xe6   :  { %4101 = vmatprep.subr.bf16.mxu0 %v4100_v34  ;;  %4293 = vmatprep.subr.bf16.mxu1 %v4292_v29  ;;  %v62_v29 = vld [vmem:[#allocation5 + $0x30] sm:$0xff] }
  0xe8   :  { %787 = vmatmul.mubr.f32.vlgmr.msra.gmra.mrb[0].mxu0 %v7413_v23  ;;  %1691 = vmatmul.mubr.f32.vlgmr.msra.gmra.mrb[0].mxu1 %v7413_v23  ;;  %v86_v23 = vld [vmem:[#allocation5 + $0xf0] sm:$0xff] }
  0xe9   :  { %4103 = vmatpush1.bf16.msra.mxu0 %v4102_v38  ;;  %4295 = vmatpush1.bf16.msra.mxu1 %v4294_v44  ;;  %v77_v38 = vld [vmem:[#allocation5 + $0xa8] sm:$0xff] }
  0xea   :  { %4105 = vmatprep.subr.bf16.mxu0 %v5583_v24  ;;  %4297 = vmatprep.subr.bf16.mxu1 %v5589_v33  ;;  %v69_v33 = vld [vmem:[#allocation5 + $0x68] sm:$0xff]  ;;  %v63_v24 = vld [vmem:[#allocation5 + $0x38] sm:$0xff]  ;;  %v2000_v34 = vand.u32 4294901760, %v77_v38 }
  0xeb   :  { %792 = vmatprep.mubr.f32.mxu0 %v7255_v48  ;;  %1696 = vmatprep.mubr.f32.mxu1 %v7255_v48 }
  0xec   :  { %796 = vmatmul.mubr.f32.gmra.mrb[2].mxu0 %v7414_v20  ;;  %1700 = vmatmul.mubr.f32.gmra.mrb[2].mxu1 %v7414_v20  ;;  %v78_v20 = vld [vmem:[#allocation5 + $0xb0] sm:$0xff] }
  0xed   :  { %4107 = vmatpush1.bf16.msra.mxu0 %v5595_v27  ;;  %4299 = vmatpush1.bf16.msra.mxu1 %v5601_v26  ;;  %v61_v27 = vld [vmem:[#allocation5 + $0x28] sm:$0xff]  ;;  %v71_v26 = vld [vmem:[#allocation5 + $0x78] sm:$0xff] }
  0xee   :  { %4109 = vmatprep.subr.bf16.mxu0 %v5607_v17  ;;  %4301 = vmatprep.subr.bf16.mxu1 %v5613_v62  ;;  %v60_v17 = vld [vmem:[#allocation5 + $0x20] sm:$0xff]  ;;  %v2900_v35 = vand.u32 4294901760, %v71_v26 }
  0xef   :  { %962 = vmatprep.mubr.f32.mxu0 %v7255_v48  ;;  %1866 = vmatprep.mubr.f32.mxu1 %v7255_v48  ;;  %v68_v62 = vld [vmem:[#allocation5 + $0x60] sm:$0xff] }
  0xf0   :  { %v1998_v14 = vand.u32 4294901760, %v68_v62 }
  0xf1   :  { %4111 = vmatpush1.bf16.msra.mxu0 %v5620_v25  ;;  %4303 = vmatpush1.bf16.msra.mxu1 %v5626_v4  ;;  %v1992_v25 = vand.u32 4294901760, %v61_v27  ;;  %v1996_v4 = vand.u32 4294901760, %v69_v33 }
  0xf2   :  { %4113 = vmatprep.subr.bf16.mxu0 %v5632_v13  ;;  %4305 = vmatprep.subr.bf16.mxu1 %v5639_v5  ;;  %v70_v13 = vld [vmem:[#allocation5 + $0x70] sm:$0xff]  ;;  %v2896_v5 = vand.u32 4294901760, %v63_v24 }
  0xf3   :  { %v5859_v44 = vpack.c.bf16 %v1996_v4, %v1992_v25  ;;  %v5861_v1 = vsub.f32 %v61_v27, %v1992_v25  ;;  %v5863_v40 = vsub.f32 %v69_v33, %v1996_v4  ;;  %v5876_v25 = vsub.f32 %v68_v62, %v1998_v14  ;;  %v7424_v33 = vld [vmem:[#allocation62_spill] sm:$0xff]  ;;  %v7425_v4 = vld [vmem:[#allocation64_spill] sm:$0xff] }
  0xf4   :  { %v5865_v46 = vpack.c.bf16 %v2900_v35, %v2896_v5  ;;  %v5887_v62 = vpack.c.bf16 %v2004_v39, %v2000_v34 }
  0xf5   :  { %4115 = vmatpush1.bf16.msra.mxu0 %v5645_v31  ;;  %4307 = vmatpush1.bf16.msra.mxu1 %v5651_v37  ;;  %v1994_v31 = vand.u32 4294901760, %v60_v17  ;;  %v87_v37 = vld [vmem:[#allocation5 + $0xf8] sm:$0xff]  ;;  %7415 = vst [vmem:[#allocation40_spill] sm:$0xff] %v5859_v44  ;;  %7416 = vst [vmem:[#allocation41_spill] sm:$0xff] %v5861_v1 }
  0xf6   :  { %4117 = vmatprep.subr.bf16.mxu0 %v5657_v42  ;;  %4309 = vmatprep.subr.bf16.mxu1 %v5663_v9  ;;  %v2898_v42 = vand.u32 4294901760, %v62_v29  ;;  %v2902_v9 = vand.u32 4294901760, %v70_v13  ;;  %7417 = vst [vmem:[#allocation42_spill] sm:$0xff] %v5863_v40  ;;  %7418 = vst [vmem:[#allocation46_spill] sm:$0xff] %v5865_v46  ;;  %v2002_v46 = vand.u32 4294901760, %v76_v10 }
  0xf7   :  { %v5872_v44 = vpack.c.bf16 %v1998_v14, %v1994_v31  ;;  %v5874_v27 = vsub.f32 %v60_v17, %v1994_v31  ;;  %7423 = vst [vmem:[#allocation53_spill] sm:$0xff] %v5876_v25  ;;  %7430 = vst [vmem:[#allocation66_spill] sm:$0xff] %v5887_v62  ;;  %v2906_v31 = vand.u32 4294901760, %v78_v20  ;;  %v2910_v14 = vand.u32 4294901760, %v86_v23  ;;  %v102_v62 = vld [vmem:[#allocation5 + $0x170] sm:$0xff] }
  0xf8   :  { %v5885_v17 = vsub.f32 %v70_v13, %v2902_v9  ;;  %v2008_v25 = vand.u32 4294901760, %v93_v22 }
  0xf9   :  { %4119 = vmatpush1.bf16.msra.mxu0 %v5669_v7  ;;  %4311 = vmatpush1.bf16.msra.mxu1 %v5675_v41  ;;  %v84_v7 = vld [vmem:[#allocation5 + $0xe0] sm:$0xff]  ;;  %v5867_v41 = vsub.f32 %v63_v24, %v2896_v5  ;;  %7421 = vst [vmem:[#allocation50_spill] sm:$0xff] %v5872_v44  ;;  %7422 = vst [vmem:[#allocation52_spill] sm:$0xff] %v5874_v27  ;;  %v5880_v24 = vpack.c.bf16 %v2902_v9, %v2898_v42  ;;  %v7436_v27 = vld [vmem:[#allocation38_spill] sm:$0xff] }
  0xfa   :  { %4121 = vmatprep.subr.bf16.mxu0 %v5681_v12  ;;  %4313 = vmatprep.subr.bf16.mxu1 %v5687_v36  ;;  %v2908_v12 = vand.u32 4294901760, %v87_v37  ;;  %v5870_v36 = vsub.f32 %v71_v26, %v2900_v35  ;;  %v5882_v5 = vsub.f32 %v62_v29, %v2898_v42  ;;  %v2006_v58 = vand.u32 4294901760, %v84_v7  ;;  %v95_v26 = vld [vmem:[#allocation5 + $0x138] sm:$0xff]  ;;  %7429 = vst [vmem:[#allocation65_spill] sm:$0xff] %v5885_v17  ;;  %v92_v42 = vld [vmem:[#allocation5 + $0x120] sm:$0xff]  ;;  %v94_v17 = vld [vmem:[#allocation5 + $0x130] sm:$0xff] }
  0xfb   :  { %7419 = vst [vmem:[#allocation47_spill] sm:$0xff] %v5867_v41  ;;  %7426 = vst [vmem:[#allocation54_spill] sm:$0xff] %v5880_v24  ;;  %v103_v35 = vld [vmem:[#allocation5 + $0x178] sm:$0xff]  ;;  %v5895_v29 = vsub.f32 %v79_v51, %v2904_v19  ;;  %v100_v44 = vld [vmem:[#allocation5 + $0x160] sm:$0xff]  ;;  %v2912_v13 = vand.u32 4294901760, %v95_v26  ;;  %v5904_v51 = vsub.f32 %v76_v10, %v2002_v46 }
  0xfc   :  { %7420 = vst [vmem:[#allocation49_spill] sm:$0xff] %v5870_v36  ;;  %7427 = vst [vmem:[#allocation56_spill] sm:$0xff] %v5882_v5  ;;  %v7428_v36 = vld [vmem:[#allocation35_spill] sm:$0xff]  ;;  %v5893_v24 = vpack.c.bf16 %v2908_v12, %v2904_v19  ;;  %v7435_v5 = vld [vmem:[#allocation37_spill] sm:$0xff]  ;;  %v2916_v9 = vand.u32 4294901760, %v103_v35  ;;  %v2010_v19 = vand.u32 4294901760, %v92_v42 }
  0xfd   :  { %4123 = vmatpush1.bf16.msra.mxu0 %v5693_v54  ;;  %4315 = vmatpush1.bf16.msra.mxu1 %v7424_v33  ;;  %v101_v54 = vld [vmem:[#allocation5 + $0x168] sm:$0xff]  ;;  %v5889_v33 = vsub.f32 %v77_v38, %v2000_v34  ;;  %7434 = vst [vmem:[#allocation77_spill] sm:$0xff] %v5895_v29  ;;  %v5900_v38 = vsub.f32 %v87_v37, %v2908_v12  ;;  %7439 = vst [vmem:[#allocation16_spill] sm:$0xff] %v5904_v51  ;;  %v2918_v37 = vand.u32 4294901760, %v102_v62  ;;  %v111_v12 = vld [vmem:[#allocation5 + $0x1b8] sm:$0xff] }
  0xfe   :  { %4125 = vmatprep.subr.bf16.mxu0 %v7425_v4  ;;  %4317 = vmatprep.subr.bf16.mxu1 %v7428_v36  ;;  %v5891_v4 = vsub.f32 %v85_v61, %v2004_v39  ;;  %7433 = vst [vmem:[#allocation75_spill] sm:$0xff] %v5893_v24  ;;  %v2012_v36 = vand.u32 4294901760, %v101_v54  ;;  %v5902_v61 = vpack.c.bf16 %v2006_v58, %v2002_v46  ;;  %v109_v24 = vld [vmem:[#allocation5 + $0x1a8] sm:$0xff]  ;;  %v108_v46 = vld [vmem:[#allocation5 + $0x1a0] sm:$0xff] }
  0xff   :  { %7431 = vst [vmem:[#allocation71_spill] sm:$0xff] %v5889_v33  ;;  %7437 = vst [vmem:[#allocation78_spill] sm:$0xff] %v5900_v38  ;;  %v5907_v34 = vsub.f32 %v84_v7, %v2006_v58  ;;  %v5909_v39 = vpack.c.bf16 %v2910_v14, %v2906_v31  ;;  %v117_v29 = vld [vmem:[#allocation5 + $0x1e8] sm:$0xff]  ;;  %v5922_v7 = vpack.c.bf16 %v2916_v9, %v2912_v13 }
 0x100   :  { %7432 = vst [vmem:[#allocation72_spill] sm:$0xff] %v5891_v4  ;;  %7438 = vst [vmem:[#allocation12_spill] sm:$0xff] %v5902_v61  ;;  %v5911_v4 = vsub.f32 %v78_v20, %v2906_v31  ;;  %v119_v61 = vld [vmem:[#allocation5 + $0x1f8] sm:$0xff]  ;;  %v5916_v10 = vpack.c.bf16 %v2012_v36, %v2008_v25  ;;  %v5920_v58 = vsub.f32 %v101_v54, %v2012_v36  ;;  %v2016_v31 = vand.u32 4294901760, %v109_v24 }
 0x101   :  { %4127 = vmatpush1.bf16.msra.mxu0 %v7435_v5  ;;  %4319 = vmatpush1.bf16.msra.mxu1 %v7436_v27  ;;  %7440 = vst [vmem:[#allocation18_spill] sm:$0xff] %v5907_v34  ;;  %7441 = vst [vmem:[#allocation21_spill] sm:$0xff] %v5909_v39  ;;  %v2014_v5 = vand.u32 4294901760, %v100_v44  ;;  %v5913_v27 = vsub.f32 %v86_v23, %v2910_v14  ;;  %v5926_v23 = vsub.f32 %v95_v26, %v2912_v13  ;;  %v110_v39 = vld [vmem:[#allocation5 + $0x1b0] sm:$0xff] }
 0x102   :  { %4129 = vmatprep.subr.bf16.mxu0 %v5729_v2  ;;  %4321 = vmatprep.subr.bf16.mxu1 %v5735_v59  ;;  %7442 = vst [vmem:[#allocation24_spill] sm:$0xff] %v5911_v4  ;;  %v2914_v2 = vand.u32 4294901760, %v94_v17  ;;  %7444 = vst [vmem:[#allocation26_spill] sm:$0xff] %v5916_v10  ;;  %v5918_v59 = vsub.f32 %v93_v22, %v2008_v25  ;;  %v5928_v20 = vsub.f32 %v103_v35, %v2916_v9  ;;  %v118_v10 = vld [vmem:[#allocation5 + $0x1f0] sm:$0xff] }
 0x103   :  { %7443 = vst [vmem:[#allocation25_spill] sm:$0xff] %v5913_v27  ;;  %7446 = vst [vmem:[#allocation28_spill] sm:$0xff] %v5920_v58  ;;  %v2020_v14 = vand.u32 4294901760, %v117_v29  ;;  %v5931_v22 = vpack.c.bf16 %v2014_v5, %v2010_v19  ;;  %v5933_v25 = vsub.f32 %v92_v42, %v2010_v19  ;;  %v2920_v54 = vand.u32 4294901760, %v111_v12 }
 0x104   :  { %7445 = vst [vmem:[#allocation27_spill] sm:$0xff] %v5918_v59  ;;  %7447 = vst [vmem:[#allocation29_spill] sm:$0xff] %v5922_v7  ;;  %v2924_v36 = vand.u32 4294901760, %v119_v61  ;;  %v133_v7 = vld [vmem:[#allocation5 + $0x268] sm:$0xff]  ;;  %v5936_v26 = vsub.f32 %v100_v44, %v2014_v5  ;;  %v5938_v35 = vpack.c.bf16 %v2918_v37, %v2914_v2  ;;  %v5940_v13 = vsub.f32 %v94_v17, %v2914_v2  ;;  %v124_v2 = vld [vmem:[#allocation5 + $0x220] sm:$0xff] }
 0x105   :  { %4131 = vmatpush1.bf16.msra.mxu0 %v5741_v63  ;;  %4323 = vmatpush1.bf16.msra.mxu1 %v5747_v60  ;;  %7448 = vst [vmem:[#allocation30_spill] sm:$0xff] %v5926_v23  ;;  %7449 = vst [vmem:[#allocation31_spill] sm:$0xff] %v5928_v20  ;;  %v116_v63 = vld [vmem:[#allocation5 + $0x1e0] sm:$0xff]  ;;  %v125_v60 = vld [vmem:[#allocation5 + $0x228] sm:$0xff]  ;;  %v5942_v9 = vsub.f32 %v102_v62, %v2918_v37  ;;  %v2922_v19 = vand.u32 4294901760, %v110_v39  ;;  %v5948_v44 = vpack.c.bf16 %v2020_v14, %v2016_v31 }
 0x106   :  { %4133 = vmatprep.subr.bf16.mxu0 %v7363_v55  ;;  %4325 = vmatprep.subr.bf16.mxu1 %v7364_v3  ;;  %7450 = vst [vmem:[#allocation32_spill] sm:$0xff] %v5931_v22  ;;  %7451 = vst [vmem:[#allocation33_spill] sm:$0xff] %v5933_v25  ;;  %v7452_v55 = vld [vmem:[#allocation79_spill] sm:$0xff]  ;;  %v2018_v3 = vand.u32 4294901760, %v108_v46  ;;  %v2022_v42 = vand.u32 4294901760, %v116_v63  ;;  %v2926_v22 = vand.u32 4294901760, %v118_v10  ;;  %v5950_v17 = vsub.f32 %v109_v24, %v2016_v31 }
 0x107   :  { %7453 = vst [vmem:[#allocation34_spill] sm:$0xff] %v5936_v26  ;;  %7454 = vst [vmem:[#allocation36_spill] sm:$0xff] %v5938_v35  ;;  %v127_v25 = vld [vmem:[#allocation5 + $0x238] sm:$0xff]  ;;  %v2024_v62 = vand.u32 4294901760, %v125_v60  ;;  %v2028_v5 = vand.u32 4294901760, %v133_v7  ;;  %v5956_v37 = vpack.c.bf16 %v2924_v36, %v2920_v54  ;;  %v5962_v24 = vsub.f32 %v119_v61, %v2924_v36  ;;  %v141_v35 = vld [vmem:[#allocation5 + $0x2a8] sm:$0xff] }
 0x108   :  { %964 = vmatmul.mubr.f32.vlgmr.msra.gmra.mrb[0].mxu0 %v7452_v55  ;;  %7455 = vst [vmem:[#allocation39_spill] sm:$0xff] %v5940_v13  ;;  %7456 = vst [vmem:[#allocation43_spill] sm:$0xff] %v5942_v9  ;;  %1868 = vmatmul.mubr.f32.vlgmr.msra.gmra.mrb[0].mxu1 %v7452_v55  ;;  %v135_v20 = vld [vmem:[#allocation5 + $0x278] sm:$0xff]  ;;  %v5958_v9 = vsub.f32 %v111_v12, %v2920_v54  ;;  %v126_v13 = vld [vmem:[#allocation5 + $0x230] sm:$0xff]  ;;  %v5964_v31 = vsub.f32 %v108_v46, %v2018_v3 }
 0x109   :  { %4135 = vmatpush1.bf16.msra.mxu0 %v7366_v21  ;;  %4327 = vmatpush1.bf16.msra.mxu1 %v7367_v11  ;;  %7457 = vst [vmem:[#allocation45_spill] sm:$0xff] %v5948_v44  ;;  %7458 = vst [vmem:[#allocation48_spill] sm:$0xff] %v5950_v17  ;;  %v5954_v21 = vsub.f32 %v117_v29, %v2020_v14  ;;  %v132_v11 = vld [vmem:[#allocation5 + $0x260] sm:$0xff]  ;;  %v2928_v17 = vand.u32 4294901760, %v127_v25  ;;  %v134_v44 = vld [vmem:[#allocation5 + $0x270] sm:$0xff]  ;;  %v5968_v12 = vpack.c.bf16 %v2022_v42, %v2018_v3 }
 0x10a   :  { %4137 = vmatprep.subr.bf16.mxu0 %v7368_v56  ;;  %4329 = vmatprep.subr.bf16.mxu1 %v7369_v0  ;;  %7460 = vst [vmem:[#allocation55_spill] sm:$0xff] %v5956_v37  ;;  %7461 = vst [vmem:[#allocation13_spill] sm:$0xff] %v5958_v9  ;;  %v7462_v56 = vld [vmem:[#allocation44_spill] sm:$0xff]  ;;  %v2932_v0 = vand.u32 4294901760, %v135_v20  ;;  %v5970_v14 = vsub.f32 %v116_v63, %v2022_v42  ;;  %v5972_v54 = vpack.c.bf16 %v2926_v22, %v2922_v19  ;;  %v150_v37 = vld [vmem:[#allocation5 + $0x2f0] sm:$0xff] }
 0x10b   :  { %969 = vmatprep.mubr.f32.mxu0 %v7255_v48  ;;  %7459 = vst [vmem:[#allocation51_spill] sm:$0xff] %v5954_v21  ;;  %1873 = vmatprep.mubr.f32.mxu1 %v7255_v48  ;;  %7463 = vst [vmem:[#allocation14_spill] sm:$0xff] %v5962_v24  ;;  %v149_v29 = vld [vmem:[#allocation5 + $0x2e8] sm:$0xff]  ;;  %v2026_v9 = vand.u32 4294901760, %v124_v2  ;;  %v5976_v61 = vsub.f32 %v110_v39, %v2922_v19  ;;  %v5978_v46 = vsub.f32 %v118_v10, %v2926_v22  ;;  %v151_v24 = vld [vmem:[#allocation5 + $0x2f8] sm:$0xff] }
 0x10c   :  { %971 = vmatmul.mubr.f32.gmra.mrb[2].mxu0 %v7462_v56  ;;  %7464 = vst [vmem:[#allocation15_spill] sm:$0xff] %v5964_v31  ;;  %1875 = vmatmul.mubr.f32.gmra.mrb[2].mxu1 %v7462_v56  ;;  %7465 = vst [vmem:[#allocation17_spill] sm:$0xff] %v5968_v12  ;;  %v5980_v36 = vpack.c.bf16 %v2028_v5, %v2024_v62  ;;  %v143_v31 = vld [vmem:[#allocation5 + $0x2b8] sm:$0xff]  ;;  %v2930_v63 = vand.u32 4294901760, %v126_v13  ;;  %v2934_v3 = vand.u32 4294901760, %v134_v44  ;;  %v2032_v42 = vand.u32 4294901760, %v141_v35 }
 0x10d   :  { %4139 = vmatpush1.bf16.msra.mxu0 %v7371_v47  ;;  %7466 = vst [vmem:[#allocation19_spill] sm:$0xff] %v5970_v14  ;;  %7467 = vst [vmem:[#allocation20_spill] sm:$0xff] %v5972_v54  ;;  %4331 = vmatpush1.bf16.msra.mxu1 %v7372_v16  ;;  %v2030_v47 = vand.u32 4294901760, %v132_v11  ;;  %v2036_v14 = vand.u32 4294901760, %v149_v29  ;;  %v140_v16 = vld [vmem:[#allocation5 + $0x2a0] sm:$0xff]  ;;  %v5987_v39 = vsub.f32 %v133_v7, %v2028_v5  ;;  %v2940_v54 = vand.u32 4294901760, %v151_v24 }
 0x10e   :  { %4141 = vmatprep.subr.bf16.mxu0 %v7373_v18  ;;  %7468 = vst [vmem:[#allocation22_spill] sm:$0xff] %v5980_v36  ;;  %4333 = vmatprep.subr.bf16.mxu1 %v7374_v43  ;;  %v148_v21 = vld [vmem:[#allocation5 + $0x2e0] sm:$0xff]  ;;  %v5985_v18 = vsub.f32 %v125_v60, %v2024_v62  ;;  %v5989_v10 = vpack.c.bf16 %v2932_v0, %v2928_v17  ;;  %v2936_v36 = vand.u32 4294901760, %v143_v31  ;;  %v142_v12 = vld [vmem:[#allocation5 + $0x2b0] sm:$0xff]  ;;  %v157_v62 = vld [vmem:[#allocation5 + $0x328] sm:$0xff] }
 0x10f   :  { %1073 = vmatprep.mubr.f32.mxu0 %v7255_v48  ;;  %1977 = vmatprep.mubr.f32.mxu1 %v7255_v48  ;;  %7470 = vst [vmem:[#allocation62_spill] sm:$0xff] %v5987_v39  ;;  %v5991_v22 = vsub.f32 %v127_v25, %v2928_v17  ;;  %v5994_v43 = vsub.f32 %v135_v20, %v2932_v0  ;;  %v2034_v25 = vand.u32 4294901760, %v140_v16  ;;  %v2038_v17 = vand.u32 4294901760, %v148_v21 }
 0x110   :  { %7469 = vst [vmem:[#allocation23_spill] sm:$0xff] %v5985_v18  ;;  %7471 = vst [vmem:[#allocation64_spill] sm:$0xff] %v5989_v10  ;;  %v5996_v19 = vsub.f32 %v124_v2, %v2026_v9  ;;  %v6000_v7 = vpack.c.bf16 %v2030_v47, %v2026_v9  ;;  %v6002_v60 = vsub.f32 %v132_v11, %v2030_v47  ;;  %v2938_v47 = vand.u32 4294901760, %v142_v12  ;;  %v156_v18 = vld [vmem:[#allocation5 + $0x320] sm:$0xff] }
 0x111   :  { %4143 = vmatpush1.bf16.msra.mxu0 %v7375_v6  ;;  %4335 = vmatpush1.bf16.msra.mxu1 %v7376_v8  ;;  %v165_v6 = vld [vmem:[#allocation5 + $0x368] sm:$0xff]  ;;  %v6005_v20 = vpack.c.bf16 %v2934_v3, %v2930_v63  ;;  %v6007_v5 = vsub.f32 %v126_v13, %v2930_v63  ;;  %v6009_v2 = vsub.f32 %v134_v44, %v2934_v3  ;;  %v159_v8 = vld [vmem:[#allocation5 + $0x338] sm:$0xff]  ;;  %v2942_v39 = vand.u32 4294901760, %v150_v37 }
 0x112   :  { %4145 = vmatprep.subr.bf16.mxu0 %v7377_v52  ;;  %7472 = vst [vmem:[#allocation35_spill] sm:$0xff] %v6000_v7  ;;  %4337 = vmatprep.subr.bf16.mxu1 %v7378_v15  ;;  %v6011_v0 = vpack.c.bf16 %v2036_v14, %v2032_v42  ;;  %v167_v52 = vld [vmem:[#allocation5 + $0x378] sm:$0xff]  ;;  %v6013_v9 = vsub.f32 %v141_v35, %v2032_v42  ;;  %v164_v7 = vld [vmem:[#allocation5 + $0x360] sm:$0xff]  ;;  %v2040_v44 = vand.u32 4294901760, %v157_v62  ;;  %v2044_v63 = vand.u32 4294901760, %v165_v6  ;;  %v158_v42 = vld [vmem:[#allocation5 + $0x330] sm:$0xff] }
 0x113   :  { %7473 = vst [vmem:[#allocation37_spill] sm:$0xff] %v6005_v20  ;;  %v6015_v11 = vsub.f32 %v149_v29, %v2036_v14  ;;  %v6018_v15 = vpack.c.bf16 %v2940_v54, %v2936_v36  ;;  %v6020_v13 = vsub.f32 %v143_v31, %v2936_v36  ;;  %v6024_v35 = vsub.f32 %v151_v24, %v2940_v54  ;;  %v173_v54 = vld [vmem:[#allocation5 + $0x3a8] sm:$0xff] }
 0x114   :  { %7474 = vst [vmem:[#allocation38_spill] sm:$0xff] %v6011_v0  ;;  %v6026_v29 = vpack.c.bf16 %v2038_v17, %v2034_v25  ;;  %v2944_v14 = vand.u32 4294901760, %v159_v8  ;;  %v2948_v3 = vand.u32 4294901760, %v167_v52  ;;  %v166_v0 = vld [vmem:[#allocation5 + $0x370] sm:$0xff]  ;;  %v6031_v31 = vsub.f32 %v148_v21, %v2038_v17  ;;  %v183_v17 = vld [vmem:[#allocation5 + $0x3f8] sm:$0xff] }
 0x115   :  { %4147 = vmatpush1.bf16.msra.mxu0 %v7379_v30  ;;  %7475 = vst [vmem:[#allocation83_spill] sm:$0xff] %v6018_v15  ;;  %4339 = vmatpush1.bf16.msra.mxu1 %v7380_v49  ;;  %7476 = vst [vmem:[#allocation84_spill] sm:$0xff] %v6024_v35  ;;  %v6029_v30 = vsub.f32 %v140_v16, %v2034_v25  ;;  %v2042_v36 = vand.u32 4294901760, %v156_v18  ;;  %v2046_v15 = vand.u32 4294901760, %v164_v7  ;;  %v2946_v21 = vand.u32 4294901760, %v158_v42  ;;  %v175_v25 = vld [vmem:[#allocation5 + $0x3b8] sm:$0xff] }
 0x116   :  { %4149 = vmatprep.subr.bf16.mxu0 %v7381_v45  ;;  %7477 = vst [vmem:[#allocation85_spill] sm:$0xff] %v6026_v29  ;;  %4341 = vmatprep.subr.bf16.mxu1 %v7382_v50  ;;  %v6033_v20 = vpack.c.bf16 %v2942_v39, %v2938_v47  ;;  %v6035_v49 = vsub.f32 %v142_v12, %v2938_v47  ;;  %v181_v29 = vld [vmem:[#allocation5 + $0x3e8] sm:$0xff]  ;;  %v2950_v16 = vand.u32 4294901760, %v166_v0 }
 0x117   :  { %7478 = vst [vmem:[#allocation86_spill] sm:$0xff] %v6029_v30  ;;  %v6037_v45 = vsub.f32 %v150_v37, %v2942_v39  ;;  %v6039_v24 = vsub.f32 %v157_v62, %v2040_v44  ;;  %v6042_v35 = vpack.c.bf16 %v2044_v63, %v2040_v44  ;;  %v6044_v50 = vsub.f32 %v165_v6, %v2044_v63  ;;  %v172_v62 = vld [vmem:[#allocation5 + $0x3a0] sm:$0xff] }
 0x118   :  { %7479 = vst [vmem:[#allocation87_spill] sm:$0xff] %v6033_v20  ;;  %7480 = vst [vmem:[#allocation88_spill] sm:$0xff] %v6035_v49  ;;  %v6048_v37 = vpack.c.bf16 %v2948_v3, %v2944_v14  ;;  %v6050_v12 = vsub.f32 %v159_v8, %v2944_v14  ;;  %v6052_v39 = vsub.f32 %v167_v52, %v2948_v3  ;;  %v2048_v44 = vand.u32 4294901760, %v173_v54  ;;  %v7491_v52 = vld [vmem:[#allocation57_spill] sm:$0xff] }
 0x119   :  { %7481 = vst [vmem:[#allocation89_spill] sm:$0xff] %v6037_v45  ;;  %7482 = vst [vmem:[#allocation90_spill] sm:$0xff] %v6039_v24  ;;  %4151 = vmatpush1.bf16.msra.mxu0 %v7383_v28  ;;  %4343 = vmatpush1.bf16.msra.mxu1 %v7384_v53  ;;  %v180_v28 = vld [vmem:[#allocation5 + $0x3e0] sm:$0xff]  ;;  %v6055_v6 = vpack.c.bf16 %v2046_v15, %v2042_v36  ;;  %v6057_v47 = vsub.f32 %v156_v18, %v2042_v36  ;;  %v2052_v63 = vand.u32 4294901760, %v181_v29  ;;  %v182_v53 = vld [vmem:[#allocation5 + $0x3f0] sm:$0xff] }
 0x11a   :  { %7483 = vst [vmem:[#allocation91_spill] sm:$0xff] %v6042_v35  ;;  %7484 = vst [vmem:[#allocation92_spill] sm:$0xff] %v6044_v50  ;;  %4153 = vmatprep.subr.bf16.mxu0 %v7385_v32  ;;  %4345 = vmatprep.subr.bf16.mxu1 %v7386_v57  ;;  %v174_v35 = vld [vmem:[#allocation5 + $0x3b0] sm:$0xff]  ;;  %v6059_v20 = vsub.f32 %v164_v7, %v2046_v15  ;;  %v6061_v32 = vsub.f32 %v158_v42, %v2946_v21  ;;  %v2952_v8 = vand.u32 4294901760, %v175_v25  ;;  %v7493_v18 = vld [vmem:[#allocation60_spill] sm:$0xff] }
 0x11b   :  { %7485 = vst [vmem:[#allocation93_spill] sm:$0xff] %v6048_v37  ;;  %7486 = vst [vmem:[#allocation94_spill] sm:$0xff] %v6052_v39  ;;  %v2956_v14 = vand.u32 4294901760, %v183_v17  ;;  %v6064_v3 = vpack.c.bf16 %v2950_v16, %v2946_v21  ;;  %v2050_v37 = vand.u32 4294901760, %v172_v62  ;;  %v2054_v57 = vand.u32 4294901760, %v180_v28  ;;  %v7494_v36 = vld [vmem:[#allocation63_spill] sm:$0xff] }
 0x11c   :  { %7487 = vst [vmem:[#allocation95_spill] sm:$0xff] %v6055_v6  ;;  %7488 = vst [vmem:[#allocation96_spill] sm:$0xff] %v6057_v47  ;;  %v6069_v47 = vsub.f32 %v166_v0, %v2950_v16  ;;  %v6071_v7 = vsub.f32 %v173_v54, %v2048_v44  ;;  %v2954_v15 = vand.u32 4294901760, %v174_v35  ;;  %v2958_v42 = vand.u32 4294901760, %v182_v53  ;;  %v7501_v54 = vld [vmem:[#allocation52_spill] sm:$0xff]  ;;  %v7509_v16 = vld [vmem:[#allocation73_spill] sm:$0xff] }
 0x11d   :  { %7489 = vst [vmem:[#allocation97_spill] sm:$0xff] %v6059_v20  ;;  %7490 = vst [vmem:[#allocation98_spill] sm:$0xff] %v6061_v32  ;;  %4155 = vmatpush1.bf16.msra.mxu0 %v7491_v52  ;;  %4347 = vmatpush1.bf16.msra.mxu1 %v7493_v18  ;;  %v7496_v32 = vld [vmem:[#allocation67_spill] sm:$0xff]  ;;  %v6074_v20 = vpack.c.bf16 %v2052_v63, %v2048_v44  ;;  %v7115_v21 = vand.u32 4294901760, %v5863_v40  ;;  %v6079_v39 = vsub.f32 %v181_v29, %v2052_v63  ;;  %v7505_v29 = vld [vmem:[#allocation69_spill] sm:$0xff] }
 0x11e   :  { %7492 = vst [vmem:[#allocation57_spill] sm:$0xff] %v6064_v3  ;;  %4157 = vmatprep.subr.bf16.mxu0 %v7494_v36  ;;  %7495 = vst [vmem:[#allocation60_spill] sm:$0xff] %v6071_v7  ;;  %4349 = vmatprep.subr.bf16.mxu1 %v7496_v32  ;;  %v7498_v3 = vld [vmem:[#allocation49_spill] sm:$0xff]  ;;  %v6081_v18 = vpack.c.bf16 %v2956_v14, %v2952_v8  ;;  %v6083_v0 = vsub.f32 %v175_v25, %v2952_v8  ;;  %v7502_v36 = vld [vmem:[#allocation68_spill] sm:$0xff]  ;;  %v7504_v52 = vand.u32 4294901760, %v5861_v1 }
 0x11f   :  { %7497 = vst [vmem:[#allocation63_spill] sm:$0xff] %v6074_v20  ;;  %7499 = vst [vmem:[#allocation67_spill] sm:$0xff] %v6079_v39  ;;  %v6087_v7 = vsub.f32 %v183_v17, %v2956_v14  ;;  %v6089_v44 = vpack.c.bf16 %v2054_v57, %v2050_v37  ;;  %v6091_v32 = vsub.f32 %v172_v62, %v2050_v37  ;;  %v7506_v63 = vld [vmem:[#allocation70_spill] sm:$0xff]  ;;  %v7508_v17 = vld [vmem:[#allocation53_spill] sm:$0xff] }
 0x120   :  { %7500 = vst [vmem:[#allocation99_spill] sm:$0xff] %v6081_v18  ;;  %v6096_v6 = vsub.f32 %v5861_v1, %v7504_v52  ;;  %v6100_v25 = vsub.f32 %v180_v28, %v2054_v57  ;;  %v6102_v8 = vpack.c.bf16 %v2958_v42, %v2954_v15  ;;  %v6108_v37 = vsub.f32 %v182_v53, %v2958_v42  ;;  %v7513_v53 = vld [vmem:[#allocation56_spill] sm:$0xff]  ;;  %v7515_v14 = vld [vmem:[#allocation74_spill] sm:$0xff]  ;;  %v7517_v1 = vld [vmem:[#allocation77_spill] sm:$0xff] }
 0x121   :  { %4159 = vmatpush1.bf16.msra.mxu0 %v7502_v36  ;;  %7503 = vst [vmem:[#allocation68_spill] sm:$0xff] %v6089_v44  ;;  %4351 = vmatpush1.bf16.msra.mxu1 %v7505_v29  ;;  %v6104_v36 = vsub.f32 %v174_v35, %v2954_v15  ;;  %v2126_v62 = vsub.f32 %v5863_v40, %v7115_v21  ;;  %v7510_v52 = vand.u32 4294901760, %v5867_v41  ;;  %v7511_v28 = vand.u32 4294901760, %v7498_v3  ;;  %v7540_v18 = vld [vmem:[#allocation21_spill] sm:$0xff] }
 0x122   :  { %4161 = vmatprep.subr.bf16.mxu0 %v7506_v63  ;;  %7507 = vst [vmem:[#allocation69_spill] sm:$0xff] %v6102_v8  ;;  %4353 = vmatprep.subr.bf16.mxu1 %v7509_v16  ;;  %v7512_v57 = vand.u32 4294901760, %v7501_v54  ;;  %v7514_v16 = vld [vmem:[#allocation65_spill] sm:$0xff]  ;;  %v7518_v8 = vld [vmem:[#allocation76_spill] sm:$0xff]  ;;  %v7520_v42 = vand.u32 4294901760, %v7508_v17 }
 0x123   :  { %v6116_v29 = vsub.f32 %v5867_v41, %v7510_v52  ;;  %v6121_v35 = vsub.f32 %v7498_v3, %v7511_v28  ;;  %v2115_v52 = vand.u32 4294901760, %v6096_v6  ;;  %v7516_v41 = vld [vmem:[#allocation72_spill] sm:$0xff]  ;;  %v2127_v40 = vand.u32 4294901760, %v2126_v62  ;;  %v7525_v3 = vld [vmem:[#allocation50_spill] sm:$0xff] }
 0x124   :  { %v6126_v15 = vsub.f32 %v7501_v54, %v7512_v57  ;;  %v7519_v57 = vld [vmem:[#allocation40_spill] sm:$0xff]  ;;  %v2132_v63 = vsub.f32 %v7508_v17, %v7520_v42  ;;  %v7521_v54 = vld [vmem:[#allocation46_spill] sm:$0xff]  ;;  %v7522_v42 = vand.u32 4294901760, %v7513_v53  ;;  %v7524_v62 = vand.u32 4294901760, %v5889_v33 }
 0x125   :  { %4163 = vmatpush1.bf16.msra.mxu0 %v7515_v14  ;;  %4355 = vmatpush1.bf16.msra.mxu1 %v7518_v8  ;;  %v7523_v14 = vand.u32 4294901760, %v7514_v16  ;;  %v3031_v8 = vand.u32 4294901760, %v6121_v35  ;;  %v7529_v17 = vld [vmem:[#allocation54_spill] sm:$0xff]  ;;  %v7530_v35 = vand.u32 4294901760, %v5904_v51 }
 0x126   :  { %4357 = vmatprep.subr.bf16.mxu0 %v7519_v57  ;;  %4549 = vmatprep.subr.bf16.mxu1 %v7521_v54  ;;  %v3019_v57 = vand.u32 4294901760, %v6116_v29  ;;  %v3024_v21 = vsub.f32 %v7513_v53, %v7522_v42  ;;  %v2138_v28 = vsub.f32 %v5889_v33, %v7524_v62  ;;  %v7526_v29 = vand.u32 4294901760, %v7516_v41 }
 0x127   :  { %v3036_v6 = vsub.f32 %v7514_v16, %v7523_v14  ;;  %v7527_v42 = vand.u32 4294901760, %v7517_v1  ;;  %v7528_v14 = vand.u32 4294901760, %v5900_v38  ;;  %v2121_v62 = vand.u32 4294901760, %v6126_v15 }
 0x128   :  { %1075 = vmatmul.mubr.f32.vlgmr.msra.gmra.mrb[0].mxu0 %v7452_v55  ;;  %1979 = vmatmul.mubr.f32.vlgmr.msra.gmra.mrb[0].mxu1 %v7452_v55  ;;  %v2150_v54 = vsub.f32 %v7516_v41, %v7526_v29  ;;  %v7531_v29 = vand.u32 4294901760, %v5907_v34  ;;  %v7535_v41 = vand.u32 4294901760, %v5918_v59  ;;  %v6208_v44 = vpack.c.bf16 %v3031_v8, %v3019_v57 }
 0x129   :  { %4359 = vmatpush1.bf16.msra.mxu0 %v7525_v3  ;;  %v3042_v53 = vsub.f32 %v7517_v1, %v7527_v42  ;;  %v3054_v16 = vsub.f32 %v5900_v38, %v7528_v14  ;;  %4551 = vmatpush1.bf16.msra.mxu1 %v7529_v17  ;;  %v2144_v3 = vsub.f32 %v5904_v51, %v7530_v35  ;;  %v7532_v42 = vand.u32 4294901760, %v5911_v4  ;;  %v7533_v14 = vld [vmem:[#allocation66_spill] sm:$0xff] }
 0x12a   :  { %1080 = vmatprep.mubr.f32.mxu0 %v7255_v48  ;;  %v2156_v55 = vsub.f32 %v5907_v34, %v7531_v29  ;;  %1984 = vmatprep.mubr.f32.mxu1 %v7255_v48  ;;  %v2133_v17 = vand.u32 4294901760, %v2132_v63  ;;  %v7534_v38 = vand.u32 4294901760, %v5913_v27  ;;  %v2162_v35 = vsub.f32 %v5918_v59, %v7535_v41  ;;  %v7539_v59 = vld [vmem:[#allocation31_spill] sm:$0xff] }
 0x12b   :  { %v3048_v1 = vsub.f32 %v5911_v4, %v7532_v42  ;;  %4361 = vmatprep.subr.bf16.mxu0 %v7533_v14  ;;  %v7536_v51 = vand.u32 4294901760, %v5920_v58  ;;  %v7537_v42 = vld [vmem:[#allocation75_spill] sm:$0xff]  ;;  %v3025_v4 = vand.u32 4294901760, %v3024_v21  ;;  %v3037_v34 = vand.u32 4294901760, %v3036_v6 }
 0x12c   :  { %v3060_v15 = vsub.f32 %v5913_v27, %v7534_v38  ;;  %1082 = vmatmul.mubr.f32.gmra.mrb[2].mxu0 %v7462_v56  ;;  %4553 = vmatprep.subr.bf16.mxu1 %v7537_v42  ;;  %v2139_v14 = vand.u32 4294901760, %v2138_v28  ;;  %v7538_v38 = vld [vmem:[#allocation12_spill] sm:$0xff]  ;;  %v2151_v27 = vand.u32 4294901760, %v2150_v54  ;;  %v3043_v33 = vand.u32 4294901760, %v3042_v53  ;;  %v7542_v42 = vld [vmem:[#allocation29_spill] sm:$0xff] }
 0x12d   :  { %v2174_v29 = vsub.f32 %v5920_v58, %v7536_v51  ;;  %1986 = vmatmul.mubr.f32.gmra.mrb[2].mxu1 %v7462_v56  ;;  %4363 = vmatpush1.bf16.msra.mxu0 %v7538_v38  ;;  %v3055_v41 = vand.u32 4294901760, %v3054_v16  ;;  %v7541_v51 = vld [vmem:[#allocation26_spill] sm:$0xff]  ;;  %v6202_v58 = vpack.c.bf16 %v2127_v40, %v2115_v52  ;;  %v2145_v21 = vand.u32 4294901760, %v2144_v3  ;;  %v7543_v53 = vld [vmem:[#allocation33_spill] sm:$0xff]  ;;  %v7545_v3 = vld [vmem:[#allocation32_spill] sm:$0xff] }
 0x12e   :  { %4555 = vmatpush1.bf16.msra.mxu1 %v7540_v18  ;;  %4365 = vmatprep.subr.bf16.mxu0 %v7541_v51  ;;  %v2157_v6 = vand.u32 4294901760, %v2156_v55  ;;  %v3049_v28 = vand.u32 4294901760, %v3048_v1  ;;  %v3061_v63 = vand.u32 4294901760, %v3060_v15  ;;  %v2163_v38 = vand.u32 4294901760, %v2162_v35  ;;  %v7607_v56 = vld [vmem:[#allocation93_spill] sm:$0xff] }
 0x12f   :  { %4557 = vmatprep.subr.bf16.mxu1 %v7542_v42  ;;  %2088 = vmatprep.mubr.f32.mxu0 %v7255_v48  ;;  %v2175_v54 = vand.u32 4294901760, %v2174_v29  ;;  %v7149_v16 = vand.u32 4294901760, %v7543_v53  ;;  %v6210_v18 = vpack.c.bf16 %v2133_v17, %v2121_v62  ;;  %v6212_v40 = vpack.c.bf16 %v3037_v34, %v3025_v4  ;;  %v7547_v4 = vld [vmem:[#allocation36_spill] sm:$0xff]  ;;  %v7548_v34 = vld [vmem:[#allocation45_spill] sm:$0xff]  ;;  %v7549_v62 = vld [vmem:[#allocation39_spill] sm:$0xff] }
 0x130   :  { %2992 = vmatprep.mubr.f32.mxu1 %v7255_v48  ;;  %v7544_v55 = vand.u32 4294901760, %v5926_v23  ;;  %v6220_v52 = vpack.c.bf16 %v2151_v27, %v2139_v14  ;;  %v6222_v15 = vpack.c.bf16 %v3055_v41, %v3043_v33  ;;  %v7546_v35 = vand.u32 4294901760, %v7539_v59  ;;  %v7550_v14 = vld [vmem:[#allocation55_spill] sm:$0xff]  ;;  %v7557_v27 = vld [vmem:[#allocation20_spill] sm:$0xff] }
 0x131   :  { %4367 = vmatpush1.bf16.msra.mxu0 %v7545_v3  ;;  %v6232_v8 = vpack.c.bf16 %v2157_v6, %v2145_v21  ;;  %v6238_v41 = vpack.c.bf16 %v3061_v63, %v3049_v28  ;;  %v7551_v17 = vld [vmem:[#allocation43_spill] sm:$0xff]  ;;  %v7552_v33 = vand.u32 4294901760, %v5976_v61  ;;  %v7553_v63 = vand.u32 4294901760, %v5978_v46 }
 0x132   :  { %v6217_v1 = vsub.f32 %v5926_v23, %v7544_v55  ;;  %v6227_v57 = vsub.f32 %v7539_v59, %v7546_v35  ;;  %4559 = vmatpush1.bf16.msra.mxu1 %v7547_v4  ;;  %4369 = vmatprep.subr.bf16.mxu0 %v7548_v34  ;;  %v6240_v55 = vpack.c.bf16 %v2175_v54, %v2163_v38  ;;  %v7555_v38 = vld [vmem:[#allocation17_spill] sm:$0xff]  ;;  %v7563_v29 = vand.u32 4294901760, %v7551_v17  ;;  %v7573_v34 = vld [vmem:[#allocation51_spill] sm:$0xff]  ;;  %v7600_v23 = vld [vmem:[#allocation98_spill] sm:$0xff] }
 0x133   :  { %4561 = vmatprep.subr.bf16.mxu1 %v7550_v14  ;;  %v6245_v35 = vsub.f32 %v7543_v53, %v7149_v16  ;;  %v6255_v28 = vpack.c.bf16 %v7553_v63, %v7552_v33  ;;  %v7556_v16 = vand.u32 4294901760, %v5936_v26  ;;  %v7558_v14 = vld [vmem:[#allocation22_spill] sm:$0xff]  ;;  %v7559_v33 = vand.u32 4294901760, %v7549_v62  ;;  %v7599_v59 = vld [vmem:[#allocation91_spill] sm:$0xff] }
 0x134   :  { %v7565_v54 = vand.u32 4294901760, %v5996_v19  ;;  %v7569_v3 = vand.u32 4294901760, %v6007_v5 }
 0x135   :  { %7554 = vst [vmem:[#allocation70_spill] sm:$0xff] %v6255_v28  ;;  %4371 = vmatpush1.bf16.msra.mxu0 %v7555_v38  ;;  %v6262_v21 = vsub.f32 %v5936_v26, %v7556_v16  ;;  %v6271_v63 = vsub.f32 %v7549_v62, %v7559_v33  ;;  %v7560_v16 = vand.u32 4294901760, %v5991_v22  ;;  %v7561_v38 = vand.u32 4294901760, %v5994_v43  ;;  %v7572_v33 = vld [vmem:[#allocation35_spill] sm:$0xff] }
 0x136   :  { %4563 = vmatpush1.bf16.msra.mxu1 %v7557_v27  ;;  %4373 = vmatprep.subr.bf16.mxu0 %v7558_v14  ;;  %v6285_v14 = vsub.f32 %v7551_v17, %v7563_v29  ;;  %v7564_v27 = vld [vmem:[#allocation48_spill] sm:$0xff]  ;;  %v7566_v28 = vand.u32 4294901760, %v6002_v60  ;;  %v7570_v29 = vand.u32 4294901760, %v6009_v2  ;;  %v7574_v17 = vld [vmem:[#allocation13_spill] sm:$0xff]  ;;  %v7580_v62 = vand.u32 4294901760, %v6020_v13 }
 0x137   :  { %v6279_v6 = vpack.c.bf16 %v7561_v38, %v7560_v16  ;;  %4565 = vmatprep.subr.bf16.mxu1 %v5989_v10  ;;  %v7575_v38 = vld [vmem:[#allocation37_spill] sm:$0xff]  ;;  %v7576_v16 = vld [vmem:[#allocation38_spill] sm:$0xff]  ;;  %v7590_v26 = vand.u32 4294901760, %v6035_v49 }
 0x138   :  { %v6293_v4 = vpack.c.bf16 %v7566_v28, %v7565_v54  ;;  %v6302_v42 = vpack.c.bf16 %v7570_v29, %v7569_v3  ;;  %v7577_v3 = vand.u32 4294901760, %v6013_v9  ;;  %v7578_v29 = vand.u32 4294901760, %v6015_v11  ;;  %v7583_v54 = vld [vmem:[#allocation83_spill] sm:$0xff] }
 0x139   :  { %7562 = vst [vmem:[#allocation73_spill] sm:$0xff] %v6279_v6  ;;  %v7568_v6 = vld [vmem:[#allocation84_spill] sm:$0xff]  ;;  %4375 = vmatpush1.bf16.msra.mxu0 %v7572_v33  ;;  %v7594_v33 = vand.u32 4294901760, %v7573_v34 }
 0x13a   :  { %7567 = vst [vmem:[#allocation74_spill] sm:$0xff] %v6293_v4  ;;  %7571 = vst [vmem:[#allocation76_spill] sm:$0xff] %v6302_v42  ;;  %4567 = vmatpush1.bf16.msra.mxu1 %v7575_v38  ;;  %4377 = vmatprep.subr.bf16.mxu0 %v7576_v16  ;;  %v6317_v42 = vpack.c.bf16 %v7578_v29, %v7577_v3  ;;  %v7581_v51 = vand.u32 4294901760, %v7568_v6  ;;  %v7584_v16 = vand.u32 4294901760, %v7564_v27  ;;  %v7585_v4 = vld [vmem:[#allocation14_spill] sm:$0xff]  ;;  %v7586_v3 = vand.u32 4294901760, %v6029_v30 }
 0x13b   :  { %4569 = vmatprep.subr.bf16.mxu1 %v7583_v54  ;;  %v7587_v29 = vand.u32 4294901760, %v6031_v31  ;;  %v7593_v38 = vld [vmem:[#allocation85_spill] sm:$0xff]  ;;  %v6352_v53 = vsub.f32 %v7573_v34, %v7594_v33  ;;  %v7598_v54 = vld [vmem:[#allocation87_spill] sm:$0xff] }
 0x13c   :  { %7579 = vst [vmem:[#allocation100_spill] sm:$0xff] %v6317_v42  ;;  %v6323_v28 = vpack.c.bf16 %v7581_v51, %v7580_v62  ;;  %v6329_v10 = vsub.f32 %v7564_v27, %v7584_v16  ;;  %v7591_v16 = vand.u32 4294901760, %v6037_v45  ;;  %v7596_v51 = vld [vmem:[#allocation96_spill] sm:$0xff]  ;;  %v7597_v62 = vld [vmem:[#allocation97_spill] sm:$0xff] }
 0x13d   :  { %v6337_v42 = vpack.c.bf16 %v7587_v29, %v7586_v3  ;;  %4379 = vmatpush1.bf16.msra.mxu0 %v7593_v38  ;;  %v7595_v3 = vld [vmem:[#allocation15_spill] sm:$0xff]  ;;  %v7602_v38 = vand.u32 4294901760, %v6044_v50  ;;  %v7604_v29 = vand.u32 4294901760, %v6050_v12  ;;  %v7610_v45 = vld [vmem:[#allocation60_spill] sm:$0xff]  ;;  %v7611_v50 = vand.u32 4294901760, %v7596_v51 }
 0x13e   :  { %7582 = vst [vmem:[#allocation101_spill] sm:$0xff] %v6323_v28  ;;  %v7589_v28 = vld [vmem:[#allocation94_spill] sm:$0xff]  ;;  %v6346_v27 = vpack.c.bf16 %v7591_v16, %v7590_v26  ;;  %4571 = vmatpush1.bf16.msra.mxu1 %v7598_v54  ;;  %4381 = vmatprep.subr.bf16.mxu0 %v7599_v59  ;;  %v7608_v59 = vand.u32 4294901760, %v7574_v17  ;;  %v7609_v54 = vld [vmem:[#allocation19_spill] sm:$0xff] }
 0x13f   :  { %7588 = vst [vmem:[#allocation102_spill] sm:$0xff] %v6337_v42  ;;  %v7605_v42 = vand.u32 4294901760, %v7589_v28  ;;  %4573 = vmatprep.subr.bf16.mxu1 %v7607_v56  ;;  %v7617_v16 = vld [vmem:[#allocation95_spill] sm:$0xff] }
 0x140   :  { %7592 = vst [vmem:[#allocation94_spill] sm:$0xff] %v6346_v27  ;;  %v7601_v27 = vand.u32 4294901760, %v6039_v24  ;;  %v3090_v26 = vsub.f32 %v7574_v17, %v7608_v59  ;;  %v7615_v59 = vand.u32 4294901760, %v6069_v47  ;;  %v7618_v24 = vand.u32 4294901760, %v7585_v4 }
 0x141   :  { %v6371_v34 = vpack.c.bf16 %v7605_v42, %v7604_v29  ;;  %4383 = vmatpush1.bf16.msra.mxu0 %v7617_v16  ;;  %v7625_v42 = vand.u32 4294901760, %v6087_v7  ;;  %v7627_v29 = vld [vmem:[#allocation99_spill] sm:$0xff] }
 0x142   :  { %v6365_v33 = vpack.c.bf16 %v7602_v38, %v7601_v27  ;;  %v7612_v27 = vand.u32 4294901760, %v7597_v62  ;;  %v3102_v17 = vsub.f32 %v7585_v4, %v7618_v24  ;;  %4385 = vmatprep.subr.bf16.mxu0 %v6074_v20  ;;  %v7622_v24 = vand.u32 4294901760, %v6079_v39 }
 0x143   :  { %7606 = vst [vmem:[#allocation97_spill] sm:$0xff] %v6371_v34  ;;  %v7614_v34 = vand.u32 4294901760, %v7600_v23  ;;  %v7628_v20 = vand.u32 4294901760, %v7609_v54  ;;  %v7631_v39 = vand.u32 4294901760, %v6091_v32 }
 0x144   :  { %7603 = vst [vmem:[#allocation96_spill] sm:$0xff] %v6365_v33  ;;  %v6383_v38 = vpack.c.bf16 %v7612_v27, %v7611_v50  ;;  %v7619_v50 = vand.u32 4294901760, %v7595_v3  ;;  %v7620_v33 = vld [vmem:[#allocation57_spill] sm:$0xff] }
 0x145   :  { %v6392_v56 = vpack.c.bf16 %v7615_v59, %v7614_v34  ;;  %4575 = vmatpush1.bf16.msra.mxu1 %v7620_v33  ;;  %v2204_v34 = vsub.f32 %v7609_v54, %v7628_v20  ;;  %v7629_v33 = vld [vmem:[#allocation23_spill] sm:$0xff]  ;;  %v7636_v20 = vand.u32 4294901760, %v6104_v36  ;;  %v7637_v59 = vand.u32 4294901760, %v6108_v37  ;;  %v7639_v54 = vld [vmem:[#allocation68_spill] sm:$0xff] }
 0x146   :  { %7613 = vst [vmem:[#allocation98_spill] sm:$0xff] %v6383_v38  ;;  %v2192_v27 = vsub.f32 %v7595_v3, %v7619_v50  ;;  %v7624_v50 = vand.u32 4294901760, %v6083_v0  ;;  %4577 = vmatprep.subr.bf16.mxu1 %v7627_v29  ;;  %v7630_v3 = vld [vmem:[#allocation62_spill] sm:$0xff]  ;;  %v2181_v29 = vand.u32 4294901760, %v6262_v21  ;;  %4387 = vmatpush1.bf16.msra.mxu0 %v7639_v54  ;;  %v3103_v21 = vand.u32 4294901760, %v3102_v17 }
 0x147   :  { %7616 = vst [vmem:[#allocation60_spill] sm:$0xff] %v6392_v56  ;;  %v7621_v56 = vand.u32 4294901760, %v7610_v45  ;;  %v6441_v4 = vpack.c.bf16 %v7637_v59, %v7636_v20  ;;  %4389 = vmatprep.subr.bf16.mxu0 %v6202_v58  ;;  %v7641_v59 = vand.u32 4294901760, %v5976_v61  ;;  %v7644_v58 = vand.u32 4294901760, %v7630_v3 }
 0x148   :  { %v6417_v16 = vpack.c.bf16 %v7625_v42, %v7624_v50  ;;  %v7635_v42 = vand.u32 4294901760, %v6227_v57  ;;  %v2199_v57 = vand.u32 4294901760, %v6352_v53  ;;  %v7643_v53 = vand.u32 4294901760, %v7629_v33 }
 0x149   :  { %v6411_v38 = vpack.c.bf16 %v7622_v24, %v7621_v56  ;;  %v7632_v56 = vand.u32 4294901760, %v6100_v25  ;;  %7638 = vst [vmem:[#allocation62_spill] sm:$0xff] %v6441_v4  ;;  %v3096_v20 = vsub.f32 %v5976_v61, %v7641_v59  ;;  %v2222_v17 = vsub.f32 %v7630_v3, %v7644_v58 }
 0x14a   :  { %7626 = vst [vmem:[#allocation104_spill] sm:$0xff] %v6417_v16  ;;  %v2169_v16 = vand.u32 4294901760, %v6245_v35  ;;  %v3091_v35 = vand.u32 4294901760, %v3090_v26  ;;  %v2210_v4 = vsub.f32 %v7629_v33, %v7643_v53  ;;  %v7645_v26 = vld [vmem:[#allocation82_spill] sm:$0xff]  ;;  %v7646_v59 = vand.u32 4294901760, %v5991_v22 }
 0x14b   :  { %7623 = vst [vmem:[#allocation103_spill] sm:$0xff] %v6411_v38  ;;  %v6429_v24 = vpack.c.bf16 %v7632_v56, %v7631_v39  ;;  %v7634_v38 = vand.u32 4294901760, %v6217_v1  ;;  %v3073_v39 = vand.u32 4294901760, %v6271_v63  ;;  %v3085_v56 = vand.u32 4294901760, %v6285_v14  ;;  %2094 = vmatmul.mubr.f32.vlgmr.msra.gmra.mrb[4].mxu0 %v7645_v26 }
 0x14c   :  { %v2187_v1 = vand.u32 4294901760, %v6329_v10  ;;  %v2205_v63 = vand.u32 4294901760, %v2204_v34  ;;  %v7642_v14 = vand.u32 4294901760, %v5978_v46  ;;  %v7647_v34 = vand.u32 4294901760, %v5994_v43  ;;  %4391 = vmatpush1.bf16.msra.mxu0 %v6210_v18  ;;  %2099 = vmatprep.mubr.f32.mxu0 %v7255_v48 }
 0x14d   :  { %7633 = vst [vmem:[#allocation23_spill] sm:$0xff] %v6429_v24  ;;  %v4588_v50 = vpack.c.bf16 %v7635_v42, %v7634_v38  ;;  %v7640_v38 = vld [vmem:[#allocation69_spill] sm:$0xff]  ;;  %v2193_v42 = vand.u32 4294901760, %v2192_v27  ;;  %v4398_v27 = vpack.c.bf16 %v2181_v29, %v2169_v16  ;;  %v4590_v53 = vpack.c.bf16 %v3085_v56, %v3073_v39  ;;  %4393 = vmatprep.subr.bf16.mxu0 %v6220_v52 }
 0x14e   :  { %4579 = vmatpush1.bf16.msra.mxu1 %v7640_v38  ;;  %v3108_v10 = vsub.f32 %v5978_v46, %v7642_v14  ;;  %v3126_v24 = vsub.f32 %v5994_v43, %v7647_v34  ;;  %v7648_v14 = vand.u32 4294901760, %v5996_v19  ;;  %v4400_v58 = vpack.c.bf16 %v2199_v57, %v2187_v1 }
 0x14f   :  { %4581 = vmatprep.subr.bf16.mxu1 %v6208_v44  ;;  %v3114_v44 = vsub.f32 %v5991_v22, %v7646_v59  ;;  %v7649_v16 = vand.u32 4294901760, %v6002_v60  ;;  %v4592_v59 = vpack.c.bf16 %v3103_v21, %v3091_v35  ;;  %v3097_v34 = vand.u32 4294901760, %v3096_v20 }
 0x150   :  { %v2216_v38 = vsub.f32 %v5996_v19, %v7648_v14  ;;  %v7650_v54 = vand.u32 4294901760, %v6007_v5  ;;  %v7651_v18 = vand.u32 4294901760, %v6009_v2  ;;  %v4402_v39 = vpack.c.bf16 %v2205_v63, %v2193_v42  ;;  %4395 = vmatpush1.bf16.msra.mxu0 %v6232_v8 }
 0x151   :  { %2998 = vmatmul.mubr.f32.vlgmr.msra.gmra.mrb[4].mxu1 %v7645_v26  ;;  %v2228_v29 = vsub.f32 %v6002_v60, %v7649_v16  ;;  %v3109_v56 = vand.u32 4294901760, %v3108_v10  ;;  %v2211_v1 = vand.u32 4294901760, %v2210_v4  ;;  %v2223_v57 = vand.u32 4294901760, %v2222_v17  ;;  %4397 = vmatprep.subr.bf16.mxu0 %v6240_v55 }
 0x152   :  { %4583 = vmatpush1.bf16.msra.mxu1 %v6212_v40  ;;  %v3120_v14 = vsub.f32 %v6007_v5, %v7650_v54  ;;  %v3132_v26 = vsub.f32 %v6009_v2, %v7651_v18  ;;  %v3115_v40 = vand.u32 4294901760, %v3114_v44  ;;  %v3127_v52 = vand.u32 4294901760, %v3126_v24  ;;  %3003 = vmatprep.mubr.f32.mxu1 %v7255_v48  ;;  %v7653_v54 = vld [vmem:[#allocation61_spill] sm:$0xff] }
 0x153   :  { %4585 = vmatprep.subr.bf16.mxu1 %v6222_v15  ;;  %v2217_v35 = vand.u32 4294901760, %v2216_v38  ;;  %v7652_v21 = vand.u32 4294901760, %v6013_v9  ;;  %2105 = vmatmul.mubr.f32.gmra.mrb[6].mxu0 %v7653_v54  ;;  %v2229_v15 = vand.u32 4294901760, %v2228_v29  ;;  %v7654_v42 = vand.u32 4294901760, %v6015_v11 }
 0x154   :  { %v7655_v63 = vand.u32 4294901760, %v6020_v13  ;;  %v7656_v38 = vand.u32 4294901760, %v7568_v6  ;;  %v3121_v8 = vand.u32 4294901760, %v3120_v14  ;;  %v3133_v17 = vand.u32 4294901760, %v3132_v26  ;;  %2335 = vmatprep.mubr.f32.mxu0 %v7255_v48  ;;  %4399 = vmatpush1.bf16.msra.mxu0 %v4398_v27 }
 0x155   :  { %v2234_v20 = vsub.f32 %v6013_v9, %v7652_v21  ;;  %v2246_v4 = vsub.f32 %v6015_v11, %v7654_v42  ;;  %3009 = vmatmul.mubr.f32.gmra.mrb[6].mxu1 %v7653_v54  ;;  %v7657_v44 = vand.u32 4294901760, %v6029_v30  ;;  %v7658_v29 = vand.u32 4294901760, %v6031_v31  ;;  %4401 = vmatprep.subr.bf16.mxu0 %v4400_v58 }
 0x156   :  { %v3138_v24 = vsub.f32 %v6020_v13, %v7655_v63  ;;  %v3150_v10 = vsub.f32 %v7568_v6, %v7656_v38  ;;  %4587 = vmatpush1.bf16.msra.mxu1 %v6238_v41  ;;  %v4594_v21 = vpack.c.bf16 %v3109_v56, %v3097_v34  ;;  %v7659_v42 = vand.u32 4294901760, %v6035_v49  ;;  %v7660_v63 = vld [vmem:[#allocation89_spill] sm:$0xff]  ;;  %v7662_v38 = vld [vmem:[#allocation90_spill] sm:$0xff]  ;;  %v7664_v6 = vld [vmem:[#allocation92_spill] sm:$0xff]  ;;  %3239 = vmatprep.mubr.f32.mxu1 %v7255_v48 }
 0x157   :  { %v2240_v16 = vsub.f32 %v6029_v30, %v7657_v44  ;;  %v2252_v18 = vsub.f32 %v6031_v31, %v7658_v29  ;;  %4589 = vmatprep.subr.bf16.mxu1 %v4588_v50  ;;  %v7661_v41 = vand.u32 4294901760, %v7660_v63  ;;  %v4404_v14 = vpack.c.bf16 %v2223_v57, %v2211_v1 }
 0x158   :  { %v3144_v54 = vsub.f32 %v6035_v49, %v7659_v42  ;;  %v4596_v26 = vpack.c.bf16 %v3127_v52, %v3115_v40  ;;  %v7663_v44 = vand.u32 4294901760, %v7662_v38  ;;  %v7665_v29 = vand.u32 4294901760, %v7664_v6  ;;  %4403 = vmatpush1.bf16.msra.mxu0 %v4402_v39 }
 0x159   :  { %v3156_v55 = vsub.f32 %v7660_v63, %v7661_v41  ;;  %v2235_v34 = vand.u32 4294901760, %v2234_v20  ;;  %v2247_v56 = vand.u32 4294901760, %v2246_v4  ;;  %v3139_v42 = vand.u32 4294901760, %v3138_v24  ;;  %4405 = vmatprep.subr.bf16.mxu0 %v4404_v14 }
 0x15a   :  { %v2258_v30 = vsub.f32 %v7662_v38, %v7663_v44  ;;  %v2270_v50 = vsub.f32 %v7664_v6, %v7665_v29  ;;  %v3151_v49 = vand.u32 4294901760, %v3150_v10  ;;  %4591 = vmatpush1.bf16.msra.mxu1 %v4590_v53  ;;  %v4406_v41 = vpack.c.bf16 %v2229_v15, %v2217_v35 }
 0x15b   :  { %v4598_v1 = vpack.c.bf16 %v3133_v17, %v3121_v8  ;;  %v2241_v57 = vand.u32 4294901760, %v2240_v16  ;;  %v2253_v40 = vand.u32 4294901760, %v2252_v18  ;;  %4593 = vmatprep.subr.bf16.mxu1 %v4592_v59  ;;  %v3145_v52 = vand.u32 4294901760, %v3144_v54  ;;  %v7673_v54 = vld [vmem:[#allocation67_spill] sm:$0xff] }
 0x15c   :  { %v3157_v44 = vand.u32 4294901760, %v3156_v55  ;;  %v7666_v38 = vand.u32 4294901760, %v6050_v12  ;;  %v7667_v6 = vand.u32 4294901760, %v7589_v28  ;;  %v2259_v20 = vand.u32 4294901760, %v2258_v30  ;;  %4407 = vmatpush1.bf16.msra.mxu0 %v4406_v41 }
 0x15d   :  { %v2271_v4 = vand.u32 4294901760, %v2270_v50  ;;  %v7668_v53 = vand.u32 4294901760, %v7596_v51  ;;  %v7669_v35 = vand.u32 4294901760, %v7597_v62  ;;  %v4408_v15 = vpack.c.bf16 %v2247_v56, %v2235_v34 }
 0x15e   :  { %v3162_v29 = vsub.f32 %v6050_v12, %v7666_v38  ;;  %v3174_v27 = vsub.f32 %v7589_v28, %v7667_v6  ;;  %v4600_v24 = vpack.c.bf16 %v3151_v49, %v3139_v42  ;;  %v7670_v10 = vand.u32 4294901760, %v7600_v23  ;;  %4595 = vmatpush1.bf16.msra.mxu1 %v4594_v21 }
 0x15f   :  { %v2264_v58 = vsub.f32 %v7596_v51, %v7668_v53  ;;  %v2276_v59 = vsub.f32 %v7597_v62, %v7669_v35  ;;  %v7671_v17 = vand.u32 4294901760, %v6069_v47  ;;  %v4410_v6 = vpack.c.bf16 %v2253_v40, %v2241_v57  ;;  %4597 = vmatprep.subr.bf16.mxu1 %v4596_v26  ;;  %4409 = vmatprep.subr.bf16.mxu0 %v4408_v15 }
 0x160   :  { %v3168_v8 = vsub.f32 %v7600_v23, %v7670_v10  ;;  %v7672_v16 = vand.u32 4294901760, %v7610_v45  ;;  %v7674_v55 = vand.u32 4294901760, %v7673_v54  ;;  %v3163_v49 = vand.u32 4294901760, %v3162_v29 }
 0x161   :  { %v3180_v30 = vsub.f32 %v6069_v47, %v7671_v17  ;;  %v3175_v38 = vand.u32 4294901760, %v3174_v27  ;;  %v7675_v50 = vand.u32 4294901760, %v6083_v0  ;;  %v7676_v56 = vand.u32 4294901760, %v6087_v7  ;;  %4411 = vmatpush1.bf16.msra.mxu0 %v4410_v6  ;;  %v7683_v6 = vld [vmem:[#allocation47_spill] sm:$0xff] }
 0x162   :  { %v2282_v18 = vsub.f32 %v7610_v45, %v7672_v16  ;;  %v2294_v39 = vsub.f32 %v7673_v54, %v7674_v55  ;;  %v4602_v14 = vpack.c.bf16 %v3157_v44, %v3145_v52  ;;  %v4412_v42 = vpack.c.bf16 %v2271_v4, %v2259_v20  ;;  %4599 = vmatpush1.bf16.msra.mxu1 %v4598_v1 }
 0x163   :  { %v3186_v34 = vsub.f32 %v6083_v0, %v7675_v50  ;;  %v3198_v21 = vsub.f32 %v6087_v7, %v7676_v56  ;;  %v2265_v57 = vand.u32 4294901760, %v2264_v58  ;;  %v2277_v40 = vand.u32 4294901760, %v2276_v59  ;;  %4601 = vmatprep.subr.bf16.mxu1 %v4600_v24 }
 0x164   :  { %v3169_v53 = vand.u32 4294901760, %v3168_v8  ;;  %v3181_v35 = vand.u32 4294901760, %v3180_v30  ;;  %v7677_v10 = vand.u32 4294901760, %v6091_v32  ;;  %v7678_v29 = vand.u32 4294901760, %v6100_v25  ;;  %4413 = vmatprep.subr.bf16.mxu0 %v4412_v42  ;;  %v7686_v42 = vld [vmem:[#allocation53_spill] sm:$0xff] }
 0x165   :  { %v2283_v17 = vand.u32 4294901760, %v2282_v18  ;;  %v2295_v16 = vand.u32 4294901760, %v2294_v39  ;;  %v7679_v52 = vand.u32 4294901760, %v6104_v36  ;;  %v7680_v41 = vand.u32 4294901760, %v6108_v37 }
 0x166   :  { %v2288_v26 = vsub.f32 %v6091_v32, %v7677_v10  ;;  %v2300_v27 = vsub.f32 %v6100_v25, %v7678_v29  ;;  %v4604_v4 = vpack.c.bf16 %v3175_v38, %v3163_v49  ;;  %v3187_v58 = vand.u32 4294901760, %v3186_v34  ;;  %4603 = vmatpush1.bf16.msra.mxu1 %v4602_v14  ;;  %v7681_v49 = vld [vmem:[#allocation41_spill] sm:$0xff]  ;;  %v7682_v38 = vld [vmem:[#allocation42_spill] sm:$0xff]  ;;  %v7685_v14 = vld [vmem:[#allocation52_spill] sm:$0xff] }
 0x167   :  { %v3192_v44 = vsub.f32 %v6104_v36, %v7679_v52  ;;  %v3204_v20 = vsub.f32 %v6108_v37, %v7680_v41  ;;  %v3199_v59 = vand.u32 4294901760, %v3198_v21  ;;  %v4414_v8 = vpack.c.bf16 %v2277_v40, %v2265_v57  ;;  %v7684_v21 = vld [vmem:[#allocation49_spill] sm:$0xff]  ;;  %v7690_v29 = vld [vmem:[#allocation72_spill] sm:$0xff] }
 0x168   :  { %v2289_v30 = vand.u32 4294901760, %v2288_v26  ;;  %v2301_v55 = vand.u32 4294901760, %v2300_v27  ;;  %v4606_v1 = vpack.c.bf16 %v3181_v35, %v3169_v53  ;;  %v4416_v15 = vpack.c.bf16 %v2295_v16, %v2283_v17  ;;  %4605 = vmatprep.subr.bf16.mxu1 %v4604_v4  ;;  %v7687_v53 = vld [vmem:[#allocation56_spill] sm:$0xff]  ;;  %v7688_v35 = vld [vmem:[#allocation65_spill] sm:$0xff]  ;;  %v7689_v26 = vld [vmem:[#allocation71_spill] sm:$0xff] }
 0x169   :  { %v3193_v18 = vand.u32 4294901760, %v3192_v44  ;;  %v3205_v39 = vand.u32 4294901760, %v3204_v20  ;;  %v4608_v50 = vpack.c.bf16 %v3199_v59, %v3187_v58  ;;  %4415 = vmatpush1.bf16.msra.mxu0 %v4414_v8  ;;  %v4420_v34 = vpack.c.bf16 %v7682_v38, %v7681_v49  ;;  %v7691_v17 = vld [vmem:[#allocation77_spill] sm:$0xff]  ;;  %v7692_v16 = vld [vmem:[#allocation78_spill] sm:$0xff]  ;;  %v7693_v44 = vld [vmem:[#allocation79_spill] sm:$0xff] }
 0x16a   :  { %v4418_v56 = vpack.c.bf16 %v2301_v55, %v2289_v30  ;;  %4607 = vmatpush1.bf16.msra.mxu1 %v4606_v1  ;;  %4417 = vmatprep.subr.bf16.mxu0 %v4416_v15  ;;  %v4612_v57 = vpack.c.bf16 %v7684_v21, %v7683_v6  ;;  %v4422_v40 = vpack.c.bf16 %v7686_v42, %v7685_v14  ;;  %v7694_v41 = vld [vmem:[#allocation16_spill] sm:$0xff]  ;;  %v7695_v20 = vld [vmem:[#allocation18_spill] sm:$0xff]  ;;  %v7697_v59 = vld [vmem:[#allocation25_spill] sm:$0xff] }
 0x16b   :  { %v4610_v24 = vpack.c.bf16 %v3205_v39, %v3193_v18  ;;  %4609 = vmatprep.subr.bf16.mxu1 %v4608_v50  ;;  %v4614_v10 = vpack.c.bf16 %v7688_v35, %v7687_v53  ;;  %v4424_v27 = vpack.c.bf16 %v7690_v29, %v7689_v26  ;;  %v4616_v52 = vpack.c.bf16 %v7692_v16, %v7691_v17  ;;  %v7696_v58 = vld [vmem:[#allocation24_spill] sm:$0xff]  ;;  %v7698_v30 = vld [vmem:[#allocation27_spill] sm:$0xff]  ;;  %v7700_v15 = vld [vmem:[#allocation30_spill] sm:$0xff] }
 0x16c   :  { %v4426_v4 = vpack.c.bf16 %v7695_v20, %v7694_v41  ;;  %v4618_v8 = vpack.c.bf16 %v7697_v59, %v7696_v58  ;;  %v7699_v55 = vld [vmem:[#allocation28_spill] sm:$0xff]  ;;  %v7701_v18 = vld [vmem:[#allocation31_spill] sm:$0xff] }
 0x16d   :  { %4419 = vmatpush1.bf16.msra.mxu0 %v4418_v56  ;;  %v4428_v1 = vpack.c.bf16 %v7699_v55, %v7698_v30  ;;  %v4620_v39 = vpack.c.bf16 %v7701_v18, %v7700_v15  ;;  %v7702_v50 = vld [vmem:[#allocation44_spill] sm:$0xff]  ;;  %v7703_v56 = vld [vmem:[#allocation33_spill] sm:$0xff]  ;;  %v7710_v15 = vld [vmem:[#allocation14_spill] sm:$0xff] }
 0x16e   :  { %4611 = vmatpush1.bf16.msra.mxu1 %v4610_v24  ;;  %4421 = vmatprep.subr.bf16.mxu0 %v4420_v34  ;;  %v7704_v24 = vld [vmem:[#allocation34_spill] sm:$0xff]  ;;  %v7709_v18 = vld [vmem:[#allocation13_spill] sm:$0xff] }
 0x16f   :  { %4613 = vmatprep.subr.bf16.mxu1 %v4612_v57  ;;  %v4430_v34 = vpack.c.bf16 %v7704_v24, %v7703_v56  ;;  %v7705_v57 = vld [vmem:[#allocation39_spill] sm:$0xff]  ;;  %v4624_v55 = vpack.c.bf16 %v7710_v15, %v7709_v18  ;;  %v4438_v15 = vpack.c.bf16 %v6002_v60, %v5996_v19  ;;  %v7716_v60 = vld [vmem:[#allocation90_spill] sm:$0xff] }
 0x170   :  { %2337 = vmatmul.mubr.f32.vlgmr.msra.gmra.mrb[4].mxu0 %v7693_v44  ;;  %v7712_v24 = vld [vmem:[#allocation19_spill] sm:$0xff] }
 0x171   :  { %4423 = vmatpush1.bf16.msra.mxu0 %v4422_v40  ;;  %3241 = vmatmul.mubr.f32.vlgmr.msra.gmra.mrb[4].mxu1 %v7693_v44  ;;  %v7706_v40 = vld [vmem:[#allocation43_spill] sm:$0xff] }
 0x172   :  { %4615 = vmatpush1.bf16.msra.mxu1 %v4614_v10  ;;  %4425 = vmatprep.subr.bf16.mxu0 %v4424_v27  ;;  %v4622_v10 = vpack.c.bf16 %v7706_v40, %v7705_v57  ;;  %v7707_v27 = vld [vmem:[#allocation48_spill] sm:$0xff] }
 0x173   :  { %4617 = vmatprep.subr.bf16.mxu1 %v4616_v52  ;;  %2342 = vmatprep.mubr.f32.mxu0 %v7255_v48  ;;  %v7708_v52 = vld [vmem:[#allocation51_spill] sm:$0xff] }
 0x174   :  { %3246 = vmatprep.mubr.f32.mxu1 %v7255_v48  ;;  %2344 = vmatmul.mubr.f32.gmra.mrb[6].mxu0 %v7702_v50  ;;  %v4432_v44 = vpack.c.bf16 %v7708_v52, %v7707_v27 }
 0x175   :  { %4427 = vmatpush1.bf16.msra.mxu0 %v4426_v4  ;;  %3248 = vmatmul.mubr.f32.gmra.mrb[6].mxu1 %v7702_v50  ;;  %v7711_v4 = vld [vmem:[#allocation15_spill] sm:$0xff] }
 0x176   :  { %4619 = vmatpush1.bf16.msra.mxu1 %v4618_v8  ;;  %4429 = vmatprep.subr.bf16.mxu0 %v4428_v1  ;;  %v4434_v50 = vpack.c.bf16 %v7712_v24, %v7711_v4  ;;  %v4626_v8 = vpack.c.bf16 %v5978_v46, %v5976_v61  ;;  %v4436_v1 = vpack.c.bf16 %v7630_v3, %v7629_v33  ;;  %v7713_v61 = vld [vmem:[#allocation84_spill] sm:$0xff] }
 0x177   :  { %4621 = vmatprep.subr.bf16.mxu1 %v4620_v39  ;;  %2478 = vmatprep.mubr.f32.mxu0 %v7255_v48  ;;  %v4628_v39 = vpack.c.bf16 %v5994_v43, %v5991_v22  ;;  %v4632_v46 = vpack.c.bf16 %v7713_v61, %v6020_v13  ;;  %v7715_v43 = vld [vmem:[#allocation88_spill] sm:$0xff]  ;;  %v4640_v13 = vpack.c.bf16 %v6087_v7, %v6083_v0  ;;  %v7722_v7 = vld [vmem:[#allocation54_spill] sm:$0xff]  ;;  %v7738_v61 = vld [vmem:[#allocation35_spill] sm:$0xff] }
 0x178   :  { %3382 = vmatprep.mubr.f32.mxu1 %v7255_v48  ;;  %v4634_v19 = vpack.c.bf16 %v7660_v63, %v7715_v43  ;;  %v7723_v0 = vld [vmem:[#allocation66_spill] sm:$0xff]  ;;  %v7730_v63 = vld [vmem:[#allocation32_spill] sm:$0xff]  ;;  %v7742_v43 = vld [vmem:[#allocation85_spill] sm:$0xff] }
 0x179   :  { %4431 = vmatpush1.bf16.msra.mxu0 %v4430_v34  ;;  %v4630_v34 = vpack.c.bf16 %v6009_v2, %v6007_v5  ;;  %v4636_v5 = vpack.c.bf16 %v7589_v28, %v6050_v12  ;;  %v4446_v2 = vpack.c.bf16 %v7597_v62, %v7596_v51  ;;  %v4642_v12 = vpack.c.bf16 %v6108_v37, %v6104_v36  ;;  %v7721_v28 = vld [vmem:[#allocation50_spill] sm:$0xff]  ;;  %v7726_v36 = vld [vmem:[#allocation12_spill] sm:$0xff]  ;;  %v7727_v37 = vld [vmem:[#allocation21_spill] sm:$0xff] }
 0x17a   :  { %4623 = vmatpush1.bf16.msra.mxu1 %v4622_v10  ;;  %4433 = vmatprep.subr.bf16.mxu0 %v4432_v44  ;;  %v4440_v44 = vpack.c.bf16 %v6015_v11, %v6013_v9  ;;  %v4638_v9 = vpack.c.bf16 %v6069_v47, %v7600_v23  ;;  %v4448_v11 = vpack.c.bf16 %v7673_v54, %v7610_v45  ;;  %v7718_v23 = vld [vmem:[#allocation40_spill] sm:$0xff]  ;;  %v7719_v47 = vld [vmem:[#allocation46_spill] sm:$0xff]  ;;  %v7729_v62 = vld [vmem:[#allocation29_spill] sm:$0xff] }
 0x17b   :  { %4625 = vmatprep.subr.bf16.mxu1 %v4624_v55  ;;  %v7714_v55 = vld [vmem:[#allocation86_spill] sm:$0xff]  ;;  %v7720_v45 = vld [vmem:[#allocation80_spill] sm:$0xff] }
 0x17c   :  { %v4442_v22 = vpack.c.bf16 %v6031_v31, %v7714_v55  ;;  %v4450_v31 = vpack.c.bf16 %v6100_v25, %v6091_v32  ;;  %v7724_v32 = vld [vmem:[#allocation75_spill] sm:$0xff]  ;;  %v7725_v25 = vld [vmem:[#allocation58_spill] sm:$0xff]  ;;  %v7731_v54 = vld [vmem:[#allocation36_spill] sm:$0xff] }
 0x17d   :  { %4435 = vmatpush1.bf16.msra.mxu0 %v4434_v50  ;;  %v7717_v50 = vld [vmem:[#allocation92_spill] sm:$0xff]  ;;  %v7728_v51 = vld [vmem:[#allocation26_spill] sm:$0xff] }
 0x17e   :  { %4627 = vmatpush1.bf16.msra.mxu1 %v4626_v8  ;;  %4437 = vmatprep.subr.bf16.mxu0 %v4436_v1  ;;  %v4444_v10 = vpack.c.bf16 %v7717_v50, %v7716_v60  ;;  %v7733_v8 = vld [vmem:[#allocation55_spill] sm:$0xff]  ;;  %v7734_v1 = vld [vmem:[#allocation17_spill] sm:$0xff]  ;;  %v7740_v55 = vld [vmem:[#allocation38_spill] sm:$0xff] }
 0x17f   :  { %4629 = vmatprep.subr.bf16.mxu1 %v4628_v39  ;;  %v7735_v39 = vld [vmem:[#allocation20_spill] sm:$0xff]  ;;  %v7744_v60 = vld [vmem:[#allocation91_spill] sm:$0xff]  ;;  %v7745_v50 = vld [vmem:[#allocation93_spill] sm:$0xff] }
 0x181   :  { %4439 = vmatpush1.bf16.msra.mxu0 %v4438_v15  ;;  %v7732_v15 = vld [vmem:[#allocation45_spill] sm:$0xff] }
 0x182   :  { %4631 = vmatpush1.bf16.msra.mxu1 %v4630_v34  ;;  %4441 = vmatprep.subr.bf16.mxu0 %v4440_v44  ;;  %v7736_v34 = vld [vmem:[#allocation22_spill] sm:$0xff]  ;;  %v7737_v44 = vld [vmem:[#allocation64_spill] sm:$0xff] }
 0x183   :  { %4633 = vmatprep.subr.bf16.mxu1 %v4632_v46  ;;  %v7739_v46 = vld [vmem:[#allocation37_spill] sm:$0xff] }
 0x185   :  { %4443 = vmatpush1.bf16.msra.mxu0 %v4442_v22  ;;  %v7741_v22 = vld [vmem:[#allocation83_spill] sm:$0xff] }
 0x186   :  { %4635 = vmatpush1.bf16.msra.mxu1 %v4634_v19  ;;  %4445 = vmatprep.subr.bf16.mxu0 %v4444_v10  ;;  %v7743_v19 = vld [vmem:[#allocation87_spill] sm:$0xff] }
 0x187   :  { %4637 = vmatprep.subr.bf16.mxu1 %v4636_v5  ;;  %v7746_v10 = vld [vmem:[#allocation95_spill] sm:$0xff]  ;;  %v7747_v5 = vld [vmem:[#allocation57_spill] sm:$0xff] }
 0x189   :  { %4447 = vmatpush1.bf16.msra.mxu0 %v4446_v2  ;;  %v7748_v2 = vld [vmem:[#allocation63_spill] sm:$0xff] }
 0x18a   :  { %4639 = vmatpush1.bf16.msra.mxu1 %v4638_v9  ;;  %4449 = vmatprep.subr.bf16.mxu0 %v4448_v11  ;;  %v7749_v9 = vand.u32 4294901760, %v7681_v49  ;;  %v7750_v11 = vand.u32 4294901760, %v7682_v38  ;;  %v7758_v49 = vand.u32 4294901760, %v7687_v53  ;;  %v7759_v38 = vand.u32 4294901760, %v7688_v35 }
 0x18b   :  { %4641 = vmatprep.subr.bf16.mxu1 %v4640_v13  ;;  %v7765_v53 = vand.u32 4294901760, %v7694_v41  ;;  %v7766_v35 = vand.u32 4294901760, %v7695_v20  ;;  %v7776_v20 = vld [vmem:[#allocation59_spill] sm:$0xff] }
 0x18c   :  { %v4484_v13 = vpack.c.bf16 %v7750_v11, %v7749_v9  ;;  %v4678_v9 = vpack.c.bf16 %v7759_v38, %v7758_v49  ;;  %v7774_v38 = vld [vmem:[#allocation31_spill] sm:$0xff] }
 0x18d   :  { %4451 = vmatpush1.bf16.msra.mxu0 %v4450_v31  ;;  %v7751_v31 = vld [vmem:[#allocation99_spill] sm:$0xff]  ;;  %v7775_v41 = vand.u32 4294901760, %v7774_v38 }
 0x18e   :  { %4643 = vmatpush1.bf16.msra.mxu1 %v4642_v12  ;;  %4453 = vmatprep.subr.bf16.mxu0 %v7718_v23  ;;  %v7752_v12 = vand.u32 4294901760, %v7683_v6  ;;  %v7760_v6 = vand.u32 4294901760, %v7689_v26  ;;  %v7767_v26 = vand.u32 4294901760, %v7696_v58  ;;  %v7777_v58 = vand.u32 4294901760, %v7703_v56  ;;  %v7803_v38 = vld [vmem:[#allocation103_spill] sm:$0xff] }
 0x18f   :  { %4645 = vmatprep.subr.bf16.mxu1 %v7719_v47  ;;  %v7784_v56 = vand.u32 4294901760, %v7709_v18 }
 0x190   :  { %2481 = vmatmul.mubr.f32.vlgmr.msra.gmra.mrb[4].mxu0 %v7720_v45 }
 0x191   :  { %4455 = vmatpush1.bf16.msra.mxu0 %v7721_v28  ;;  %3385 = vmatmul.mubr.f32.vlgmr.msra.gmra.mrb[4].mxu1 %v7720_v45  ;;  %v7753_v45 = vand.u32 4294901760, %v7684_v21  ;;  %v7761_v21 = vand.u32 4294901760, %v7690_v29  ;;  %v7768_v29 = vand.u32 4294901760, %v7697_v59  ;;  %v7778_v59 = vld [vmem:[#allocation34_spill] sm:$0xff] }
 0x192   :  { %4647 = vmatpush1.bf16.msra.mxu1 %v7722_v7  ;;  %4457 = vmatprep.subr.bf16.mxu0 %v7723_v0 }
 0x193   :  { %4649 = vmatprep.subr.bf16.mxu1 %v7724_v32  ;;  %2486 = vmatprep.mubr.f32.mxu0 %v7255_v48  ;;  %v4488_v11 = vpack.c.bf16 %v7761_v21, %v7760_v6  ;;  %v7780_v21 = vand.u32 4294901760, %v7705_v57  ;;  %v7787_v57 = vand.u32 4294901760, %v7711_v4  ;;  %v7794_v4 = vld [vmem:[#allocation76_spill] sm:$0xff] }
 0x194   :  { %3390 = vmatprep.mubr.f32.mxu1 %v7255_v48  ;;  %2489 = vmatmul.mubr.f32.gmra.mrb[6].mxu0 %v7725_v25 }
 0x195   :  { %4459 = vmatpush1.bf16.msra.mxu0 %v7726_v36  ;;  %3393 = vmatmul.mubr.f32.gmra.mrb[6].mxu1 %v7725_v25  ;;  %v4676_v25 = vpack.c.bf16 %v7753_v45, %v7752_v12  ;;  %v7762_v12 = vand.u32 4294901760, %v7691_v17  ;;  %v4682_v17 = vpack.c.bf16 %v7768_v29, %v7767_v26  ;;  %v7791_v29 = vld [vmem:[#allocation70_spill] sm:$0xff] }
 0x196   :  { %4651 = vmatpush1.bf16.msra.mxu1 %v7727_v37  ;;  %4461 = vmatprep.subr.bf16.mxu0 %v7728_v51 }
 0x197   :  { %4653 = vmatprep.subr.bf16.mxu1 %v7729_v62  ;;  %2591 = vmatprep.mubr.f32.mxu0 %v7255_v48 }
 0x198   :  { %3495 = vmatprep.mubr.f32.mxu1 %v7255_v48 }
 0x199   :  { %4463 = vmatpush1.bf16.msra.mxu0 %v7730_v63 }
 0x19a   :  { %4655 = vmatpush1.bf16.msra.mxu1 %v7731_v54  ;;  %4465 = vmatprep.subr.bf16.mxu0 %v7732_v15 }
 0x19b   :  { %4657 = vmatprep.subr.bf16.mxu1 %v7733_v8 }
 0x19d   :  { %4467 = vmatpush1.bf16.msra.mxu0 %v7734_v1 }
 0x19e   :  { %4659 = vmatpush1.bf16.msra.mxu1 %v7735_v39  ;;  %4469 = vmatprep.subr.bf16.mxu0 %v7736_v34 }
 0x19f   :  { %4661 = vmatprep.subr.bf16.mxu1 %v7737_v44 }
 0x1a1   :  { %4471 = vmatpush1.bf16.msra.mxu0 %v7738_v61 }
 0x1a2   :  { %4663 = vmatpush1.bf16.msra.mxu1 %v7739_v46  ;;  %4473 = vmatprep.subr.bf16.mxu0 %v7740_v55 }
 0x1a3   :  { %4665 = vmatprep.subr.bf16.mxu1 %v7741_v22 }
 0x1a5   :  { %4475 = vmatpush1.bf16.msra.mxu0 %v7742_v43 }
 0x1a6   :  { %4667 = vmatpush1.bf16.msra.mxu1 %v7743_v19  ;;  %4477 = vmatprep.subr.bf16.mxu0 %v7744_v60  ;;  %v7754_v60 = vld [vmem:[#allocation68_spill] sm:$0xff] }
 0x1a7   :  { %4669 = vmatprep.subr.bf16.mxu1 %v7745_v50 }
 0x1a9   :  { %4479 = vmatpush1.bf16.msra.mxu0 %v7746_v10  ;;  %v7755_v10 = vand.u32 4294901760, %v7685_v14  ;;  %v7763_v14 = vand.u32 4294901760, %v7692_v16  ;;  %v7769_v16 = vand.u32 4294901760, %v7698_v30  ;;  %v7779_v30 = vand.u32 4294901760, %v7778_v59  ;;  %v7808_v59 = vld [vmem:[#allocation44_spill] sm:$0xff] }
 0x1aa   :  { %4671 = vmatpush1.bf16.msra.mxu1 %v7747_v5  ;;  %4481 = vmatprep.subr.bf16.mxu0 %v7748_v2  ;;  %v7756_v5 = vand.u32 4294901760, %v7686_v42  ;;  %v7757_v2 = vld [vmem:[#allocation69_spill] sm:$0xff] }
 0x1ab   :  { %4673 = vmatprep.subr.bf16.mxu1 %v7751_v31  ;;  %v4680_v42 = vpack.c.bf16 %v7763_v14, %v7762_v12  ;;  %v7782_v14 = vand.u32 4294901760, %v7707_v27  ;;  %v7789_v27 = vand.u32 4294901760, %v7629_v33  ;;  %v7798_v33 = vld [vmem:[#allocation94_spill] sm:$0xff] }
 0x1ac   :  { %v4486_v50 = vpack.c.bf16 %v7756_v5, %v7755_v10  ;;  %v7764_v10 = vld [vmem:[#allocation81_spill] sm:$0xff]  ;;  %v4490_v5 = vpack.c.bf16 %v7766_v35, %v7765_v53  ;;  %v7785_v53 = vld [vmem:[#allocation14_spill] sm:$0xff] }
 0x1ad   :  { %4483 = vmatpush1.bf16.msra.mxu0 %v7754_v60  ;;  %v7786_v35 = vand.u32 4294901760, %v7785_v53 }
 0x1ae   :  { %4675 = vmatpush1.bf16.msra.mxu1 %v7757_v2  ;;  %4485 = vmatprep.subr.bf16.mxu0 %v4484_v13  ;;  %v7770_v13 = vld [vmem:[#allocation28_spill] sm:$0xff] }
 0x1af   :  { %4677 = vmatprep.subr.bf16.mxu1 %v4676_v25  ;;  %v7771_v45 = vand.u32 4294901760, %v7770_v13  ;;  %v7796_v13 = vld [vmem:[#allocation101_spill] sm:$0xff] }
 0x1b0   :  { %2595 = vmatmul.mubr.f32.vlgmr.msra.gmra.mrb[4].mxu0 %v7764_v10 }
 0x1b1   :  { %4487 = vmatpush1.bf16.msra.mxu0 %v4486_v50  ;;  %3499 = vmatmul.mubr.f32.vlgmr.msra.gmra.mrb[4].mxu1 %v7764_v10  ;;  %v4492_v25 = vpack.c.bf16 %v7771_v45, %v7769_v16  ;;  %v7772_v50 = vld [vmem:[#allocation30_spill] sm:$0xff] }
 0x1b2   :  { %4679 = vmatpush1.bf16.msra.mxu1 %v4678_v9  ;;  %4489 = vmatprep.subr.bf16.mxu0 %v4488_v11  ;;  %v7773_v49 = vand.u32 4294901760, %v7772_v50  ;;  %v4494_v9 = vpack.c.bf16 %v7779_v30, %v7777_v58  ;;  %v7781_v11 = vand.u32 4294901760, %v7706_v40  ;;  %v7788_v40 = vand.u32 4294901760, %v7712_v24  ;;  %v7793_v16 = vld [vmem:[#allocation74_spill] sm:$0xff]  ;;  %v7795_v24 = vld [vmem:[#allocation100_spill] sm:$0xff]  ;;  %v7807_v58 = vld [vmem:[#allocation79_spill] sm:$0xff] }
 0x1b3   :  { %4681 = vmatprep.subr.bf16.mxu1 %v4680_v42  ;;  %2600 = vmatprep.mubr.f32.mxu0 %v7255_v48  ;;  %v7783_v42 = vand.u32 4294901760, %v7708_v52  ;;  %v7790_v52 = vand.u32 4294901760, %v7630_v3  ;;  %v7797_v45 = vld [vmem:[#allocation102_spill] sm:$0xff]  ;;  %v7799_v3 = vld [vmem:[#allocation96_spill] sm:$0xff] }
 0x1b4   :  { %v4684_v6 = vpack.c.bf16 %v7775_v41, %v7773_v49  ;;  %3504 = vmatprep.mubr.f32.mxu1 %v7255_v48  ;;  %2604 = vmatmul.mubr.f32.gmra.mrb[6].mxu0 %v7776_v20  ;;  %v4686_v12 = vpack.c.bf16 %v7781_v11, %v7780_v21  ;;  %v4498_v26 = vpack.c.bf16 %v7788_v40, %v7787_v57  ;;  %v7801_v50 = vld [vmem:[#allocation98_spill] sm:$0xff]  ;;  %v7802_v49 = vld [vmem:[#allocation60_spill] sm:$0xff] }
 0x1b5   :  { %4491 = vmatpush1.bf16.msra.mxu0 %v4490_v5  ;;  %3508 = vmatmul.mubr.f32.gmra.mrb[6].mxu1 %v7776_v20  ;;  %v4496_v10 = vpack.c.bf16 %v7783_v42, %v7782_v14  ;;  %v4688_v5 = vpack.c.bf16 %v7786_v35, %v7784_v56  ;;  %v4500_v18 = vpack.c.bf16 %v7790_v52, %v7789_v27  ;;  %v7804_v41 = vld [vmem:[#allocation104_spill] sm:$0xff]  ;;  %v7806_v20 = vld [vmem:[#allocation62_spill] sm:$0xff] }
 0x1b6   :  { %4683 = vmatpush1.bf16.msra.mxu1 %v4682_v17  ;;  %4493 = vmatprep.subr.bf16.mxu0 %v4492_v25  ;;  %v7792_v17 = vld [vmem:[#allocation73_spill] sm:$0xff] }
 0x1b7   :  { %4685 = vmatprep.subr.bf16.mxu1 %v4684_v6  ;;  %2770 = vmatprep.mubr.f32.mxu0 %v7255_v48  ;;  %v7800_v25 = vld [vmem:[#allocation97_spill] sm:$0xff]  ;;  %v7805_v6 = vld [vmem:[#allocation23_spill] sm:$0xff] }
 0x1b8   :  { %3674 = vmatprep.mubr.f32.mxu1 %v7255_v48 }
 0x1b9   :  { %4495 = vmatpush1.bf16.msra.mxu0 %v4494_v9 }
 0x1ba   :  { %4687 = vmatpush1.bf16.msra.mxu1 %v4686_v12  ;;  %4497 = vmatprep.subr.bf16.mxu0 %v4496_v10 }
 0x1bb   :  { %4689 = vmatprep.subr.bf16.mxu1 %v4688_v5 }
 0x1bd   :  { %4499 = vmatpush1.bf16.msra.mxu0 %v4498_v26 }
 0x1be   :  { %4691 = vmatpush1.bf16.msra.mxu1 %v7791_v29  ;;  %4501 = vmatprep.subr.bf16.mxu0 %v4500_v18 }
 0x1bf   :  { %4693 = vmatprep.subr.bf16.mxu1 %v7792_v17 }
 0x1c1   :  { %4503 = vmatpush1.bf16.msra.mxu0 %v7793_v16 }
 0x1c2   :  { %4695 = vmatpush1.bf16.msra.mxu1 %v7794_v4  ;;  %4505 = vmatprep.subr.bf16.mxu0 %v7795_v24 }
 0x1c3   :  { %4697 = vmatprep.subr.bf16.mxu1 %v7796_v13 }
 0x1c5   :  { %4507 = vmatpush1.bf16.msra.mxu0 %v7797_v45 }
 0x1c6   :  { %4699 = vmatpush1.bf16.msra.mxu1 %v7798_v33  ;;  %4509 = vmatprep.subr.bf16.mxu0 %v7799_v3 }
 0x1c7   :  { %4701 = vmatprep.subr.bf16.mxu1 %v7800_v25 }
 0x1c9   :  { %4511 = vmatpush1.bf16.msra.mxu0 %v7801_v50 }
 0x1ca   :  { %4703 = vmatpush1.bf16.msra.mxu1 %v7802_v49  ;;  %4513 = vmatprep.subr.bf16.mxu0 %v7803_v38 }
 0x1cb   :  { %4705 = vmatprep.subr.bf16.mxu1 %v7804_v41 }
 0x1cd   :  { %4515 = vmatpush1.bf16.msra.mxu0 %v7805_v6 }
 0x1ce   :  { %4707 = vmatpush1.bf16.msra.mxu1 %v7806_v20  ;;  %4517 = vmatprep.subr.bf16.mxu0 %v7718_v23  ;;  %v7809_v23 = vld [vmem:[#allocation91_spill] sm:$0xff] }
 0x1cf   :  { %4709 = vmatprep.subr.bf16.mxu1 %v7719_v47  ;;  %v7810_v47 = vld [vmem:[#allocation93_spill] sm:$0xff] }
 0x1d0   :  { %2772 = vmatmul.mubr.f32.vlgmr.msra.gmra.mrb[4].mxu0 %v7807_v58 }
 0x1d1   :  { %4519 = vmatpush1.bf16.msra.mxu0 %v7721_v28  ;;  %3676 = vmatmul.mubr.f32.vlgmr.msra.gmra.mrb[4].mxu1 %v7807_v58  ;;  %v7811_v28 = vld [vmem:[#allocation95_spill] sm:$0xff] }
 0x1d2   :  { %4711 = vmatpush1.bf16.msra.mxu1 %v7722_v7  ;;  %4521 = vmatprep.subr.bf16.mxu0 %v7723_v0  ;;  %v7812_v7 = vld [vmem:[#allocation57_spill] sm:$0xff]  ;;  %v7813_v0 = vld [vmem:[#allocation63_spill] sm:$0xff] }
 0x1d3   :  { %4713 = vmatprep.subr.bf16.mxu1 %v7724_v32  ;;  %2777 = vmatprep.mubr.f32.mxu0 %v7255_v48  ;;  %v3802_v32 = vlaneseq }
 0x1d4   :  { %3681 = vmatprep.mubr.f32.mxu1 %v7255_v48  ;;  %2779 = vmatmul.mubr.f32.gmra.mrb[6].mxu0 %v7808_v59 }
 0x1d5   :  { %4523 = vmatpush1.bf16.msra.mxu0 %v7726_v36  ;;  %3683 = vmatmul.mubr.f32.gmra.mrb[6].mxu1 %v7808_v59  ;;  %v6814_v36 = vshrl.u32 %v3802_v32, 7 }
 0x1d6   :  { %4715 = vmatpush1.bf16.msra.mxu1 %v7727_v37  ;;  %4525 = vmatprep.subr.bf16.mxu0 %v7728_v51  ;;  %v6817_v51 = vld [vmem:[#allocation7] sm:$0xff] }
 0x1d7   :  { %4717 = vmatprep.subr.bf16.mxu1 %v7729_v62  ;;  %2881 = vmatprep.mubr.f32.mxu0 %v7255_v48  ;;  %v3804_v37 = vsub.s32 0, %v6814_v36  ;;  %v3812_v62 = vsub.s32 2, %v6814_v36 }
 0x1d8   :  { %3785 = vmatprep.mubr.f32.mxu1 %v7255_v48 }
 0x1d9   :  { %4527 = vmatpush1.bf16.msra.mxu0 %v7730_v63  ;;  %v3808_v63 = vsub.s32 1, %v6814_v36 }
 0x1da   :  { %4719 = vmatpush1.bf16.msra.mxu1 %v7731_v54  ;;  %4529 = vmatprep.subr.bf16.mxu0 %v7732_v15  ;;  %v3816_v54 = vsub.s32 3, %v6814_v36  ;;  %v3805_v15 = vrot.slane %v6817_v51, %v3804_v37 }
 0x1db   :  { %4721 = vmatprep.subr.bf16.mxu1 %v7733_v8  ;;  %v3809_v8 = vrot.slane %v6817_v51, %v3808_v63  ;;  %v3820_v63 = vsub.s32 4, %v6814_v36 }
 0x1dd   :  { %4531 = vmatpush1.bf16.msra.mxu0 %v7734_v1  ;;  %v3817_v1 = vrot.slane %v6817_v51, %v3816_v54  ;;  %v3828_v54 = vsub.s32 6, %v6814_v36 }
 0x1de   :  { %4723 = vmatpush1.bf16.msra.mxu1 %v7735_v39  ;;  %4533 = vmatprep.subr.bf16.mxu0 %v7736_v34 }
 0x1df   :  { %4725 = vmatprep.subr.bf16.mxu1 %v7737_v44 }
 0x1e1   :  { %4535 = vmatpush1.bf16.msra.mxu0 %v7738_v61 }
 0x1e2   :  { %4727 = vmatpush1.bf16.msra.mxu1 %v7739_v46  ;;  %4537 = vmatprep.subr.bf16.mxu0 %v7740_v55 }
 0x1e3   :  { %4729 = vmatprep.subr.bf16.mxu1 %v7741_v22 }
 0x1e5   :  { %4539 = vmatpush1.bf16.msra.mxu0 %v7742_v43 }
 0x1e6   :  { %4731 = vmatpush1.bf16.msra.mxu1 %v7743_v19  ;;  %4541 = vmatprep.subr.bf16.mxu0 %v7809_v23 }
 0x1e7   :  { %4733 = vmatprep.subr.bf16.mxu1 %v7810_v47 }
 0x1e9   :  { %4543 = vmatpush1.bf16.msra.mxu0 %v7811_v28 }
 0x1ea   :  { %4735 = vmatpush1.bf16.msra.mxu1 %v7812_v7  ;;  %4545 = vmatprep.subr.bf16.mxu0 %v7813_v0 }
 0x1eb   :  { %4737 = vmatprep.subr.bf16.mxu1 %v7751_v31 }
 0x1ed   :  { %4547 = vmatpush1.bf16.msra.mxu0 %v7754_v60 }
 0x1ee   :  { %4739 = vmatpush1.bf16.msra.mxu1 %v7757_v2 }
 0x1f0   :  { %2883 = vmatmul.mubr.f32.vlgmr.msra.gmra.mrb[4].mxu0 %v7807_v58 }
 0x1f1   :  { %3787 = vmatmul.mubr.f32.vlgmr.msra.gmra.mrb[4].mxu1 %v7807_v58  ;;  %2888 = vmatprep.mubr.f32.mxu0 %v7255_v48 }
 0x1f2   :  { %3792 = vmatprep.mubr.f32.mxu1 %v7255_v48  ;;  %v3813_v48 = vrot.slane %v6817_v51, %v3812_v62 }
 0x1f4   :  { %2890 = vmatmul.mubr.f32.gmra.mrb[6].mxu0 %v7808_v59 }
 0x1f5   :  { %3794 = vmatmul.mubr.f32.gmra.mrb[6].mxu1 %v7808_v59 }
 0x1fb   :  { %v1076_v39 = vpop.f32.mrb[0].mxu0  ;;  %v1980_v44 = vpop.f32.mrb[0].mxu1 }
 0x1fc   :  { %v3842_v34 = vsub.f32 %v1076_v39, %v3805_v15  ;;  %v1078_v61 = vpop.f32.mrb[1].mxu0  ;;  %v3844_v46 = vsub.f32 %v1980_v44, %v3813_v48  ;;  %v1982_v22 = vpop.f32.mrb[1].mxu1 }
 0x1fd   :  { %v3843_v55 = vsub.f32 %v1078_v61, %v3809_v8  ;;  %v3845_v19 = vsub.f32 %v1982_v22, %v3817_v1 }
 0x1fe   :  { %v3858_v43 = vmul.f32 1.75, %v3842_v34  ;;  %v3860_v60 = vmul.f32 1.75, %v3844_v46 }
 0x1ff   :  { %v3859_v2 = vmul.f32 1.75, %v3843_v55  ;;  %v1083_v31 = vpop.f32.mrb[2].mxu0  ;;  %v3861_v9 = vmul.f32 1.75, %v3845_v19 }
 0x200   :  { %v3874_v30 = vmul.f32 %v3858_v43, %v3858_v43  ;;  %v3850_v21 = vsub.f32 %v1083_v31, %v3805_v15  ;;  %v1987_v11 = vpop.f32.mrb[2].mxu1  ;;  %v1085_v12 = vpop.f32.mrb[3].mxu0  ;;  %v3876_v14 = vmul.f32 %v3860_v60, %v3860_v60  ;;  %v3824_v15 = vsub.s32 5, %v6814_v36 }
 0x201   :  { %v3875_v42 = vmul.f32 %v3859_v2, %v3859_v2  ;;  %v3852_v10 = vsub.f32 %v1987_v11, %v3813_v48  ;;  %v3851_v56 = vsub.f32 %v1085_v12, %v3809_v8  ;;  %v1989_v53 = vpop.f32.mrb[3].mxu1  ;;  %v3877_v5 = vmul.f32 %v3861_v9, %v3861_v9 }
 0x202   :  { %v3890_v35 = vsub.f32 0.0, %v3874_v30  ;;  %v3866_v57 = vmul.f32 1.75, %v3850_v21  ;;  %v3853_v40 = vsub.f32 %v1989_v53, %v3817_v1  ;;  %v3892_v26 = vsub.f32 0.0, %v3876_v14 }
 0x203   :  { %v3891_v27 = vsub.f32 0.0, %v3875_v42  ;;  %v3868_v52 = vmul.f32 1.75, %v3852_v10  ;;  %v3867_v18 = vmul.f32 1.75, %v3851_v56  ;;  %v3893_v17 = vsub.f32 0.0, %v3877_v5 }
 0x204   :  { %v3906_v29 = vmul.f32 1.442695, %v3890_v35  ;;  %v3882_v16 = vmul.f32 %v3866_v57, %v3866_v57  ;;  %v3869_v4 = vmul.f32 1.75, %v3853_v40  ;;  %v3910_v24 = vmul.f32 1.442695, %v3892_v26 }
 0x205   :  { %v3908_v13 = vmul.f32 1.442695, %v3891_v27  ;;  %v3884_v45 = vmul.f32 %v3868_v52, %v3868_v52  ;;  %v3883_v33 = vmul.f32 %v3867_v18, %v3867_v18  ;;  %v3912_v3 = vmul.f32 1.442695, %v3893_v17 }
 0x206   :  { %4829 = vpow2.f32 %v3906_v29  ;;  %v3898_v25 = vsub.f32 0.0, %v3882_v16  ;;  %v3885_v50 = vmul.f32 %v3869_v4, %v3869_v4  ;;  %v3832_v48 = vsub.s32 7, %v6814_v36 }
 0x207   :  { %4831 = vpow2.f32 %v3910_v24  ;;  %v3900_v49 = vsub.f32 0.0, %v3884_v45  ;;  %v3899_v38 = vsub.f32 0.0, %v3883_v33  ;;  %v3821_v8 = vrot.slane %v6817_v51, %v3820_v63 }
 0x208   :  { %4833 = vpow2.f32 %v3908_v13  ;;  %v3922_v41 = vmul.f32 1.442695, %v3898_v25  ;;  %v3901_v6 = vsub.f32 0.0, %v3885_v50  ;;  %v3829_v1 = vrot.slane %v6817_v51, %v3828_v54 }
 0x209   :  { %4835 = vpow2.f32 %v3912_v3  ;;  %v3926_v20 = vmul.f32 1.442695, %v3900_v49  ;;  %v3924_v58 = vmul.f32 1.442695, %v3899_v38  ;;  %v3825_v39 = vrot.slane %v6817_v51, %v3824_v15 }
 0x20a   :  { %4837 = vpow2.f32 %v3922_v41  ;;  %v3928_v59 = vmul.f32 1.442695, %v3901_v6  ;;  %v3833_v34 = vrot.slane %v6817_v51, %v3832_v48 }
 0x20b   :  { %4839 = vpow2.f32 %v3926_v20 }
 0x20c   :  { %4841 = vpow2.f32 %v3924_v58 }
 0x20d   :  { %4843 = vpow2.f32 %v3928_v59 }
 0x210   :  { %v4830_v23 = vpop.eup %4829 }
 0x211   :  { %v4832_v47 = vpop.eup %4831  ;;  %3938 = vst [vmem:[#allocation8] sm:$0xff] %v4830_v23 }
 0x212   :  { %v4834_v28 = vpop.eup %4833  ;;  %3940 = vst [vmem:[#allocation8 + $0x10] sm:$0xff] %v4832_v47 }
 0x213   :  { %v4836_v7 = vpop.eup %4835  ;;  %3939 = vst [vmem:[#allocation8 + $0x8] sm:$0xff] %v4834_v28 }
 0x214   :  { %v4838_v0 = vpop.eup %4837  ;;  %3941 = vst [vmem:[#allocation8 + $0x18] sm:$0xff] %v4836_v7 }
 0x215   :  { %v4840_v32 = vpop.eup %4839  ;;  %3946 = vst [vmem:[#allocation8 + $0x40] sm:$0xff] %v4838_v0 }
 0x216   :  { %v4842_v37 = vpop.eup %4841  ;;  %3948 = vst [vmem:[#allocation8 + $0x50] sm:$0xff] %v4840_v32 }
 0x217   :  { %v4844_v62 = vpop.eup %4843  ;;  %3947 = vst [vmem:[#allocation8 + $0x48] sm:$0xff] %v4842_v37 }
 0x218   :  { %3949 = vst [vmem:[#allocation8 + $0x58] sm:$0xff] %v4844_v62 }
 0x2c3   :  { %v2884_v44 = vpop.f32.mrb[4].mxu0 }
 0x2c4   :  { %v3846_v61 = vsub.f32 %v2884_v44, %v3821_v8  ;;  %v3788_v46 = vpop.f32.mrb[4].mxu1  ;;  %v2886_v55 = vpop.f32.mrb[5].mxu0 }
 0x2c5   :  { %v3848_v22 = vsub.f32 %v3788_v46, %v3829_v1  ;;  %v3847_v43 = vsub.f32 %v2886_v55, %v3825_v39  ;;  %v3790_v19 = vpop.f32.mrb[5].mxu1 }
 0x2c6   :  { %v3862_v60 = vmul.f32 1.75, %v3846_v61  ;;  %v3849_v2 = vsub.f32 %v3790_v19, %v3833_v34 }
 0x2c7   :  { %v3864_v31 = vmul.f32 1.75, %v3848_v22  ;;  %v3863_v30 = vmul.f32 1.75, %v3847_v43  ;;  %v2891_v36 = vpop.f32.mrb[6].mxu0 }
 0x2c8   :  { %v3878_v9 = vmul.f32 %v3862_v60, %v3862_v60  ;;  %v3865_v21 = vmul.f32 1.75, %v3849_v2  ;;  %v3854_v11 = vsub.f32 %v2891_v36, %v3821_v8  ;;  %v3795_v12 = vpop.f32.mrb[6].mxu1  ;;  %v2893_v14 = vpop.f32.mrb[7].mxu0 }
 0x2c9   :  { %v3880_v42 = vmul.f32 %v3864_v31, %v3864_v31  ;;  %v3879_v10 = vmul.f32 %v3863_v30, %v3863_v30  ;;  %v3856_v51 = vsub.f32 %v3795_v12, %v3829_v1  ;;  %v3855_v56 = vsub.f32 %v2893_v14, %v3825_v39  ;;  %v3797_v53 = vpop.f32.mrb[7].mxu1 }
 0x2ca   :  { %v3894_v35 = vsub.f32 0.0, %v3878_v9  ;;  %v3881_v5 = vmul.f32 %v3865_v21, %v3865_v21  ;;  %v3870_v57 = vmul.f32 1.75, %v3854_v11  ;;  %v3857_v40 = vsub.f32 %v3797_v53, %v3833_v34 }
 0x2cb   :  { %v3896_v26 = vsub.f32 0.0, %v3880_v42  ;;  %v3895_v27 = vsub.f32 0.0, %v3879_v10  ;;  %v3872_v52 = vmul.f32 1.75, %v3856_v51  ;;  %v3871_v18 = vmul.f32 1.75, %v3855_v56 }
 0x2cc   :  { %v3914_v29 = vmul.f32 1.442695, %v3894_v35  ;;  %v3897_v17 = vsub.f32 0.0, %v3881_v5  ;;  %v3886_v16 = vmul.f32 %v3870_v57, %v3870_v57  ;;  %v3873_v4 = vmul.f32 1.75, %v3857_v40 }
 0x2cd   :  { %v3918_v24 = vmul.f32 1.442695, %v3896_v26  ;;  %v3916_v13 = vmul.f32 1.442695, %v3895_v27  ;;  %v3888_v45 = vmul.f32 %v3872_v52, %v3872_v52  ;;  %v3887_v33 = vmul.f32 %v3871_v18, %v3871_v18 }
 0x2ce   :  { %4845 = vpow2.f32 %v3914_v29  ;;  %v3920_v3 = vmul.f32 1.442695, %v3897_v17  ;;  %v3902_v25 = vsub.f32 0.0, %v3886_v16  ;;  %v3889_v50 = vmul.f32 %v3873_v4, %v3873_v4 }
 0x2cf   :  { %4847 = vpow2.f32 %v3918_v24  ;;  %v3904_v49 = vsub.f32 0.0, %v3888_v45  ;;  %v3903_v38 = vsub.f32 0.0, %v3887_v33 }
 0x2d0   :  { %4849 = vpow2.f32 %v3916_v13  ;;  %v3930_v41 = vmul.f32 1.442695, %v3902_v25  ;;  %v3905_v6 = vsub.f32 0.0, %v3889_v50 }
 0x2d1   :  { %4851 = vpow2.f32 %v3920_v3  ;;  %v3934_v20 = vmul.f32 1.442695, %v3904_v49  ;;  %v3932_v58 = vmul.f32 1.442695, %v3903_v38 }
 0x2d2   :  { %4853 = vpow2.f32 %v3930_v41  ;;  %v3936_v59 = vmul.f32 1.442695, %v3905_v6 }
 0x2d3   :  { %4855 = vpow2.f32 %v3934_v20 }
 0x2d4   :  { %4857 = vpow2.f32 %v3932_v58 }
 0x2d5   :  { %4859 = vpow2.f32 %v3936_v59 }
 0x2d8   :  { %v4846_v23 = vpop.eup %4845 }
 0x2d9   :  { %v4848_v47 = vpop.eup %4847  ;;  %3942 = vst [vmem:[#allocation8 + $0x20] sm:$0xff] %v4846_v23 }
 0x2da   :  { %v4850_v28 = vpop.eup %4849  ;;  %3944 = vst [vmem:[#allocation8 + $0x30] sm:$0xff] %v4848_v47 }
 0x2db   :  { %v4852_v7 = vpop.eup %4851  ;;  %3943 = vst [vmem:[#allocation8 + $0x28] sm:$0xff] %v4850_v28 }
 0x2dc   :  { %v4854_v0 = vpop.eup %4853  ;;  %3945 = vst [vmem:[#allocation8 + $0x38] sm:$0xff] %v4852_v7 }
 0x2dd   :  { %v4856_v32 = vpop.eup %4855  ;;  %3950 = vst [vmem:[#allocation8 + $0x60] sm:$0xff] %v4854_v0 }
 0x2de   :  { %v4858_v37 = vpop.eup %4857  ;;  %3952 = vst [vmem:[#allocation8 + $0x70] sm:$0xff] %v4856_v32 }
 0x2df   :  { %v4860_v62 = vpop.eup %4859  ;;  %3951 = vst [vmem:[#allocation8 + $0x68] sm:$0xff] %v4858_v37 }
 0x2e0   :  { %3953 = vst [vmem:[#allocation8 + $0x78] sm:$0xff] %v4860_v62 }
 0x2e1   :  { %4938 = shalt.err (!%p4935_p0)
}
 0x2e2   :  { %s4939_s29 = scalar_lea.hbm %s6852_s3, 2048 }
 0x2e3   :  { %p4940_p1 = scmp.ne.s32.totalorder %s6852_s3, %s4939_s29  ;;  %p4943_p2 = scmp.lt.u32.totalorder %s4939_s29, %s6852_s3 }
 0x2e5   :  { %p4945_p3 = pnand %p4943_p2, %p4940_p1 }
 0x2e7   :  { %4948 = shalt.err (!%p4945_p3)
}
 0x2e8   :  { %3965 = dma.vmem_to_hbm [thread:$0]  %s3960_s25, 2048, %s6852_s3, [#allocation4], %s4956_s22, %s4956_s22, %s4957_s23  }
 0x2e9   :  { %4953 = dma.done.wait [#allocation4], 2048  }
 0x2ea   :  { %4954 = vsyncadd [#allocation4], 4294965248 }
 0x2eb   :  { %3969 = vsyncpa [#allocation3], 1 }
 0x2ec   :  { %3970 = vsyncpa [#allocation6], 1 }
 0x2ed   :  { %3971 = vsyncpa [#allocation4], 1 }

</bundles_post_ra>
